<compile_context>
chip_gen: v7x
topology: tpu7x:2x2x1
jax: 0.10.0
libtpu: 0.0.40
codegen_flags: <defaults>
</compile_context>

<pallas_src>
import functools

import numpy as np
import jax
import jax.numpy as jnp
from jax.experimental import pallas as pl
from jax.experimental.pallas import tpu as pltpu

EPS = 1e-5
K = 10        # kernel_size
STRIDE = 2
CPAD = 128    # lane-padded channel width for all intermediate activations

VMEM_SPEC = pl.BlockSpec(memory_space=pltpu.MemorySpace.VMEM)

# Static geometry for input_shape=(60, 6), n_layer=4, kernel=10, stride=2:
#   l1: Conv1d(  6,  32, pad=6)  L 60 -> 32   (L_pad = 72)
#   l2: Conv1d( 32,  64, pad=4)  L 32 -> 16   (L_pad = 40)
#   l3: Conv1d( 64, 128, pad=4)  L 16 ->  8   (L_pad = 24)   + BN(l4)
#   l5: Conv1d(128, 256, pad=4)  L  8 ->  4   (L_pad = 16)   + BN(l6)


# ----------------------------------------------------------------------------
# Fused kernel: entire encoder forward, VMEM-resident
# ----------------------------------------------------------------------------
def tcgan_encoder_kernel(x_ref,                               # (B*60, 6)
                         w1_ref, b1_ref, w2_ref, b2_ref,      # (K*CPAD,128),(1,128)
                         w3_ref, b3_ref, g4_ref, be4_ref,
                         w5_ref, b5_ref, g6_ref, be6_ref,     # last layer: 256 wide
                         out_ref,                             # (B*4, 256)
                         pad1, pad2, pad3, pad4,              # (B*L_pad, CPAD)
                         patches,                             # (B*32, K*CPAD)
                         *, B):
    # Zero the padded-activation scratch (provides both the conv zero padding
    # along length and the zero lane padding of the channel axis).
    pad1[...] = jnp.zeros_like(pad1)
    pad2[...] = jnp.zeros_like(pad2)
    pad3[...] = jnp.zeros_like(pad3)
    pad4[...] = jnp.zeros_like(pad4)

    # Scatter the channels-last input (60 rows, 6 real channels) into the first
    # padded / 128-lane buffer.  Conv padding of l1 is 6.
    for b in range(B):
        pad1[b * 72 + 6:b * 72 + 66, 0:6] = x_ref[b * 60:(b + 1) * 60, :]

    def conv(pad_ref, l_pad, l_out, w_ref, b_ref):
        """Strided Conv1d as im2col + one MXU contraction -> (B*l_out, C_out_pad)."""
        rows = B * l_out
        for j in range(K):
            col = j * CPAD                       # lane-aligned column block
            for b in range(B):
                patches[b * l_out:(b + 1) * l_out, col:col + CPAD] = (
                    pad_ref[pl.ds(b * l_pad + j, l_out, STRIDE), :])
        y = jnp.dot(patches[0:rows, :], w_ref[...],
                    preferred_element_type=jnp.float32)
        return y + b_ref[...]

    def store_padded(y, dst_ref, l_pad, l_out, conv_pad):
        for b in range(B):
            base = b * l_pad + conv_pad
            dst_ref[base:base + l_out, :] = y[b * l_out:(b + 1) * l_out, :]

    def leaky_relu(y):
        return jnp.maximum(y, 0.2 * y)

    def batchnorm(y, g_ref, be_ref):
        # training-mode batch stats: rows of y are exactly the B*L samples
        mean = jnp.mean(y, axis=0, keepdims=True)
        var = jnp.mean((y - mean) ** 2, axis=0, keepdims=True)
        return (y - mean) * jax.lax.rsqrt(var + EPS) * g_ref[...] + be_ref[...]

    # l1 -> leaky_relu
    y = leaky_relu(conv(pad1, 72, 32, w1_ref, b1_ref))                 # (B*32,128)
    store_padded(y, pad2, 40, 32, 4)
    # l2 -> leaky_relu
    y = leaky_relu(conv(pad2, 40, 16, w2_ref, b2_ref))                 # (B*16,128)
    store_padded(y, pad3, 24, 16, 4)
    # l3 -> BatchNorm(l4) -> leaky_relu
    y = leaky_relu(batchnorm(conv(pad3, 24, 8, w3_ref, b3_ref),
                             g4_ref, be4_ref))                         # (B*8,128)
    store_padded(y, pad4, 16, 8, 4)
    # l5 -> BatchNorm(l6) -> leaky_relu
    y = leaky_relu(batchnorm(conv(pad4, 16, 4, w5_ref, b5_ref),
                             g6_ref, be6_ref))                         # (B*4,256)
    out_ref[...] = y                                                   # lane-dense


# ----------------------------------------------------------------------------
# Wrapper
# ----------------------------------------------------------------------------
def tcgan_encoder_forward(x, params):
    """x: (B, 6, 60) NCL float32  ->  (B, 1024) flattened features."""
    B = x.shape[0]
    x_cl = jnp.transpose(x, (0, 2, 1)).reshape(B * 60, 6)   # channels-last rows
    out2d = pl.pallas_call(
        functools.partial(tcgan_encoder_kernel, B=B),
        out_shape=jax.ShapeDtypeStruct((B * 4, 256), jnp.float32),
        in_specs=[VMEM_SPEC] * 13,
        out_specs=VMEM_SPEC,
        scratch_shapes=[
            pltpu.VMEM((B * 72, CPAD), jnp.float32),        # padded act l1 input
            pltpu.VMEM((B * 40, CPAD), jnp.float32),        # padded act l2 input
            pltpu.VMEM((B * 24, CPAD), jnp.float32),        # padded act l3 input
            pltpu.VMEM((B * 16, CPAD), jnp.float32),        # padded act l5 input
            pltpu.VMEM((B * 32, K * CPAD), jnp.float32),    # im2col patch slab
        ],
        compiler_params=pltpu.CompilerParams(vmem_limit_bytes=32 * 1024 * 1024),
    )(x_cl,
      params["w1"], params["b1"],
      params["w2"], params["b2"],
      params["w3"], params["b3"], params["g4"], params["be4"],
      params["w5"], params["b5"], params["g6"], params["be6"])
    # TODO(synk): fold this final NCL-flatten transpose into the kernel store
    # (kept as one tiny XLA transpose on an 8 KiB array for lowering safety).
    return jnp.transpose(out2d.reshape(B, 4, 256), (0, 2, 1)).reshape(B, 256 * 4)


# ----------------------------------------------------------------------------
# Parameter init (matches TCGAN_Encoder.initweights) + packing to kernel layout
# ----------------------------------------------------------------------------
def trunc_normal(key, shape, std=0.02):
    # nn.init.trunc_normal_(std=0.02, a=-0.04, b=0.04) == +/- 2 std
    return std * jax.random.truncated_normal(key, -2.0, 2.0, shape, jnp.float32)


def pack_conv_weight(w, c_out_pad):
    """(C_out, C_in, K) torch layout -> (K*CPAD, c_out_pad) im2col layout."""
    c_out, c_in, k = w.shape
    wt = jnp.transpose(w, (2, 1, 0))                              # (K, C_in, C_out)
    wt = jnp.pad(wt, ((0, 0), (0, CPAD - c_in), (0, c_out_pad - c_out)))
    return wt.reshape(k * CPAD, c_out_pad)


def pad_vec(v, width):
    return jnp.pad(v.reshape(1, -1), ((0, 0), (0, width - v.shape[0])))


def init_params(key):
    ks = jax.random.split(key, 6)
    raw = {
        "w1": trunc_normal(ks[0], (32, 6, K)),   "b1": jnp.zeros((32,), jnp.float32),
        "w2": trunc_normal(ks[1], (64, 32, K)),  "b2": jnp.zeros((64,), jnp.float32),
        "w3": trunc_normal(ks[2], (128, 64, K)), "b3": jnp.zeros((128,), jnp.float32),
        "g4": trunc_normal(ks[3], (128,)),       "be4": jnp.zeros((128,), jnp.float32),
        "w5": trunc_normal(ks[4], (256, 128, K)), "b5": jnp.zeros((256,), jnp.float32),
        "g6": trunc_normal(ks[5], (256,)),       "be6": jnp.zeros((256,), jnp.float32),
    }
    packed = {
        "w1": pack_conv_weight(raw["w1"], 128), "b1": pad_vec(raw["b1"], 128),
        "w2": pack_conv_weight(raw["w2"], 128), "b2": pad_vec(raw["b2"], 128),
        "w3": pack_conv_weight(raw["w3"], 128), "b3": pad_vec(raw["b3"], 128),
        "g4": raw["g4"].reshape(1, 128),        "be4": raw["be4"].reshape(1, 128),
        "w5": pack_conv_weight(raw["w5"], 256), "b5": pad_vec(raw["b5"], 256),
        "g6": raw["g6"].reshape(1, 256),        "be6": raw["be6"].reshape(1, 256),
    }
    return raw, packed


# ----------------------------------------------------------------------------
# Pure-JAX reference (mirrors the torch module forward) for validation
# ----------------------------------------------------------------------------
def reference_forward(x, raw):
    def conv1d(h, w, b, pad):
        y = jax.lax.conv_general_dilated(
            h, w, window_strides=(STRIDE,), padding=[(pad, pad)],
            dimension_numbers=("NCH", "OIH", "NCH"),
            precision=jax.lax.Precision.HIGHEST)
        return y + b[None, :, None]

    def bn(h, g, be):
        mean = jnp.mean(h, axis=(0, 2), keepdims=True)
        var = jnp.mean((h - mean) ** 2, axis=(0, 2), keepdims=True)
        return ((h - mean) * jax.lax.rsqrt(var + EPS) * g[None, :, None]
                + be[None, :, None])

    lrelu = lambda h: jnp.maximum(h, 0.2 * h)
    h = lrelu(conv1d(x, raw["w1"], raw["b1"], 6))
    h = lrelu(conv1d(h, raw["w2"], raw["b2"], 4))
    h = lrelu(bn(conv1d(h, raw["w3"], raw["b3"], 4), raw["g4"], raw["be4"]))
    h = lrelu(bn(conv1d(h, raw["w5"], raw["b5"], 4), raw["g6"], raw["be6"]))
    return h.reshape(h.shape[0], -1)


if __name__ == "__main__":
    B = 2
    key = jax.random.PRNGKey(0)
    kx, kp = jax.random.split(key)
    x = jax.random.normal(kx, (B, 6, 60), jnp.float32)      # (B, C=6, L=60) NCL
    raw, packed = init_params(kp)

    fwd = jax.jit(tcgan_encoder_forward)
    out = jax.block_until_ready(fwd(x, packed))

    assert out.shape == (B, 1024), out.shape
    assert bool(jnp.all(jnp.isfinite(out)))

    ref = reference_forward(x, raw)
    np.testing.assert_allclose(np.asarray(out), np.asarray(ref),
                               rtol=5e-2, atol=5e-4)
    print("KERNEL_OK")
</pallas_src>

<mosaic_0001>
module attributes {stable_mosaic.version = 11 : i64} {
  func.func @tcgan_encoder_kernel(%arg0: memref<120x6xf32, #tpu.memory_space<vmem>>, %arg1: memref<1280x128xf32, #tpu.memory_space<vmem>>, %arg2: memref<1x128xf32, #tpu.memory_space<vmem>>, %arg3: memref<1280x128xf32, #tpu.memory_space<vmem>>, %arg4: memref<1x128xf32, #tpu.memory_space<vmem>>, %arg5: memref<1280x128xf32, #tpu.memory_space<vmem>>, %arg6: memref<1x128xf32, #tpu.memory_space<vmem>>, %arg7: memref<1x128xf32, #tpu.memory_space<vmem>>, %arg8: memref<1x128xf32, #tpu.memory_space<vmem>>, %arg9: memref<1280x256xf32, #tpu.memory_space<vmem>>, %arg10: memref<1x256xf32, #tpu.memory_space<vmem>>, %arg11: memref<1x256xf32, #tpu.memory_space<vmem>>, %arg12: memref<1x256xf32, #tpu.memory_space<vmem>>, %arg13: memref<8x256xf32, #tpu.memory_space<vmem>>, %arg14: memref<144x128xf32, #tpu.memory_space<vmem>>, %arg15: memref<80x128xf32, #tpu.memory_space<vmem>>, %arg16: memref<48x128xf32, #tpu.memory_space<vmem>>, %arg17: memref<32x128xf32, #tpu.memory_space<vmem>>, %arg18: memref<64x1280xf32, #tpu.memory_space<vmem>>) attributes {dimension_semantics = [], scalar_prefetch = 0 : i64, scratch_operands = 5 : i64, tpu.core_type = #tpu.core_type<tc>} {
    %cst = arith.constant 0.000000e+00 : f32
    %0 = vector.broadcast %cst : f32 to vector<144x128xf32>
    %c0 = arith.constant 0 : index
    %c0_0 = arith.constant 0 : index
    %1 = vector.load %arg14[%c0, %c0_0] : memref<144x128xf32, #tpu.memory_space<vmem>>, vector<144x128xf32>
    tpu.vector_store %arg14[%c0, %c0_0], %0 {strides = array<i32>} : memref<144x128xf32, #tpu.memory_space<vmem>>, vector<144x128xf32>,
    %cst_1 = arith.constant 0.000000e+00 : f32
    %2 = vector.broadcast %cst_1 : f32 to vector<80x128xf32>
    %c0_2 = arith.constant 0 : index
    %c0_3 = arith.constant 0 : index
    %3 = vector.load %arg15[%c0_2, %c0_3] : memref<80x128xf32, #tpu.memory_space<vmem>>, vector<80x128xf32>
    tpu.vector_store %arg15[%c0_2, %c0_3], %2 {strides = array<i32>} : memref<80x128xf32, #tpu.memory_space<vmem>>, vector<80x128xf32>,
    %cst_4 = arith.constant 0.000000e+00 : f32
    %4 = vector.broadcast %cst_4 : f32 to vector<48x128xf32>
    %c0_5 = arith.constant 0 : index
    %c0_6 = arith.constant 0 : index
    %5 = vector.load %arg16[%c0_5, %c0_6] : memref<48x128xf32, #tpu.memory_space<vmem>>, vector<48x128xf32>
    tpu.vector_store %arg16[%c0_5, %c0_6], %4 {strides = array<i32>} : memref<48x128xf32, #tpu.memory_space<vmem>>, vector<48x128xf32>,
    %cst_7 = arith.constant 0.000000e+00 : f32
    %6 = vector.broadcast %cst_7 : f32 to vector<32x128xf32>
    %c0_8 = arith.constant 0 : index
    %c0_9 = arith.constant 0 : index
    %7 = vector.load %arg17[%c0_8, %c0_9] : memref<32x128xf32, #tpu.memory_space<vmem>>, vector<32x128xf32>
    tpu.vector_store %arg17[%c0_8, %c0_9], %6 {strides = array<i32>} : memref<32x128xf32, #tpu.memory_space<vmem>>, vector<32x128xf32>,
    %c0_10 = arith.constant 0 : index
    %c0_11 = arith.constant 0 : index
    %8 = vector.load %arg0[%c0_10, %c0_11] : memref<120x6xf32, #tpu.memory_space<vmem>>, vector<60x6xf32>
    %c6 = arith.constant 6 : index
    %c0_12 = arith.constant 0 : index
    %9 = vector.load %arg14[%c6, %c0_12] : memref<144x128xf32, #tpu.memory_space<vmem>>, vector<60x6xf32>
    tpu.vector_store %arg14[%c6, %c0_12], %8 {strides = array<i32>} : memref<144x128xf32, #tpu.memory_space<vmem>>, vector<60x6xf32>,
    %c60 = arith.constant 60 : index
    %c0_13 = arith.constant 0 : index
    %10 = vector.load %arg0[%c60, %c0_13] : memref<120x6xf32, #tpu.memory_space<vmem>>, vector<60x6xf32>
    %c78 = arith.constant 78 : index
    %c0_14 = arith.constant 0 : index
    %11 = vector.load %arg14[%c78, %c0_14] : memref<144x128xf32, #tpu.memory_space<vmem>>, vector<60x6xf32>
    tpu.vector_store %arg14[%c78, %c0_14], %10 {strides = array<i32>} : memref<144x128xf32, #tpu.memory_space<vmem>>, vector<60x6xf32>,
    %c0_15 = arith.constant 0 : index
    %c0_16 = arith.constant 0 : index
    %12 = tpu.strided_load %arg14[%c0_15, %c0_16] {strides = array<i32: 2, 1>} : memref<144x128xf32, #tpu.memory_space<vmem>>, vector<32x128xf32>
    %c0_17 = arith.constant 0 : index
    %c0_18 = arith.constant 0 : index
    %13 = vector.load %arg18[%c0_17, %c0_18] : memref<64x1280xf32, #tpu.memory_space<vmem>>, vector<32x128xf32>
    tpu.vector_store %arg18[%c0_17, %c0_18], %12 {strides = array<i32>} : memref<64x1280xf32, #tpu.memory_space<vmem>>, vector<32x128xf32>,
    %c72 = arith.constant 72 : index
    %c0_19 = arith.constant 0 : index
    %14 = tpu.strided_load %arg14[%c72, %c0_19] {strides = array<i32: 2, 1>} : memref<144x128xf32, #tpu.memory_space<vmem>>, vector<32x128xf32>
    %c32 = arith.constant 32 : index
    %c0_20 = arith.constant 0 : index
    %15 = vector.load %arg18[%c32, %c0_20] : memref<64x1280xf32, #tpu.memory_space<vmem>>, vector<32x128xf32>
    tpu.vector_store %arg18[%c32, %c0_20], %14 {strides = array<i32>} : memref<64x1280xf32, #tpu.memory_space<vmem>>, vector<32x128xf32>,
    %c1 = arith.constant 1 : index
    %c0_21 = arith.constant 0 : index
    %16 = tpu.strided_load %arg14[%c1, %c0_21] {strides = array<i32: 2, 1>} : memref<144x128xf32, #tpu.memory_space<vmem>>, vector<32x128xf32>
    %c0_22 = arith.constant 0 : index
    %c128 = arith.constant 128 : index
    %17 = vector.load %arg18[%c0_22, %c128] : memref<64x1280xf32, #tpu.memory_space<vmem>>, vector<32x128xf32>
    tpu.vector_store %arg18[%c0_22, %c128], %16 {strides = array<i32>} : memref<64x1280xf32, #tpu.memory_space<vmem>>, vector<32x128xf32>,
    %c73 = arith.constant 73 : index
    %c0_23 = arith.constant 0 : index
    %18 = tpu.strided_load %arg14[%c73, %c0_23] {strides = array<i32: 2, 1>} : memref<144x128xf32, #tpu.memory_space<vmem>>, vector<32x128xf32>
    %c32_24 = arith.constant 32 : index
    %c128_25 = arith.constant 128 : index
    %19 = vector.load %arg18[%c32_24, %c128_25] : memref<64x1280xf32, #tpu.memory_space<vmem>>, vector<32x128xf32>
    tpu.vector_store %arg18[%c32_24, %c128_25], %18 {strides = array<i32>} : memref<64x1280xf32, #tpu.memory_space<vmem>>, vector<32x128xf32>,
    %c2 = arith.constant 2 : index
    %c0_26 = arith.constant 0 : index
    %20 = tpu.strided_load %arg14[%c2, %c0_26] {strides = array<i32: 2, 1>} : memref<144x128xf32, #tpu.memory_space<vmem>>, vector<32x128xf32>
    %c0_27 = arith.constant 0 : index
    %c256 = arith.constant 256 : index
    %21 = vector.load %arg18[%c0_27, %c256] : memref<64x1280xf32, #tpu.memory_space<vmem>>, vector<32x128xf32>
    tpu.vector_store %arg18[%c0_27, %c256], %20 {strides = array<i32>} : memref<64x1280xf32, #tpu.memory_space<vmem>>, vector<32x128xf32>,
    %c74 = arith.constant 74 : index
    %c0_28 = arith.constant 0 : index
    %22 = tpu.strided_load %arg14[%c74, %c0_28] {strides = array<i32: 2, 1>} : memref<144x128xf32, #tpu.memory_space<vmem>>, vector<32x128xf32>
    %c32_29 = arith.constant 32 : index
    %c256_30 = arith.constant 256 : index
    %23 = vector.load %arg18[%c32_29, %c256_30] : memref<64x1280xf32, #tpu.memory_space<vmem>>, vector<32x128xf32>
    tpu.vector_store %arg18[%c32_29, %c256_30], %22 {strides = array<i32>} : memref<64x1280xf32, #tpu.memory_space<vmem>>, vector<32x128xf32>,
    %c3 = arith.constant 3 : index
    %c0_31 = arith.constant 0 : index
    %24 = tpu.strided_load %arg14[%c3, %c0_31] {strides = array<i32: 2, 1>} : memref<144x128xf32, #tpu.memory_space<vmem>>, vector<32x128xf32>
    %c0_32 = arith.constant 0 : index
    %c384 = arith.constant 384 : index
    %25 = vector.load %arg18[%c0_32, %c384] : memref<64x1280xf32, #tpu.memory_space<vmem>>, vector<32x128xf32>
    tpu.vector_store %arg18[%c0_32, %c384], %24 {strides = array<i32>} : memref<64x1280xf32, #tpu.memory_space<vmem>>, vector<32x128xf32>,
    %c75 = arith.constant 75 : index
    %c0_33 = arith.constant 0 : index
    %26 = tpu.strided_load %arg14[%c75, %c0_33] {strides = array<i32: 2, 1>} : memref<144x128xf32, #tpu.memory_space<vmem>>, vector<32x128xf32>
    %c32_34 = arith.constant 32 : index
    %c384_35 = arith.constant 384 : index
    %27 = vector.load %arg18[%c32_34, %c384_35] : memref<64x1280xf32, #tpu.memory_space<vmem>>, vector<32x128xf32>
    tpu.vector_store %arg18[%c32_34, %c384_35], %26 {strides = array<i32>} : memref<64x1280xf32, #tpu.memory_space<vmem>>, vector<32x128xf32>,
    %c4 = arith.constant 4 : index
    %c0_36 = arith.constant 0 : index
    %28 = tpu.strided_load %arg14[%c4, %c0_36] {strides = array<i32: 2, 1>} : memref<144x128xf32, #tpu.memory_space<vmem>>, vector<32x128xf32>
    %c0_37 = arith.constant 0 : index
    %c512 = arith.constant 512 : index
    %29 = vector.load %arg18[%c0_37, %c512] : memref<64x1280xf32, #tpu.memory_space<vmem>>, vector<32x128xf32>
    tpu.vector_store %arg18[%c0_37, %c512], %28 {strides = array<i32>} : memref<64x1280xf32, #tpu.memory_space<vmem>>, vector<32x128xf32>,
    %c76 = arith.constant 76 : index
    %c0_38 = arith.constant 0 : index
    %30 = tpu.strided_load %arg14[%c76, %c0_38] {strides = array<i32: 2, 1>} : memref<144x128xf32, #tpu.memory_space<vmem>>, vector<32x128xf32>
    %c32_39 = arith.constant 32 : index
    %c512_40 = arith.constant 512 : index
    %31 = vector.load %arg18[%c32_39, %c512_40] : memref<64x1280xf32, #tpu.memory_space<vmem>>, vector<32x128xf32>
    tpu.vector_store %arg18[%c32_39, %c512_40], %30 {strides = array<i32>} : memref<64x1280xf32, #tpu.memory_space<vmem>>, vector<32x128xf32>,
    %c5 = arith.constant 5 : index
    %c0_41 = arith.constant 0 : index
    %32 = tpu.strided_load %arg14[%c5, %c0_41] {strides = array<i32: 2, 1>} : memref<144x128xf32, #tpu.memory_space<vmem>>, vector<32x128xf32>
    %c0_42 = arith.constant 0 : index
    %c640 = arith.constant 640 : index
    %33 = vector.load %arg18[%c0_42, %c640] : memref<64x1280xf32, #tpu.memory_space<vmem>>, vector<32x128xf32>
    tpu.vector_store %arg18[%c0_42, %c640], %32 {strides = array<i32>} : memref<64x1280xf32, #tpu.memory_space<vmem>>, vector<32x128xf32>,
    %c77 = arith.constant 77 : index
    %c0_43 = arith.constant 0 : index
    %34 = tpu.strided_load %arg14[%c77, %c0_43] {strides = array<i32: 2, 1>} : memref<144x128xf32, #tpu.memory_space<vmem>>, vector<32x128xf32>
    %c32_44 = arith.constant 32 : index
    %c640_45 = arith.constant 640 : index
    %35 = vector.load %arg18[%c32_44, %c640_45] : memref<64x1280xf32, #tpu.memory_space<vmem>>, vector<32x128xf32>
    tpu.vector_store %arg18[%c32_44, %c640_45], %34 {strides = array<i32>} : memref<64x1280xf32, #tpu.memory_space<vmem>>, vector<32x128xf32>,
    %c6_46 = arith.constant 6 : index
    %c0_47 = arith.constant 0 : index
    %36 = tpu.strided_load %arg14[%c6_46, %c0_47] {strides = array<i32: 2, 1>} : memref<144x128xf32, #tpu.memory_space<vmem>>, vector<32x128xf32>
    %c0_48 = arith.constant 0 : index
    %c768 = arith.constant 768 : index
    %37 = vector.load %arg18[%c0_48, %c768] : memref<64x1280xf32, #tpu.memory_space<vmem>>, vector<32x128xf32>
    tpu.vector_store %arg18[%c0_48, %c768], %36 {strides = array<i32>} : memref<64x1280xf32, #tpu.memory_space<vmem>>, vector<32x128xf32>,
    %c78_49 = arith.constant 78 : index
    %c0_50 = arith.constant 0 : index
    %38 = tpu.strided_load %arg14[%c78_49, %c0_50] {strides = array<i32: 2, 1>} : memref<144x128xf32, #tpu.memory_space<vmem>>, vector<32x128xf32>
    %c32_51 = arith.constant 32 : index
    %c768_52 = arith.constant 768 : index
    %39 = vector.load %arg18[%c32_51, %c768_52] : memref<64x1280xf32, #tpu.memory_space<vmem>>, vector<32x128xf32>
    tpu.vector_store %arg18[%c32_51, %c768_52], %38 {strides = array<i32>} : memref<64x1280xf32, #tpu.memory_space<vmem>>, vector<32x128xf32>,
    %c7 = arith.constant 7 : index
    %c0_53 = arith.constant 0 : index
    %40 = tpu.strided_load %arg14[%c7, %c0_53] {strides = array<i32: 2, 1>} : memref<144x128xf32, #tpu.memory_space<vmem>>, vector<32x128xf32>
    %c0_54 = arith.constant 0 : index
    %c896 = arith.constant 896 : index
    %41 = vector.load %arg18[%c0_54, %c896] : memref<64x1280xf32, #tpu.memory_space<vmem>>, vector<32x128xf32>
    tpu.vector_store %arg18[%c0_54, %c896], %40 {strides = array<i32>} : memref<64x1280xf32, #tpu.memory_space<vmem>>, vector<32x128xf32>,
    %c79 = arith.constant 79 : index
    %c0_55 = arith.constant 0 : index
    %42 = tpu.strided_load %arg14[%c79, %c0_55] {strides = array<i32: 2, 1>} : memref<144x128xf32, #tpu.memory_space<vmem>>, vector<32x128xf32>
    %c32_56 = arith.constant 32 : index
    %c896_57 = arith.constant 896 : index
    %43 = vector.load %arg18[%c32_56, %c896_57] : memref<64x1280xf32, #tpu.memory_space<vmem>>, vector<32x128xf32>
    tpu.vector_store %arg18[%c32_56, %c896_57], %42 {strides = array<i32>} : memref<64x1280xf32, #tpu.memory_space<vmem>>, vector<32x128xf32>,
    %c8 = arith.constant 8 : index
    %c0_58 = arith.constant 0 : index
    %44 = tpu.strided_load %arg14[%c8, %c0_58] {strides = array<i32: 2, 1>} : memref<144x128xf32, #tpu.memory_space<vmem>>, vector<32x128xf32>
    %c0_59 = arith.constant 0 : index
    %c1024 = arith.constant 1024 : index
    %45 = vector.load %arg18[%c0_59, %c1024] : memref<64x1280xf32, #tpu.memory_space<vmem>>, vector<32x128xf32>
    tpu.vector_store %arg18[%c0_59, %c1024], %44 {strides = array<i32>} : memref<64x1280xf32, #tpu.memory_space<vmem>>, vector<32x128xf32>,
    %c80 = arith.constant 80 : index
    %c0_60 = arith.constant 0 : index
    %46 = tpu.strided_load %arg14[%c80, %c0_60] {strides = array<i32: 2, 1>} : memref<144x128xf32, #tpu.memory_space<vmem>>, vector<32x128xf32>
    %c32_61 = arith.constant 32 : index
    %c1024_62 = arith.constant 1024 : index
    %47 = vector.load %arg18[%c32_61, %c1024_62] : memref<64x1280xf32, #tpu.memory_space<vmem>>, vector<32x128xf32>
    tpu.vector_store %arg18[%c32_61, %c1024_62], %46 {strides = array<i32>} : memref<64x1280xf32, #tpu.memory_space<vmem>>, vector<32x128xf32>,
    %c9 = arith.constant 9 : index
    %c0_63 = arith.constant 0 : index
    %48 = tpu.strided_load %arg14[%c9, %c0_63] {strides = array<i32: 2, 1>} : memref<144x128xf32, #tpu.memory_space<vmem>>, vector<32x128xf32>
    %c0_64 = arith.constant 0 : index
    %c1152 = arith.constant 1152 : index
    %49 = vector.load %arg18[%c0_64, %c1152] : memref<64x1280xf32, #tpu.memory_space<vmem>>, vector<32x128xf32>
    tpu.vector_store %arg18[%c0_64, %c1152], %48 {strides = array<i32>} : memref<64x1280xf32, #tpu.memory_space<vmem>>, vector<32x128xf32>,
    %c81 = arith.constant 81 : index
    %c0_65 = arith.constant 0 : index
    %50 = tpu.strided_load %arg14[%c81, %c0_65] {strides = array<i32: 2, 1>} : memref<144x128xf32, #tpu.memory_space<vmem>>, vector<32x128xf32>
    %c32_66 = arith.constant 32 : index
    %c1152_67 = arith.constant 1152 : index
    %51 = vector.load %arg18[%c32_66, %c1152_67] : memref<64x1280xf32, #tpu.memory_space<vmem>>, vector<32x128xf32>
    tpu.vector_store %arg18[%c32_66, %c1152_67], %50 {strides = array<i32>} : memref<64x1280xf32, #tpu.memory_space<vmem>>, vector<32x128xf32>,
    %c0_68 = arith.constant 0 : index
    %c0_69 = arith.constant 0 : index
    %52 = vector.load %arg18[%c0_68, %c0_69] : memref<64x1280xf32, #tpu.memory_space<vmem>>, vector<64x1280xf32>
    %c0_70 = arith.constant 0 : index
    %c0_71 = arith.constant 0 : index
    %53 = vector.load %arg1[%c0_70, %c0_71] : memref<1280x128xf32, #tpu.memory_space<vmem>>, vector<1280x128xf32>
    %cst_72 = arith.constant dense<0.000000e+00> : vector<64x128xf32>
    %54 = tpu.matmul %52, %53, %cst_72 {dimension_numbers = #tpu.dot_dimension_numbers<[1], [0], [0], [1], [0, 0, 1, 1], [], []>} : vector<64x1280xf32>, vector<1280x128xf32>, vector<64x128xf32> -> vector<64x128xf32>
    %c0_73 = arith.constant 0 : index
    %c0_74 = arith.constant 0 : index
    %55 = vector.load %arg2[%c0_73, %c0_74] : memref<1x128xf32, #tpu.memory_space<vmem>>, vector<1x128xf32>
    %56 = vector.broadcast %55 : vector<1x128xf32> to vector<64x128xf32>
    %57 = arith.addf %54, %56 : vector<64x128xf32>
    %cst_75 = arith.constant 2.000000e-01 : f32
    %58 = vector.broadcast %cst_75 : f32 to vector<64x128xf32>
    %59 = arith.mulf %58, %57 : vector<64x128xf32>
    %60 = arith.maximumf %57, %59 : vector<64x128xf32>
    %61 = vector.extract_strided_slice %60 {offsets = [0, 0], sizes = [32, 128], strides = [1, 1]} : vector<64x128xf32> to vector<32x128xf32>
    %c4_76 = arith.constant 4 : index
    %c0_77 = arith.constant 0 : index
    %62 = vector.load %arg15[%c4_76, %c0_77] : memref<80x128xf32, #tpu.memory_space<vmem>>, vector<32x128xf32>
    tpu.vector_store %arg15[%c4_76, %c0_77], %61 {strides = array<i32>} : memref<80x128xf32, #tpu.memory_space<vmem>>, vector<32x128xf32>,
    %63 = vector.extract_strided_slice %60 {offsets = [32, 0], sizes = [32, 128], strides = [1, 1]} : vector<64x128xf32> to vector<32x128xf32>
    %c44 = arith.constant 44 : index
    %c0_78 = arith.constant 0 : index
    %64 = vector.load %arg15[%c44, %c0_78] : memref<80x128xf32, #tpu.memory_space<vmem>>, vector<32x128xf32>
    tpu.vector_store %arg15[%c44, %c0_78], %63 {strides = array<i32>} : memref<80x128xf32, #tpu.memory_space<vmem>>, vector<32x128xf32>,
    %c0_79 = arith.constant 0 : index
    %c0_80 = arith.constant 0 : index
    %65 = tpu.strided_load %arg15[%c0_79, %c0_80] {strides = array<i32: 2, 1>} : memref<80x128xf32, #tpu.memory_space<vmem>>, vector<16x128xf32>
    %c0_81 = arith.constant 0 : index
    %c0_82 = arith.constant 0 : index
    %66 = vector.load %arg18[%c0_81, %c0_82] : memref<64x1280xf32, #tpu.memory_space<vmem>>, vector<16x128xf32>
    tpu.vector_store %arg18[%c0_81, %c0_82], %65 {strides = array<i32>} : memref<64x1280xf32, #tpu.memory_space<vmem>>, vector<16x128xf32>,
    %c40 = arith.constant 40 : index
    %c0_83 = arith.constant 0 : index
    %67 = tpu.strided_load %arg15[%c40, %c0_83] {strides = array<i32: 2, 1>} : memref<80x128xf32, #tpu.memory_space<vmem>>, vector<16x128xf32>
    %c16 = arith.constant 16 : index
    %c0_84 = arith.constant 0 : index
    %68 = vector.load %arg18[%c16, %c0_84] : memref<64x1280xf32, #tpu.memory_space<vmem>>, vector<16x128xf32>
    tpu.vector_store %arg18[%c16, %c0_84], %67 {strides = array<i32>} : memref<64x1280xf32, #tpu.memory_space<vmem>>, vector<16x128xf32>,
    %c1_85 = arith.constant 1 : index
    %c0_86 = arith.constant 0 : index
    %69 = tpu.strided_load %arg15[%c1_85, %c0_86] {strides = array<i32: 2, 1>} : memref<80x128xf32, #tpu.memory_space<vmem>>, vector<16x128xf32>
    %c0_87 = arith.constant 0 : index
    %c128_88 = arith.constant 128 : index
    %70 = vector.load %arg18[%c0_87, %c128_88] : memref<64x1280xf32, #tpu.memory_space<vmem>>, vector<16x128xf32>
    tpu.vector_store %arg18[%c0_87, %c128_88], %69 {strides = array<i32>} : memref<64x1280xf32, #tpu.memory_space<vmem>>, vector<16x128xf32>,
    %c41 = arith.constant 41 : index
    %c0_89 = arith.constant 0 : index
    %71 = tpu.strided_load %arg15[%c41, %c0_89] {strides = array<i32: 2, 1>} : memref<80x128xf32, #tpu.memory_space<vmem>>, vector<16x128xf32>
    %c16_90 = arith.constant 16 : index
    %c128_91 = arith.constant 128 : index
    %72 = vector.load %arg18[%c16_90, %c128_91] : memref<64x1280xf32, #tpu.memory_space<vmem>>, vector<16x128xf32>
    tpu.vector_store %arg18[%c16_90, %c128_91], %71 {strides = array<i32>} : memref<64x1280xf32, #tpu.memory_space<vmem>>, vector<16x128xf32>,
    %c2_92 = arith.constant 2 : index
    %c0_93 = arith.constant 0 : index
    %73 = tpu.strided_load %arg15[%c2_92, %c0_93] {strides = array<i32: 2, 1>} : memref<80x128xf32, #tpu.memory_space<vmem>>, vector<16x128xf32>
    %c0_94 = arith.constant 0 : index
    %c256_95 = arith.constant 256 : index
    %74 = vector.load %arg18[%c0_94, %c256_95] : memref<64x1280xf32, #tpu.memory_space<vmem>>, vector<16x128xf32>
    tpu.vector_store %arg18[%c0_94, %c256_95], %73 {strides = array<i32>} : memref<64x1280xf32, #tpu.memory_space<vmem>>, vector<16x128xf32>,
    %c42 = arith.constant 42 : index
    %c0_96 = arith.constant 0 : index
    %75 = tpu.strided_load %arg15[%c42, %c0_96] {strides = array<i32: 2, 1>} : memref<80x128xf32, #tpu.memory_space<vmem>>, vector<16x128xf32>
    %c16_97 = arith.constant 16 : index
    %c256_98 = arith.constant 256 : index
    %76 = vector.load %arg18[%c16_97, %c256_98] : memref<64x1280xf32, #tpu.memory_space<vmem>>, vector<16x128xf32>
    tpu.vector_store %arg18[%c16_97, %c256_98], %75 {strides = array<i32>} : memref<64x1280xf32, #tpu.memory_space<vmem>>, vector<16x128xf32>,
    %c3_99 = arith.constant 3 : index
    %c0_100 = arith.constant 0 : index
    %77 = tpu.strided_load %arg15[%c3_99, %c0_100] {strides = array<i32: 2, 1>} : memref<80x128xf32, #tpu.memory_space<vmem>>, vector<16x128xf32>
    %c0_101 = arith.constant 0 : index
    %c384_102 = arith.constant 384 : index
    %78 = vector.load %arg18[%c0_101, %c384_102] : memref<64x1280xf32, #tpu.memory_space<vmem>>, vector<16x128xf32>
    tpu.vector_store %arg18[%c0_101, %c384_102], %77 {strides = array<i32>} : memref<64x1280xf32, #tpu.memory_space<vmem>>, vector<16x128xf32>,
    %c43 = arith.constant 43 : index
    %c0_103 = arith.constant 0 : index
    %79 = tpu.strided_load %arg15[%c43, %c0_103] {strides = array<i32: 2, 1>} : memref<80x128xf32, #tpu.memory_space<vmem>>, vector<16x128xf32>
    %c16_104 = arith.constant 16 : index
    %c384_105 = arith.constant 384 : index
    %80 = vector.load %arg18[%c16_104, %c384_105] : memref<64x1280xf32, #tpu.memory_space<vmem>>, vector<16x128xf32>
    tpu.vector_store %arg18[%c16_104, %c384_105], %79 {strides = array<i32>} : memref<64x1280xf32, #tpu.memory_space<vmem>>, vector<16x128xf32>,
    %c4_106 = arith.constant 4 : index
    %c0_107 = arith.constant 0 : index
    %81 = tpu.strided_load %arg15[%c4_106, %c0_107] {strides = array<i32: 2, 1>} : memref<80x128xf32, #tpu.memory_space<vmem>>, vector<16x128xf32>
    %c0_108 = arith.constant 0 : index
    %c512_109 = arith.constant 512 : index
    %82 = vector.load %arg18[%c0_108, %c512_109] : memref<64x1280xf32, #tpu.memory_space<vmem>>, vector<16x128xf32>
    tpu.vector_store %arg18[%c0_108, %c512_109], %81 {strides = array<i32>} : memref<64x1280xf32, #tpu.memory_space<vmem>>, vector<16x128xf32>,
    %c44_110 = arith.constant 44 : index
    %c0_111 = arith.constant 0 : index
    %83 = tpu.strided_load %arg15[%c44_110, %c0_111] {strides = array<i32: 2, 1>} : memref<80x128xf32, #tpu.memory_space<vmem>>, vector<16x128xf32>
    %c16_112 = arith.constant 16 : index
    %c512_113 = arith.constant 512 : index
    %84 = vector.load %arg18[%c16_112, %c512_113] : memref<64x1280xf32, #tpu.memory_space<vmem>>, vector<16x128xf32>
    tpu.vector_store %arg18[%c16_112, %c512_113], %83 {strides = array<i32>} : memref<64x1280xf32, #tpu.memory_space<vmem>>, vector<16x128xf32>,
    %c5_114 = arith.constant 5 : index
    %c0_115 = arith.constant 0 : index
    %85 = tpu.strided_load %arg15[%c5_114, %c0_115] {strides = array<i32: 2, 1>} : memref<80x128xf32, #tpu.memory_space<vmem>>, vector<16x128xf32>
    %c0_116 = arith.constant 0 : index
    %c640_117 = arith.constant 640 : index
    %86 = vector.load %arg18[%c0_116, %c640_117] : memref<64x1280xf32, #tpu.memory_space<vmem>>, vector<16x128xf32>
    tpu.vector_store %arg18[%c0_116, %c640_117], %85 {strides = array<i32>} : memref<64x1280xf32, #tpu.memory_space<vmem>>, vector<16x128xf32>,
    %c45 = arith.constant 45 : index
    %c0_118 = arith.constant 0 : index
    %87 = tpu.strided_load %arg15[%c45, %c0_118] {strides = array<i32: 2, 1>} : memref<80x128xf32, #tpu.memory_space<vmem>>, vector<16x128xf32>
    %c16_119 = arith.constant 16 : index
    %c640_120 = arith.constant 640 : index
    %88 = vector.load %arg18[%c16_119, %c640_120] : memref<64x1280xf32, #tpu.memory_space<vmem>>, vector<16x128xf32>
    tpu.vector_store %arg18[%c16_119, %c640_120], %87 {strides = array<i32>} : memref<64x1280xf32, #tpu.memory_space<vmem>>, vector<16x128xf32>,
    %c6_121 = arith.constant 6 : index
    %c0_122 = arith.constant 0 : index
    %89 = tpu.strided_load %arg15[%c6_121, %c0_122] {strides = array<i32: 2, 1>} : memref<80x128xf32, #tpu.memory_space<vmem>>, vector<16x128xf32>
    %c0_123 = arith.constant 0 : index
    %c768_124 = arith.constant 768 : index
    %90 = vector.load %arg18[%c0_123, %c768_124] : memref<64x1280xf32, #tpu.memory_space<vmem>>, vector<16x128xf32>
    tpu.vector_store %arg18[%c0_123, %c768_124], %89 {strides = array<i32>} : memref<64x1280xf32, #tpu.memory_space<vmem>>, vector<16x128xf32>,
    %c46 = arith.constant 46 : index
    %c0_125 = arith.constant 0 : index
    %91 = tpu.strided_load %arg15[%c46, %c0_125] {strides = array<i32: 2, 1>} : memref<80x128xf32, #tpu.memory_space<vmem>>, vector<16x128xf32>
    %c16_126 = arith.constant 16 : index
    %c768_127 = arith.constant 768 : index
    %92 = vector.load %arg18[%c16_126, %c768_127] : memref<64x1280xf32, #tpu.memory_space<vmem>>, vector<16x128xf32>
    tpu.vector_store %arg18[%c16_126, %c768_127], %91 {strides = array<i32>} : memref<64x1280xf32, #tpu.memory_space<vmem>>, vector<16x128xf32>,
    %c7_128 = arith.constant 7 : index
    %c0_129 = arith.constant 0 : index
    %93 = tpu.strided_load %arg15[%c7_128, %c0_129] {strides = array<i32: 2, 1>} : memref<80x128xf32, #tpu.memory_space<vmem>>, vector<16x128xf32>
    %c0_130 = arith.constant 0 : index
    %c896_131 = arith.constant 896 : index
    %94 = vector.load %arg18[%c0_130, %c896_131] : memref<64x1280xf32, #tpu.memory_space<vmem>>, vector<16x128xf32>
    tpu.vector_store %arg18[%c0_130, %c896_131], %93 {strides = array<i32>} : memref<64x1280xf32, #tpu.memory_space<vmem>>, vector<16x128xf32>,
    %c47 = arith.constant 47 : index
    %c0_132 = arith.constant 0 : index
    %95 = tpu.strided_load %arg15[%c47, %c0_132] {strides = array<i32: 2, 1>} : memref<80x128xf32, #tpu.memory_space<vmem>>, vector<16x128xf32>
    %c16_133 = arith.constant 16 : index
    %c896_134 = arith.constant 896 : index
    %96 = vector.load %arg18[%c16_133, %c896_134] : memref<64x1280xf32, #tpu.memory_space<vmem>>, vector<16x128xf32>
    tpu.vector_store %arg18[%c16_133, %c896_134], %95 {strides = array<i32>} : memref<64x1280xf32, #tpu.memory_space<vmem>>, vector<16x128xf32>,
    %c8_135 = arith.constant 8 : index
    %c0_136 = arith.constant 0 : index
    %97 = tpu.strided_load %arg15[%c8_135, %c0_136] {strides = array<i32: 2, 1>} : memref<80x128xf32, #tpu.memory_space<vmem>>, vector<16x128xf32>
    %c0_137 = arith.constant 0 : index
    %c1024_138 = arith.constant 1024 : index
    %98 = vector.load %arg18[%c0_137, %c1024_138] : memref<64x1280xf32, #tpu.memory_space<vmem>>, vector<16x128xf32>
    tpu.vector_store %arg18[%c0_137, %c1024_138], %97 {strides = array<i32>} : memref<64x1280xf32, #tpu.memory_space<vmem>>, vector<16x128xf32>,
    %c48 = arith.constant 48 : index
    %c0_139 = arith.constant 0 : index
    %99 = tpu.strided_load %arg15[%c48, %c0_139] {strides = array<i32: 2, 1>} : memref<80x128xf32, #tpu.memory_space<vmem>>, vector<16x128xf32>
    %c16_140 = arith.constant 16 : index
    %c1024_141 = arith.constant 1024 : index
    %100 = vector.load %arg18[%c16_140, %c1024_141] : memref<64x1280xf32, #tpu.memory_space<vmem>>, vector<16x128xf32>
    tpu.vector_store %arg18[%c16_140, %c1024_141], %99 {strides = array<i32>} : memref<64x1280xf32, #tpu.memory_space<vmem>>, vector<16x128xf32>,
    %c9_142 = arith.constant 9 : index
    %c0_143 = arith.constant 0 : index
    %101 = tpu.strided_load %arg15[%c9_142, %c0_143] {strides = array<i32: 2, 1>} : memref<80x128xf32, #tpu.memory_space<vmem>>, vector<16x128xf32>
    %c0_144 = arith.constant 0 : index
    %c1152_145 = arith.constant 1152 : index
    %102 = vector.load %arg18[%c0_144, %c1152_145] : memref<64x1280xf32, #tpu.memory_space<vmem>>, vector<16x128xf32>
    tpu.vector_store %arg18[%c0_144, %c1152_145], %101 {strides = array<i32>} : memref<64x1280xf32, #tpu.memory_space<vmem>>, vector<16x128xf32>,
    %c49 = arith.constant 49 : index
    %c0_146 = arith.constant 0 : index
    %103 = tpu.strided_load %arg15[%c49, %c0_146] {strides = array<i32: 2, 1>} : memref<80x128xf32, #tpu.memory_space<vmem>>, vector<16x128xf32>
    %c16_147 = arith.constant 16 : index
    %c1152_148 = arith.constant 1152 : index
    %104 = vector.load %arg18[%c16_147, %c1152_148] : memref<64x1280xf32, #tpu.memory_space<vmem>>, vector<16x128xf32>
    tpu.vector_store %arg18[%c16_147, %c1152_148], %103 {strides = array<i32>} : memref<64x1280xf32, #tpu.memory_space<vmem>>, vector<16x128xf32>,
    %c0_149 = arith.constant 0 : index
    %c0_150 = arith.constant 0 : index
    %105 = vector.load %arg18[%c0_149, %c0_150] : memref<64x1280xf32, #tpu.memory_space<vmem>>, vector<32x1280xf32>
    %c0_151 = arith.constant 0 : index
    %c0_152 = arith.constant 0 : index
    %106 = vector.load %arg3[%c0_151, %c0_152] : memref<1280x128xf32, #tpu.memory_space<vmem>>, vector<1280x128xf32>
    %cst_153 = arith.constant dense<0.000000e+00> : vector<32x128xf32>
    %107 = tpu.matmul %105, %106, %cst_153 {dimension_numbers = #tpu.dot_dimension_numbers<[1], [0], [0], [1], [0, 0, 1, 1], [], []>} : vector<32x1280xf32>, vector<1280x128xf32>, vector<32x128xf32> -> vector<32x128xf32>
    %c0_154 = arith.constant 0 : index
    %c0_155 = arith.constant 0 : index
    %108 = vector.load %arg4[%c0_154, %c0_155] : memref<1x128xf32, #tpu.memory_space<vmem>>, vector<1x128xf32>
    %109 = vector.broadcast %108 : vector<1x128xf32> to vector<32x128xf32>
    %110 = arith.addf %107, %109 : vector<32x128xf32>
    %cst_156 = arith.constant 2.000000e-01 : f32
    %111 = vector.broadcast %cst_156 : f32 to vector<32x128xf32>
    %112 = arith.mulf %111, %110 : vector<32x128xf32>
    %113 = arith.maximumf %110, %112 : vector<32x128xf32>
    %114 = vector.extract_strided_slice %113 {offsets = [0, 0], sizes = [16, 128], strides = [1, 1]} : vector<32x128xf32> to vector<16x128xf32>
    %c4_157 = arith.constant 4 : index
    %c0_158 = arith.constant 0 : index
    %115 = vector.load %arg16[%c4_157, %c0_158] : memref<48x128xf32, #tpu.memory_space<vmem>>, vector<16x128xf32>
    tpu.vector_store %arg16[%c4_157, %c0_158], %114 {strides = array<i32>} : memref<48x128xf32, #tpu.memory_space<vmem>>, vector<16x128xf32>,
    %116 = vector.extract_strided_slice %113 {offsets = [16, 0], sizes = [16, 128], strides = [1, 1]} : vector<32x128xf32> to vector<16x128xf32>
    %c28 = arith.constant 28 : index
    %c0_159 = arith.constant 0 : index
    %117 = vector.load %arg16[%c28, %c0_159] : memref<48x128xf32, #tpu.memory_space<vmem>>, vector<16x128xf32>
    tpu.vector_store %arg16[%c28, %c0_159], %116 {strides = array<i32>} : memref<48x128xf32, #tpu.memory_space<vmem>>, vector<16x128xf32>,
    %c0_160 = arith.constant 0 : index
    %c0_161 = arith.constant 0 : index
    %118 = tpu.strided_load %arg16[%c0_160, %c0_161] {strides = array<i32: 2, 1>} : memref<48x128xf32, #tpu.memory_space<vmem>>, vector<8x128xf32>
    %c0_162 = arith.constant 0 : index
    %c0_163 = arith.constant 0 : index
    %119 = vector.load %arg18[%c0_162, %c0_163] : memref<64x1280xf32, #tpu.memory_space<vmem>>, vector<8x128xf32>
    tpu.vector_store %arg18[%c0_162, %c0_163], %118 {strides = array<i32>} : memref<64x1280xf32, #tpu.memory_space<vmem>>, vector<8x128xf32>,
    %c24 = arith.constant 24 : index
    %c0_164 = arith.constant 0 : index
    %120 = tpu.strided_load %arg16[%c24, %c0_164] {strides = array<i32: 2, 1>} : memref<48x128xf32, #tpu.memory_space<vmem>>, vector<8x128xf32>
    %c8_165 = arith.constant 8 : index
    %c0_166 = arith.constant 0 : index
    %121 = vector.load %arg18[%c8_165, %c0_166] : memref<64x1280xf32, #tpu.memory_space<vmem>>, vector<8x128xf32>
    tpu.vector_store %arg18[%c8_165, %c0_166], %120 {strides = array<i32>} : memref<64x1280xf32, #tpu.memory_space<vmem>>, vector<8x128xf32>,
    %c1_167 = arith.constant 1 : index
    %c0_168 = arith.constant 0 : index
    %122 = tpu.strided_load %arg16[%c1_167, %c0_168] {strides = array<i32: 2, 1>} : memref<48x128xf32, #tpu.memory_space<vmem>>, vector<8x128xf32>
    %c0_169 = arith.constant 0 : index
    %c128_170 = arith.constant 128 : index
    %123 = vector.load %arg18[%c0_169, %c128_170] : memref<64x1280xf32, #tpu.memory_space<vmem>>, vector<8x128xf32>
    tpu.vector_store %arg18[%c0_169, %c128_170], %122 {strides = array<i32>} : memref<64x1280xf32, #tpu.memory_space<vmem>>, vector<8x128xf32>,
    %c25 = arith.constant 25 : index
    %c0_171 = arith.constant 0 : index
    %124 = tpu.strided_load %arg16[%c25, %c0_171] {strides = array<i32: 2, 1>} : memref<48x128xf32, #tpu.memory_space<vmem>>, vector<8x128xf32>
    %c8_172 = arith.constant 8 : index
    %c128_173 = arith.constant 128 : index
    %125 = vector.load %arg18[%c8_172, %c128_173] : memref<64x1280xf32, #tpu.memory_space<vmem>>, vector<8x128xf32>
    tpu.vector_store %arg18[%c8_172, %c128_173], %124 {strides = array<i32>} : memref<64x1280xf32, #tpu.memory_space<vmem>>, vector<8x128xf32>,
    %c2_174 = arith.constant 2 : index
    %c0_175 = arith.constant 0 : index
    %126 = tpu.strided_load %arg16[%c2_174, %c0_175] {strides = array<i32: 2, 1>} : memref<48x128xf32, #tpu.memory_space<vmem>>, vector<8x128xf32>
    %c0_176 = arith.constant 0 : index
    %c256_177 = arith.constant 256 : index
    %127 = vector.load %arg18[%c0_176, %c256_177] : memref<64x1280xf32, #tpu.memory_space<vmem>>, vector<8x128xf32>
    tpu.vector_store %arg18[%c0_176, %c256_177], %126 {strides = array<i32>} : memref<64x1280xf32, #tpu.memory_space<vmem>>, vector<8x128xf32>,
    %c26 = arith.constant 26 : index
    %c0_178 = arith.constant 0 : index
    %128 = tpu.strided_load %arg16[%c26, %c0_178] {strides = array<i32: 2, 1>} : memref<48x128xf32, #tpu.memory_space<vmem>>, vector<8x128xf32>
    %c8_179 = arith.constant 8 : index
    %c256_180 = arith.constant 256 : index
    %129 = vector.load %arg18[%c8_179, %c256_180] : memref<64x1280xf32, #tpu.memory_space<vmem>>, vector<8x128xf32>
    tpu.vector_store %arg18[%c8_179, %c256_180], %128 {strides = array<i32>} : memref<64x1280xf32, #tpu.memory_space<vmem>>, vector<8x128xf32>,
    %c3_181 = arith.constant 3 : index
    %c0_182 = arith.constant 0 : index
    %130 = tpu.strided_load %arg16[%c3_181, %c0_182] {strides = array<i32: 2, 1>} : memref<48x128xf32, #tpu.memory_space<vmem>>, vector<8x128xf32>
    %c0_183 = arith.constant 0 : index
    %c384_184 = arith.constant 384 : index
    %131 = vector.load %arg18[%c0_183, %c384_184] : memref<64x1280xf32, #tpu.memory_space<vmem>>, vector<8x128xf32>
    tpu.vector_store %arg18[%c0_183, %c384_184], %130 {strides = array<i32>} : memref<64x1280xf32, #tpu.memory_space<vmem>>, vector<8x128xf32>,
    %c27 = arith.constant 27 : index
    %c0_185 = arith.constant 0 : index
    %132 = tpu.strided_load %arg16[%c27, %c0_185] {strides = array<i32: 2, 1>} : memref<48x128xf32, #tpu.memory_space<vmem>>, vector<8x128xf32>
    %c8_186 = arith.constant 8 : index
    %c384_187 = arith.constant 384 : index
    %133 = vector.load %arg18[%c8_186, %c384_187] : memref<64x1280xf32, #tpu.memory_space<vmem>>, vector<8x128xf32>
    tpu.vector_store %arg18[%c8_186, %c384_187], %132 {strides = array<i32>} : memref<64x1280xf32, #tpu.memory_space<vmem>>, vector<8x128xf32>,
    %c4_188 = arith.constant 4 : index
    %c0_189 = arith.constant 0 : index
    %134 = tpu.strided_load %arg16[%c4_188, %c0_189] {strides = array<i32: 2, 1>} : memref<48x128xf32, #tpu.memory_space<vmem>>, vector<8x128xf32>
    %c0_190 = arith.constant 0 : index
    %c512_191 = arith.constant 512 : index
    %135 = vector.load %arg18[%c0_190, %c512_191] : memref<64x1280xf32, #tpu.memory_space<vmem>>, vector<8x128xf32>
    tpu.vector_store %arg18[%c0_190, %c512_191], %134 {strides = array<i32>} : memref<64x1280xf32, #tpu.memory_space<vmem>>, vector<8x128xf32>,
    %c28_192 = arith.constant 28 : index
    %c0_193 = arith.constant 0 : index
    %136 = tpu.strided_load %arg16[%c28_192, %c0_193] {strides = array<i32: 2, 1>} : memref<48x128xf32, #tpu.memory_space<vmem>>, vector<8x128xf32>
    %c8_194 = arith.constant 8 : index
    %c512_195 = arith.constant 512 : index
    %137 = vector.load %arg18[%c8_194, %c512_195] : memref<64x1280xf32, #tpu.memory_space<vmem>>, vector<8x128xf32>
    tpu.vector_store %arg18[%c8_194, %c512_195], %136 {strides = array<i32>} : memref<64x1280xf32, #tpu.memory_space<vmem>>, vector<8x128xf32>,
    %c5_196 = arith.constant 5 : index
    %c0_197 = arith.constant 0 : index
    %138 = tpu.strided_load %arg16[%c5_196, %c0_197] {strides = array<i32: 2, 1>} : memref<48x128xf32, #tpu.memory_space<vmem>>, vector<8x128xf32>
    %c0_198 = arith.constant 0 : index
    %c640_199 = arith.constant 640 : index
    %139 = vector.load %arg18[%c0_198, %c640_199] : memref<64x1280xf32, #tpu.memory_space<vmem>>, vector<8x128xf32>
    tpu.vector_store %arg18[%c0_198, %c640_199], %138 {strides = array<i32>} : memref<64x1280xf32, #tpu.memory_space<vmem>>, vector<8x128xf32>,
    %c29 = arith.constant 29 : index
    %c0_200 = arith.constant 0 : index
    %140 = tpu.strided_load %arg16[%c29, %c0_200] {strides = array<i32: 2, 1>} : memref<48x128xf32, #tpu.memory_space<vmem>>, vector<8x128xf32>
    %c8_201 = arith.constant 8 : index
    %c640_202 = arith.constant 640 : index
    %141 = vector.load %arg18[%c8_201, %c640_202] : memref<64x1280xf32, #tpu.memory_space<vmem>>, vector<8x128xf32>
    tpu.vector_store %arg18[%c8_201, %c640_202], %140 {strides = array<i32>} : memref<64x1280xf32, #tpu.memory_space<vmem>>, vector<8x128xf32>,
    %c6_203 = arith.constant 6 : index
    %c0_204 = arith.constant 0 : index
    %142 = tpu.strided_load %arg16[%c6_203, %c0_204] {strides = array<i32: 2, 1>} : memref<48x128xf32, #tpu.memory_space<vmem>>, vector<8x128xf32>
    %c0_205 = arith.constant 0 : index
    %c768_206 = arith.constant 768 : index
    %143 = vector.load %arg18[%c0_205, %c768_206] : memref<64x1280xf32, #tpu.memory_space<vmem>>, vector<8x128xf32>
    tpu.vector_store %arg18[%c0_205, %c768_206], %142 {strides = array<i32>} : memref<64x1280xf32, #tpu.memory_space<vmem>>, vector<8x128xf32>,
    %c30 = arith.constant 30 : index
    %c0_207 = arith.constant 0 : index
    %144 = tpu.strided_load %arg16[%c30, %c0_207] {strides = array<i32: 2, 1>} : memref<48x128xf32, #tpu.memory_space<vmem>>, vector<8x128xf32>
    %c8_208 = arith.constant 8 : index
    %c768_209 = arith.constant 768 : index
    %145 = vector.load %arg18[%c8_208, %c768_209] : memref<64x1280xf32, #tpu.memory_space<vmem>>, vector<8x128xf32>
    tpu.vector_store %arg18[%c8_208, %c768_209], %144 {strides = array<i32>} : memref<64x1280xf32, #tpu.memory_space<vmem>>, vector<8x128xf32>,
    %c7_210 = arith.constant 7 : index
    %c0_211 = arith.constant 0 : index
    %146 = tpu.strided_load %arg16[%c7_210, %c0_211] {strides = array<i32: 2, 1>} : memref<48x128xf32, #tpu.memory_space<vmem>>, vector<8x128xf32>
    %c0_212 = arith.constant 0 : index
    %c896_213 = arith.constant 896 : index
    %147 = vector.load %arg18[%c0_212, %c896_213] : memref<64x1280xf32, #tpu.memory_space<vmem>>, vector<8x128xf32>
    tpu.vector_store %arg18[%c0_212, %c896_213], %146 {strides = array<i32>} : memref<64x1280xf32, #tpu.memory_space<vmem>>, vector<8x128xf32>,
    %c31 = arith.constant 31 : index
    %c0_214 = arith.constant 0 : index
    %148 = tpu.strided_load %arg16[%c31, %c0_214] {strides = array<i32: 2, 1>} : memref<48x128xf32, #tpu.memory_space<vmem>>, vector<8x128xf32>
    %c8_215 = arith.constant 8 : index
    %c896_216 = arith.constant 896 : index
    %149 = vector.load %arg18[%c8_215, %c896_216] : memref<64x1280xf32, #tpu.memory_space<vmem>>, vector<8x128xf32>
    tpu.vector_store %arg18[%c8_215, %c896_216], %148 {strides = array<i32>} : memref<64x1280xf32, #tpu.memory_space<vmem>>, vector<8x128xf32>,
    %c8_217 = arith.constant 8 : index
    %c0_218 = arith.constant 0 : index
    %150 = tpu.strided_load %arg16[%c8_217, %c0_218] {strides = array<i32: 2, 1>} : memref<48x128xf32, #tpu.memory_space<vmem>>, vector<8x128xf32>
    %c0_219 = arith.constant 0 : index
    %c1024_220 = arith.constant 1024 : index
    %151 = vector.load %arg18[%c0_219, %c1024_220] : memref<64x1280xf32, #tpu.memory_space<vmem>>, vector<8x128xf32>
    tpu.vector_store %arg18[%c0_219, %c1024_220], %150 {strides = array<i32>} : memref<64x1280xf32, #tpu.memory_space<vmem>>, vector<8x128xf32>,
    %c32_221 = arith.constant 32 : index
    %c0_222 = arith.constant 0 : index
    %152 = tpu.strided_load %arg16[%c32_221, %c0_222] {strides = array<i32: 2, 1>} : memref<48x128xf32, #tpu.memory_space<vmem>>, vector<8x128xf32>
    %c8_223 = arith.constant 8 : index
    %c1024_224 = arith.constant 1024 : index
    %153 = vector.load %arg18[%c8_223, %c1024_224] : memref<64x1280xf32, #tpu.memory_space<vmem>>, vector<8x128xf32>
    tpu.vector_store %arg18[%c8_223, %c1024_224], %152 {strides = array<i32>} : memref<64x1280xf32, #tpu.memory_space<vmem>>, vector<8x128xf32>,
    %c9_225 = arith.constant 9 : index
    %c0_226 = arith.constant 0 : index
    %154 = tpu.strided_load %arg16[%c9_225, %c0_226] {strides = array<i32: 2, 1>} : memref<48x128xf32, #tpu.memory_space<vmem>>, vector<8x128xf32>
    %c0_227 = arith.constant 0 : index
    %c1152_228 = arith.constant 1152 : index
    %155 = vector.load %arg18[%c0_227, %c1152_228] : memref<64x1280xf32, #tpu.memory_space<vmem>>, vector<8x128xf32>
    tpu.vector_store %arg18[%c0_227, %c1152_228], %154 {strides = array<i32>} : memref<64x1280xf32, #tpu.memory_space<vmem>>, vector<8x128xf32>,
    %c33 = arith.constant 33 : index
    %c0_229 = arith.constant 0 : index
    %156 = tpu.strided_load %arg16[%c33, %c0_229] {strides = array<i32: 2, 1>} : memref<48x128xf32, #tpu.memory_space<vmem>>, vector<8x128xf32>
    %c8_230 = arith.constant 8 : index
    %c1152_231 = arith.constant 1152 : index
    %157 = vector.load %arg18[%c8_230, %c1152_231] : memref<64x1280xf32, #tpu.memory_space<vmem>>, vector<8x128xf32>
    tpu.vector_store %arg18[%c8_230, %c1152_231], %156 {strides = array<i32>} : memref<64x1280xf32, #tpu.memory_space<vmem>>, vector<8x128xf32>,
    %c0_232 = arith.constant 0 : index
    %c0_233 = arith.constant 0 : index
    %158 = vector.load %arg18[%c0_232, %c0_233] : memref<64x1280xf32, #tpu.memory_space<vmem>>, vector<16x1280xf32>
    %c0_234 = arith.constant 0 : index
    %c0_235 = arith.constant 0 : index
    %159 = vector.load %arg5[%c0_234, %c0_235] : memref<1280x128xf32, #tpu.memory_space<vmem>>, vector<1280x128xf32>
    %cst_236 = arith.constant dense<0.000000e+00> : vector<16x128xf32>
    %160 = tpu.matmul %158, %159, %cst_236 {dimension_numbers = #tpu.dot_dimension_numbers<[1], [0], [0], [1], [0, 0, 1, 1], [], []>} : vector<16x1280xf32>, vector<1280x128xf32>, vector<16x128xf32> -> vector<16x128xf32>
    %c0_237 = arith.constant 0 : index
    %c0_238 = arith.constant 0 : index
    %161 = vector.load %arg6[%c0_237, %c0_238] : memref<1x128xf32, #tpu.memory_space<vmem>>, vector<1x128xf32>
    %162 = vector.broadcast %161 : vector<1x128xf32> to vector<16x128xf32>
    %163 = arith.addf %160, %162 : vector<16x128xf32>
    %cst_239 = arith.constant dense<0.000000e+00> : vector<128xf32>
    %164 = vector.multi_reduction <add>, %163, %cst_239 [0] : vector<16x128xf32> to vector<128xf32>
    %165 = vector.shape_cast %164 : vector<128xf32> to vector<1x128xf32>
    %cst_240 = arith.constant 1.600000e+01 : f32
    %166 = vector.broadcast %cst_240 : f32 to vector<1x128xf32>
    %167 = arith.divf %165, %166 : vector<1x128xf32>
    %168 = vector.broadcast %167 : vector<1x128xf32> to vector<16x128xf32>
    %169 = arith.subf %163, %168 : vector<16x128xf32>
    %170 = arith.mulf %169, %169 : vector<16x128xf32>
    %cst_241 = arith.constant dense<0.000000e+00> : vector<128xf32>
    %171 = vector.multi_reduction <add>, %170, %cst_241 [0] : vector<16x128xf32> to vector<128xf32>
    %172 = vector.shape_cast %171 : vector<128xf32> to vector<1x128xf32>
    %cst_242 = arith.constant 1.600000e+01 : f32
    %173 = vector.broadcast %cst_242 : f32 to vector<1x128xf32>
    %174 = arith.divf %172, %173 : vector<1x128xf32>
    %175 = vector.broadcast %167 : vector<1x128xf32> to vector<16x128xf32>
    %176 = arith.subf %163, %175 : vector<16x128xf32>
    %cst_243 = arith.constant 9.99999974E-6 : f32
    %177 = vector.broadcast %cst_243 : f32 to vector<1x128xf32>
    %178 = arith.addf %174, %177 : vector<1x128xf32>
    %179 = math.rsqrt %178 : vector<1x128xf32>
    %180 = vector.broadcast %179 : vector<1x128xf32> to vector<16x128xf32>
    %181 = arith.mulf %176, %180 : vector<16x128xf32>
    %c0_244 = arith.constant 0 : index
    %c0_245 = arith.constant 0 : index
    %182 = vector.load %arg7[%c0_244, %c0_245] : memref<1x128xf32, #tpu.memory_space<vmem>>, vector<1x128xf32>
    %183 = vector.broadcast %182 : vector<1x128xf32> to vector<16x128xf32>
    %184 = arith.mulf %181, %183 : vector<16x128xf32>
    %c0_246 = arith.constant 0 : index
    %c0_247 = arith.constant 0 : index
    %185 = vector.load %arg8[%c0_246, %c0_247] : memref<1x128xf32, #tpu.memory_space<vmem>>, vector<1x128xf32>
    %186 = vector.broadcast %185 : vector<1x128xf32> to vector<16x128xf32>
    %187 = arith.addf %184, %186 : vector<16x128xf32>
    %cst_248 = arith.constant 2.000000e-01 : f32
    %188 = vector.broadcast %cst_248 : f32 to vector<16x128xf32>
    %189 = arith.mulf %188, %187 : vector<16x128xf32>
    %190 = arith.maximumf %187, %189 : vector<16x128xf32>
    %191 = vector.extract_strided_slice %190 {offsets = [0, 0], sizes = [8, 128], strides = [1, 1]} : vector<16x128xf32> to vector<8x128xf32>
    %c4_249 = arith.constant 4 : index
    %c0_250 = arith.constant 0 : index
    %192 = vector.load %arg17[%c4_249, %c0_250] : memref<32x128xf32, #tpu.memory_space<vmem>>, vector<8x128xf32>
    tpu.vector_store %arg17[%c4_249, %c0_250], %191 {strides = array<i32>} : memref<32x128xf32, #tpu.memory_space<vmem>>, vector<8x128xf32>,
    %193 = vector.extract_strided_slice %190 {offsets = [8, 0], sizes = [8, 128], strides = [1, 1]} : vector<16x128xf32> to vector<8x128xf32>
    %c20 = arith.constant 20 : index
    %c0_251 = arith.constant 0 : index
    %194 = vector.load %arg17[%c20, %c0_251] : memref<32x128xf32, #tpu.memory_space<vmem>>, vector<8x128xf32>
    tpu.vector_store %arg17[%c20, %c0_251], %193 {strides = array<i32>} : memref<32x128xf32, #tpu.memory_space<vmem>>, vector<8x128xf32>,
    %c0_252 = arith.constant 0 : index
    %c0_253 = arith.constant 0 : index
    %195 = tpu.strided_load %arg17[%c0_252, %c0_253] {strides = array<i32: 2, 1>} : memref<32x128xf32, #tpu.memory_space<vmem>>, vector<4x128xf32>
    %c0_254 = arith.constant 0 : index
    %c0_255 = arith.constant 0 : index
    %196 = vector.load %arg18[%c0_254, %c0_255] : memref<64x1280xf32, #tpu.memory_space<vmem>>, vector<4x128xf32>
    tpu.vector_store %arg18[%c0_254, %c0_255], %195 {strides = array<i32>} : memref<64x1280xf32, #tpu.memory_space<vmem>>, vector<4x128xf32>,
    %c16_256 = arith.constant 16 : index
    %c0_257 = arith.constant 0 : index
    %197 = tpu.strided_load %arg17[%c16_256, %c0_257] {strides = array<i32: 2, 1>} : memref<32x128xf32, #tpu.memory_space<vmem>>, vector<4x128xf32>
    %c4_258 = arith.constant 4 : index
    %c0_259 = arith.constant 0 : index
    %198 = vector.load %arg18[%c4_258, %c0_259] : memref<64x1280xf32, #tpu.memory_space<vmem>>, vector<4x128xf32>
    tpu.vector_store %arg18[%c4_258, %c0_259], %197 {strides = array<i32>} : memref<64x1280xf32, #tpu.memory_space<vmem>>, vector<4x128xf32>,
    %c1_260 = arith.constant 1 : index
    %c0_261 = arith.constant 0 : index
    %199 = tpu.strided_load %arg17[%c1_260, %c0_261] {strides = array<i32: 2, 1>} : memref<32x128xf32, #tpu.memory_space<vmem>>, vector<4x128xf32>
    %c0_262 = arith.constant 0 : index
    %c128_263 = arith.constant 128 : index
    %200 = vector.load %arg18[%c0_262, %c128_263] : memref<64x1280xf32, #tpu.memory_space<vmem>>, vector<4x128xf32>
    tpu.vector_store %arg18[%c0_262, %c128_263], %199 {strides = array<i32>} : memref<64x1280xf32, #tpu.memory_space<vmem>>, vector<4x128xf32>,
    %c17 = arith.constant 17 : index
    %c0_264 = arith.constant 0 : index
    %201 = tpu.strided_load %arg17[%c17, %c0_264] {strides = array<i32: 2, 1>} : memref<32x128xf32, #tpu.memory_space<vmem>>, vector<4x128xf32>
    %c4_265 = arith.constant 4 : index
    %c128_266 = arith.constant 128 : index
    %202 = vector.load %arg18[%c4_265, %c128_266] : memref<64x1280xf32, #tpu.memory_space<vmem>>, vector<4x128xf32>
    tpu.vector_store %arg18[%c4_265, %c128_266], %201 {strides = array<i32>} : memref<64x1280xf32, #tpu.memory_space<vmem>>, vector<4x128xf32>,
    %c2_267 = arith.constant 2 : index
    %c0_268 = arith.constant 0 : index
    %203 = tpu.strided_load %arg17[%c2_267, %c0_268] {strides = array<i32: 2, 1>} : memref<32x128xf32, #tpu.memory_space<vmem>>, vector<4x128xf32>
    %c0_269 = arith.constant 0 : index
    %c256_270 = arith.constant 256 : index
    %204 = vector.load %arg18[%c0_269, %c256_270] : memref<64x1280xf32, #tpu.memory_space<vmem>>, vector<4x128xf32>
    tpu.vector_store %arg18[%c0_269, %c256_270], %203 {strides = array<i32>} : memref<64x1280xf32, #tpu.memory_space<vmem>>, vector<4x128xf32>,
    %c18 = arith.constant 18 : index
    %c0_271 = arith.constant 0 : index
    %205 = tpu.strided_load %arg17[%c18, %c0_271] {strides = array<i32: 2, 1>} : memref<32x128xf32, #tpu.memory_space<vmem>>, vector<4x128xf32>
    %c4_272 = arith.constant 4 : index
    %c256_273 = arith.constant 256 : index
    %206 = vector.load %arg18[%c4_272, %c256_273] : memref<64x1280xf32, #tpu.memory_space<vmem>>, vector<4x128xf32>
    tpu.vector_store %arg18[%c4_272, %c256_273], %205 {strides = array<i32>} : memref<64x1280xf32, #tpu.memory_space<vmem>>, vector<4x128xf32>,
    %c3_274 = arith.constant 3 : index
    %c0_275 = arith.constant 0 : index
    %207 = tpu.strided_load %arg17[%c3_274, %c0_275] {strides = array<i32: 2, 1>} : memref<32x128xf32, #tpu.memory_space<vmem>>, vector<4x128xf32>
    %c0_276 = arith.constant 0 : index
    %c384_277 = arith.constant 384 : index
    %208 = vector.load %arg18[%c0_276, %c384_277] : memref<64x1280xf32, #tpu.memory_space<vmem>>, vector<4x128xf32>
    tpu.vector_store %arg18[%c0_276, %c384_277], %207 {strides = array<i32>} : memref<64x1280xf32, #tpu.memory_space<vmem>>, vector<4x128xf32>,
    %c19 = arith.constant 19 : index
    %c0_278 = arith.constant 0 : index
    %209 = tpu.strided_load %arg17[%c19, %c0_278] {strides = array<i32: 2, 1>} : memref<32x128xf32, #tpu.memory_space<vmem>>, vector<4x128xf32>
    %c4_279 = arith.constant 4 : index
    %c384_280 = arith.constant 384 : index
    %210 = vector.load %arg18[%c4_279, %c384_280] : memref<64x1280xf32, #tpu.memory_space<vmem>>, vector<4x128xf32>
    tpu.vector_store %arg18[%c4_279, %c384_280], %209 {strides = array<i32>} : memref<64x1280xf32, #tpu.memory_space<vmem>>, vector<4x128xf32>,
    %c4_281 = arith.constant 4 : index
    %c0_282 = arith.constant 0 : index
    %211 = tpu.strided_load %arg17[%c4_281, %c0_282] {strides = array<i32: 2, 1>} : memref<32x128xf32, #tpu.memory_space<vmem>>, vector<4x128xf32>
    %c0_283 = arith.constant 0 : index
    %c512_284 = arith.constant 512 : index
    %212 = vector.load %arg18[%c0_283, %c512_284] : memref<64x1280xf32, #tpu.memory_space<vmem>>, vector<4x128xf32>
    tpu.vector_store %arg18[%c0_283, %c512_284], %211 {strides = array<i32>} : memref<64x1280xf32, #tpu.memory_space<vmem>>, vector<4x128xf32>,
    %c20_285 = arith.constant 20 : index
    %c0_286 = arith.constant 0 : index
    %213 = tpu.strided_load %arg17[%c20_285, %c0_286] {strides = array<i32: 2, 1>} : memref<32x128xf32, #tpu.memory_space<vmem>>, vector<4x128xf32>
    %c4_287 = arith.constant 4 : index
    %c512_288 = arith.constant 512 : index
    %214 = vector.load %arg18[%c4_287, %c512_288] : memref<64x1280xf32, #tpu.memory_space<vmem>>, vector<4x128xf32>
    tpu.vector_store %arg18[%c4_287, %c512_288], %213 {strides = array<i32>} : memref<64x1280xf32, #tpu.memory_space<vmem>>, vector<4x128xf32>,
    %c5_289 = arith.constant 5 : index
    %c0_290 = arith.constant 0 : index
    %215 = tpu.strided_load %arg17[%c5_289, %c0_290] {strides = array<i32: 2, 1>} : memref<32x128xf32, #tpu.memory_space<vmem>>, vector<4x128xf32>
    %c0_291 = arith.constant 0 : index
    %c640_292 = arith.constant 640 : index
    %216 = vector.load %arg18[%c0_291, %c640_292] : memref<64x1280xf32, #tpu.memory_space<vmem>>, vector<4x128xf32>
    tpu.vector_store %arg18[%c0_291, %c640_292], %215 {strides = array<i32>} : memref<64x1280xf32, #tpu.memory_space<vmem>>, vector<4x128xf32>,
    %c21 = arith.constant 21 : index
    %c0_293 = arith.constant 0 : index
    %217 = tpu.strided_load %arg17[%c21, %c0_293] {strides = array<i32: 2, 1>} : memref<32x128xf32, #tpu.memory_space<vmem>>, vector<4x128xf32>
    %c4_294 = arith.constant 4 : index
    %c640_295 = arith.constant 640 : index
    %218 = vector.load %arg18[%c4_294, %c640_295] : memref<64x1280xf32, #tpu.memory_space<vmem>>, vector<4x128xf32>
    tpu.vector_store %arg18[%c4_294, %c640_295], %217 {strides = array<i32>} : memref<64x1280xf32, #tpu.memory_space<vmem>>, vector<4x128xf32>,
    %c6_296 = arith.constant 6 : index
    %c0_297 = arith.constant 0 : index
    %219 = tpu.strided_load %arg17[%c6_296, %c0_297] {strides = array<i32: 2, 1>} : memref<32x128xf32, #tpu.memory_space<vmem>>, vector<4x128xf32>
    %c0_298 = arith.constant 0 : index
    %c768_299 = arith.constant 768 : index
    %220 = vector.load %arg18[%c0_298, %c768_299] : memref<64x1280xf32, #tpu.memory_space<vmem>>, vector<4x128xf32>
    tpu.vector_store %arg18[%c0_298, %c768_299], %219 {strides = array<i32>} : memref<64x1280xf32, #tpu.memory_space<vmem>>, vector<4x128xf32>,
    %c22 = arith.constant 22 : index
    %c0_300 = arith.constant 0 : index
    %221 = tpu.strided_load %arg17[%c22, %c0_300] {strides = array<i32: 2, 1>} : memref<32x128xf32, #tpu.memory_space<vmem>>, vector<4x128xf32>
    %c4_301 = arith.constant 4 : index
    %c768_302 = arith.constant 768 : index
    %222 = vector.load %arg18[%c4_301, %c768_302] : memref<64x1280xf32, #tpu.memory_space<vmem>>, vector<4x128xf32>
    tpu.vector_store %arg18[%c4_301, %c768_302], %221 {strides = array<i32>} : memref<64x1280xf32, #tpu.memory_space<vmem>>, vector<4x128xf32>,
    %c7_303 = arith.constant 7 : index
    %c0_304 = arith.constant 0 : index
    %223 = tpu.strided_load %arg17[%c7_303, %c0_304] {strides = array<i32: 2, 1>} : memref<32x128xf32, #tpu.memory_space<vmem>>, vector<4x128xf32>
    %c0_305 = arith.constant 0 : index
    %c896_306 = arith.constant 896 : index
    %224 = vector.load %arg18[%c0_305, %c896_306] : memref<64x1280xf32, #tpu.memory_space<vmem>>, vector<4x128xf32>
    tpu.vector_store %arg18[%c0_305, %c896_306], %223 {strides = array<i32>} : memref<64x1280xf32, #tpu.memory_space<vmem>>, vector<4x128xf32>,
    %c23 = arith.constant 23 : index
    %c0_307 = arith.constant 0 : index
    %225 = tpu.strided_load %arg17[%c23, %c0_307] {strides = array<i32: 2, 1>} : memref<32x128xf32, #tpu.memory_space<vmem>>, vector<4x128xf32>
    %c4_308 = arith.constant 4 : index
    %c896_309 = arith.constant 896 : index
    %226 = vector.load %arg18[%c4_308, %c896_309] : memref<64x1280xf32, #tpu.memory_space<vmem>>, vector<4x128xf32>
    tpu.vector_store %arg18[%c4_308, %c896_309], %225 {strides = array<i32>} : memref<64x1280xf32, #tpu.memory_space<vmem>>, vector<4x128xf32>,
    %c8_310 = arith.constant 8 : index
    %c0_311 = arith.constant 0 : index
    %227 = tpu.strided_load %arg17[%c8_310, %c0_311] {strides = array<i32: 2, 1>} : memref<32x128xf32, #tpu.memory_space<vmem>>, vector<4x128xf32>
    %c0_312 = arith.constant 0 : index
    %c1024_313 = arith.constant 1024 : index
    %228 = vector.load %arg18[%c0_312, %c1024_313] : memref<64x1280xf32, #tpu.memory_space<vmem>>, vector<4x128xf32>
    tpu.vector_store %arg18[%c0_312, %c1024_313], %227 {strides = array<i32>} : memref<64x1280xf32, #tpu.memory_space<vmem>>, vector<4x128xf32>,
    %c24_314 = arith.constant 24 : index
    %c0_315 = arith.constant 0 : index
    %229 = tpu.strided_load %arg17[%c24_314, %c0_315] {strides = array<i32: 2, 1>} : memref<32x128xf32, #tpu.memory_space<vmem>>, vector<4x128xf32>
    %c4_316 = arith.constant 4 : index
    %c1024_317 = arith.constant 1024 : index
    %230 = vector.load %arg18[%c4_316, %c1024_317] : memref<64x1280xf32, #tpu.memory_space<vmem>>, vector<4x128xf32>
    tpu.vector_store %arg18[%c4_316, %c1024_317], %229 {strides = array<i32>} : memref<64x1280xf32, #tpu.memory_space<vmem>>, vector<4x128xf32>,
    %c9_318 = arith.constant 9 : index
    %c0_319 = arith.constant 0 : index
    %231 = tpu.strided_load %arg17[%c9_318, %c0_319] {strides = array<i32: 2, 1>} : memref<32x128xf32, #tpu.memory_space<vmem>>, vector<4x128xf32>
    %c0_320 = arith.constant 0 : index
    %c1152_321 = arith.constant 1152 : index
    %232 = vector.load %arg18[%c0_320, %c1152_321] : memref<64x1280xf32, #tpu.memory_space<vmem>>, vector<4x128xf32>
    tpu.vector_store %arg18[%c0_320, %c1152_321], %231 {strides = array<i32>} : memref<64x1280xf32, #tpu.memory_space<vmem>>, vector<4x128xf32>,
    %c25_322 = arith.constant 25 : index
    %c0_323 = arith.constant 0 : index
    %233 = tpu.strided_load %arg17[%c25_322, %c0_323] {strides = array<i32: 2, 1>} : memref<32x128xf32, #tpu.memory_space<vmem>>, vector<4x128xf32>
    %c4_324 = arith.constant 4 : index
    %c1152_325 = arith.constant 1152 : index
    %234 = vector.load %arg18[%c4_324, %c1152_325] : memref<64x1280xf32, #tpu.memory_space<vmem>>, vector<4x128xf32>
    tpu.vector_store %arg18[%c4_324, %c1152_325], %233 {strides = array<i32>} : memref<64x1280xf32, #tpu.memory_space<vmem>>, vector<4x128xf32>,
    %c0_326 = arith.constant 0 : index
    %c0_327 = arith.constant 0 : index
    %235 = vector.load %arg18[%c0_326, %c0_327] : memref<64x1280xf32, #tpu.memory_space<vmem>>, vector<8x1280xf32>
    %c0_328 = arith.constant 0 : index
    %c0_329 = arith.constant 0 : index
    %236 = vector.load %arg9[%c0_328, %c0_329] : memref<1280x256xf32, #tpu.memory_space<vmem>>, vector<1280x256xf32>
    %cst_330 = arith.constant dense<0.000000e+00> : vector<8x256xf32>
    %237 = tpu.matmul %235, %236, %cst_330 {dimension_numbers = #tpu.dot_dimension_numbers<[1], [0], [0], [1], [0, 0, 1, 1], [], []>} : vector<8x1280xf32>, vector<1280x256xf32>, vector<8x256xf32> -> vector<8x256xf32>
    %c0_331 = arith.constant 0 : index
    %c0_332 = arith.constant 0 : index
    %238 = vector.load %arg10[%c0_331, %c0_332] : memref<1x256xf32, #tpu.memory_space<vmem>>, vector<1x256xf32>
    %239 = vector.broadcast %238 : vector<1x256xf32> to vector<8x256xf32>
    %240 = arith.addf %237, %239 : vector<8x256xf32>
    %cst_333 = arith.constant dense<0.000000e+00> : vector<256xf32>
    %241 = vector.multi_reduction <add>, %240, %cst_333 [0] : vector<8x256xf32> to vector<256xf32>
    %242 = vector.shape_cast %241 : vector<256xf32> to vector<1x256xf32>
    %cst_334 = arith.constant 8.000000e+00 : f32
    %243 = vector.broadcast %cst_334 : f32 to vector<1x256xf32>
    %244 = arith.divf %242, %243 : vector<1x256xf32>
    %245 = vector.broadcast %244 : vector<1x256xf32> to vector<8x256xf32>
    %246 = arith.subf %240, %245 : vector<8x256xf32>
    %247 = arith.mulf %246, %246 : vector<8x256xf32>
    %cst_335 = arith.constant dense<0.000000e+00> : vector<256xf32>
    %248 = vector.multi_reduction <add>, %247, %cst_335 [0] : vector<8x256xf32> to vector<256xf32>
    %249 = vector.shape_cast %248 : vector<256xf32> to vector<1x256xf32>
    %cst_336 = arith.constant 8.000000e+00 : f32
    %250 = vector.broadcast %cst_336 : f32 to vector<1x256xf32>
    %251 = arith.divf %249, %250 : vector<1x256xf32>
    %252 = vector.broadcast %244 : vector<1x256xf32> to vector<8x256xf32>
    %253 = arith.subf %240, %252 : vector<8x256xf32>
    %cst_337 = arith.constant 9.99999974E-6 : f32
    %254 = vector.broadcast %cst_337 : f32 to vector<1x256xf32>
    %255 = arith.addf %251, %254 : vector<1x256xf32>
    %256 = math.rsqrt %255 : vector<1x256xf32>
    %257 = vector.broadcast %256 : vector<1x256xf32> to vector<8x256xf32>
    %258 = arith.mulf %253, %257 : vector<8x256xf32>
    %c0_338 = arith.constant 0 : index
    %c0_339 = arith.constant 0 : index
    %259 = vector.load %arg11[%c0_338, %c0_339] : memref<1x256xf32, #tpu.memory_space<vmem>>, vector<1x256xf32>
    %260 = vector.broadcast %259 : vector<1x256xf32> to vector<8x256xf32>
    %261 = arith.mulf %258, %260 : vector<8x256xf32>
    %c0_340 = arith.constant 0 : index
    %c0_341 = arith.constant 0 : index
    %262 = vector.load %arg12[%c0_340, %c0_341] : memref<1x256xf32, #tpu.memory_space<vmem>>, vector<1x256xf32>
    %263 = vector.broadcast %262 : vector<1x256xf32> to vector<8x256xf32>
    %264 = arith.addf %261, %263 : vector<8x256xf32>
    %cst_342 = arith.constant 2.000000e-01 : f32
    %265 = vector.broadcast %cst_342 : f32 to vector<8x256xf32>
    %266 = arith.mulf %265, %264 : vector<8x256xf32>
    %267 = arith.maximumf %264, %266 : vector<8x256xf32>
    %c0_343 = arith.constant 0 : index
    %c0_344 = arith.constant 0 : index
    %268 = vector.load %arg13[%c0_343, %c0_344] : memref<8x256xf32, #tpu.memory_space<vmem>>, vector<8x256xf32>
    tpu.vector_store %arg13[%c0_343, %c0_344], %267 {strides = array<i32>} : memref<8x256xf32, #tpu.memory_space<vmem>>, vector<8x256xf32>,
    return
  }
}

</mosaic_0001>

<bundles_post_ra>
// kernel: tcgan_encoder_forward.1
= control target key start
LH: loop header
LB: loop body
LE: loop exit
PB: predicated region body
PF: predicated region fallthrough
CT: control target
= control target key end

     0   :  { %18 = vsyncpa [#allocation8], 0  ;;  %s5838_s0 = inlined_call_operand.vmem [shape: f32[120,6], index: 0, kind: input, shape index: {}]   ;;  %s5839_s1 = inlined_call_operand.hbm [shape: f32[1280,128], index: 1, kind: input, shape index: {}]   ;;  %s5840_s2 = inlined_call_operand.hbm [shape: f32[1,128], index: 2, kind: input, shape index: {}]   ;;  %s5841_s3 = inlined_call_operand.hbm [shape: f32[1280,128], index: 3, kind: input, shape index: {}]   ;;  %s5842_s4 = inlined_call_operand.hbm [shape: f32[1,128], index: 4, kind: input, shape index: {}]   ;;  %s5843_s5 = inlined_call_operand.hbm [shape: f32[1280,128], index: 5, kind: input, shape index: {}]   ;;  %s5844_s6 = inlined_call_operand.hbm [shape: f32[1,128], index: 6, kind: input, shape index: {}]   ;;  %s5845_s7 = inlined_call_operand.hbm [shape: f32[1,128], index: 7, kind: input, shape index: {}]   ;;  %s5846_s8 = inlined_call_operand.hbm [shape: f32[1,128], index: 8, kind: input, shape index: {}]   ;;  %s5847_s9 = inlined_call_operand.hbm [shape: f32[1280,256], index: 9, kind: input, shape index: {}]   ;;  %s5848_s10 = inlined_call_operand.hbm [shape: f32[1,256], index: 10, kind: input, shape index: {}]   ;;  %s5849_s11 = inlined_call_operand.hbm [shape: f32[1,256], index: 11, kind: input, shape index: {}]   ;;  %s5850_s12 = inlined_call_operand.hbm [shape: f32[1,256], index: 12, kind: input, shape index: {}]   ;;  %s5851_s13 = inlined_call_operand.vmem [shape: f32[8,256], index: 13, kind: output, shape index: {}]  }
   0x1   :  { %19 = vsyncpa [#allocation10], 0 }
   0x2   :  { %20 = vsyncpa [#allocation13], 0 }
   0x3   :  { %21 = vsyncpa [#allocation16], 0 }
   0x4   :  { %22 = vsyncpa [#allocation19], 0 }
   0x5   :  { %23 = vsyncpa [#allocation22], 0 }
   0x6   :  { %24 = vsyncpa [#allocation25], 0  ;;  %s5407_s25 = smov [#allocation9]   ;;  %s5408_s27 = smov [#allocation12]  }
   0x7   :  { %s45_s26 = sshll.u32 %s5407_s25, 4  ;;  %s67_s28 = sshll.u32 %s5408_s27, 4  ;;  %s46_s26 = int_to_ptr.vmem [resolvable:$true] %s45_s26  ;;  %s68_s28 = int_to_ptr.vmem [resolvable:$true] %s67_s28 }
   0x8   :  { %s5129_s14 = scalar_lea.hbm %s5840_s2, 16 }
   0x9   :  { %p5130_p0 = scmp.ne.s32.totalorder %s5840_s2, %s5129_s14  ;;  %p5133_p1 = scmp.lt.u32.totalorder %s5129_s14, %s5840_s2 }
   0xb   :  { %p5135_p2 = pnand %p5133_p1, %p5130_p0 }
   0xd   :  { %5138 = shalt.err (!%p5135_p2)
}
   0xe   :  { %s5139_s19 = scalar_lea.vmem %s46_s26, 16  ;;  %s5143_s20 = scalar_lea.vmem %s46_s26, 32 }
   0xf   :  { %p5140_p3 = scmp.ne.s32.totalorder %s46_s26, %s5139_s19  ;;  %p5144_p4 = scmp.lt.s32.totalorder %s46_s26, %s46_s26 }
  0x10   :  { %p5145_p5 = scmp.lt.s32.totalorder %s5143_s20, %s5139_s19 }
  0x12   :  { %p5146_p6 = por %p5145_p5, %p5144_p4 }
  0x14   :  { %p5147_p7 = pnand %p5146_p6, %p5140_p3 }
  0x16   :  { %5150 = shalt.err (!%p5147_p7)
}
  0x17   :  { %48 = dma.hbm_to_vmem [thread:$0]  %s5840_s2, 16, %s46_s26, [#allocation10]  }
  0x18   :  { %s5151_s25 = scalar_lea.hbm %s5842_s4, 16 }
  0x19   :  { %p5152_p8 = scmp.ne.s32.totalorder %s5842_s4, %s5151_s25  ;;  %p5155_p9 = scmp.lt.u32.totalorder %s5151_s25, %s5842_s4 }
  0x1b   :  { %p5157_p10 = pnand %p5155_p9, %p5152_p8 }
  0x1d   :  { %5160 = shalt.err (!%p5157_p10)
}
  0x1e   :  { %s5161_s15 = scalar_lea.vmem %s68_s28, 16  ;;  %s5165_s16 = scalar_lea.vmem %s68_s28, 32 }
  0x1f   :  { %p5162_p11 = scmp.ne.s32.totalorder %s68_s28, %s5161_s15  ;;  %p5166_p12 = scmp.lt.s32.totalorder %s68_s28, %s68_s28 }
  0x20   :  { %p5167_p13 = scmp.lt.s32.totalorder %s5165_s16, %s5161_s15 }
  0x22   :  { %p5168_p0 = por %p5167_p13, %p5166_p12 }
  0x24   :  { %p5169_p1 = pnand %p5168_p0, %p5162_p11 }
  0x26   :  { %5172 = shalt.err (!%p5169_p1)
}
  0x27   :  { %70 = dma.hbm_to_vmem [thread:$0]  %s5842_s4, 16, %s68_s28, [#allocation13]  }
  0x28   :  { %s5409_s17 = smov [#allocation15]   ;;  %s5410_s19 = smov [#allocation18]  }
  0x29   :  { %s89_s18 = sshll.u32 %s5409_s17, 4  ;;  %s109_s20 = sshll.u32 %s5410_s19, 4  ;;  %s90_s18 = int_to_ptr.vmem [resolvable:$true] %s89_s18  ;;  %s110_s20 = int_to_ptr.vmem [resolvable:$true] %s109_s20 }
  0x2a   :  { %s5173_s23 = scalar_lea.hbm %s5844_s6, 16 }
  0x2b   :  { %p5174_p2 = scmp.ne.s32.totalorder %s5844_s6, %s5173_s23  ;;  %p5177_p3 = scmp.lt.u32.totalorder %s5173_s23, %s5844_s6 }
  0x2d   :  { %p5179_p4 = pnand %p5177_p3, %p5174_p2 }
  0x2f   :  { %5182 = shalt.err (!%p5179_p4)
}
  0x30   :  { %s5183_s4 = scalar_lea.vmem %s90_s18, 16  ;;  %s5187_s28 = scalar_lea.vmem %s90_s18, 32 }
  0x31   :  { %p5184_p5 = scmp.ne.s32.totalorder %s90_s18, %s5183_s4  ;;  %p5188_p6 = scmp.lt.s32.totalorder %s90_s18, %s90_s18 }
  0x32   :  { %p5189_p7 = scmp.lt.s32.totalorder %s5187_s28, %s5183_s4 }
  0x34   :  { %p5190_p8 = por %p5189_p7, %p5188_p6 }
  0x36   :  { %p5191_p9 = pnand %p5190_p8, %p5184_p5 }
  0x38   :  { %5194 = shalt.err (!%p5191_p9)
}
  0x39   :  { %92 = dma.hbm_to_vmem [thread:$0]  %s5844_s6, 16, %s90_s18, [#allocation16]  }
  0x3a   :  { %s5195_s2 = scalar_lea.hbm %s5846_s8, 16 }
  0x3b   :  { %p5196_p10 = scmp.ne.s32.totalorder %s5846_s8, %s5195_s2  ;;  %p5199_p11 = scmp.lt.u32.totalorder %s5195_s2, %s5846_s8 }
  0x3d   :  { %p5201_p12 = pnand %p5199_p11, %p5196_p10 }
  0x3f   :  { %5204 = shalt.err (!%p5201_p12)
}
  0x40   :  { %s5205_s22 = scalar_lea.vmem %s110_s20, 16  ;;  %s5209_s23 = scalar_lea.vmem %s110_s20, 32 }
  0x41   :  { %p5206_p13 = scmp.ne.s32.totalorder %s110_s20, %s5205_s22  ;;  %p5210_p0 = scmp.lt.s32.totalorder %s110_s20, %s110_s20 }
  0x42   :  { %p5211_p1 = scmp.lt.s32.totalorder %s5209_s23, %s5205_s22 }
  0x44   :  { %p5212_p2 = por %p5211_p1, %p5210_p0 }
  0x46   :  { %p5213_p3 = pnand %p5212_p2, %p5206_p13 }
  0x48   :  { %5216 = shalt.err (!%p5213_p3)
}
  0x49   :  { %112 = dma.hbm_to_vmem [thread:$0]  %s5846_s8, 16, %s110_s20, [#allocation19]  }
  0x4a   :  { %s5411_s24 = smov [#allocation21]   ;;  %s5412_s27 = smov [#allocation7]  }
  0x4b   :  { %s131_s25 = sshll.u32 %s5411_s24, 4  ;;  %s32_s29 = sshll.u32 %s5412_s27, 4  ;;  %s132_s25 = int_to_ptr.vmem [resolvable:$true] %s131_s25  ;;  %s5542_s29 = int_to_ptr.vmem [resolvable:$true] %s32_s29 }
  0x4c   :  { %s5217_s30 = scalar_lea.hbm %s5848_s10, 32 }
  0x4d   :  { %p5218_p4 = scmp.ne.s32.totalorder %s5848_s10, %s5217_s30  ;;  %p5221_p5 = scmp.lt.u32.totalorder %s5217_s30, %s5848_s10 }
  0x4f   :  { %p5223_p6 = pnand %p5221_p5, %p5218_p4 }
  0x51   :  { %5226 = shalt.err (!%p5223_p6)
}
  0x52   :  { %s5227_s8 = scalar_lea.vmem %s132_s25, 32  ;;  %p5232_p8 = scmp.lt.s32.totalorder %s132_s25, %s132_s25 }
  0x53   :  { %p5228_p7 = scmp.ne.s32.totalorder %s132_s25, %s5227_s8  ;;  %p5233_p9 = scmp.lt.s32.totalorder %s5227_s8, %s5227_s8 }
  0x55   :  { %p5234_p10 = por %p5233_p9, %p5232_p8 }
  0x57   :  { %p5235_p11 = pnand %p5234_p10, %p5228_p7 }
  0x59   :  { %5238 = shalt.err (!%p5235_p11)
}
  0x5a   :  { %134 = dma.hbm_to_vmem [thread:$0]  %s5848_s10, 32, %s132_s25, [#allocation22]  }
  0x5b   :  { %s5239_s21 = scalar_lea.hbm %s5839_s1, 20480 }
  0x5c   :  { %p5240_p12 = scmp.ne.s32.totalorder %s5839_s1, %s5239_s21  ;;  %p5243_p13 = scmp.lt.u32.totalorder %s5239_s21, %s5839_s1 }
  0x5e   :  { %p5245_p0 = pnand %p5243_p13, %p5240_p12 }
  0x60   :  { %5248 = shalt.err (!%p5245_p0)
}
  0x61   :  { %s5249_s24 = scalar_lea.vmem %s5542_s29, 20480  ;;  %p5254_p2 = scmp.lt.s32.totalorder %s5542_s29, %s5542_s29 }
  0x62   :  { %p5250_p1 = scmp.ne.s32.totalorder %s5542_s29, %s5249_s24  ;;  %p5255_p3 = scmp.lt.s32.totalorder %s5249_s24, %s5249_s24 }
  0x64   :  { %p5256_p4 = por %p5255_p3, %p5254_p2 }
  0x66   :  { %p5257_p5 = pnand %p5256_p4, %p5250_p1 }
  0x68   :  { %5260 = shalt.err (!%p5257_p5)
}
  0x69   :  { %s5413_s10 = smov 128   ;;  %s5414_s25 = smov 8  }
  0x6a   :  { %38 = dma.hbm_to_vmem [thread:$0]  %s5839_s1, 20480, %s5542_s29, [#allocation8], %s5413_s10, %s5413_s10, %s5414_s25  }
  0x6b   :  { %s5415_s28 = smov [#allocation11]   ;;  %s5416_s14 = smov [#allocation14]  }
  0x6c   :  { %s54_s30 = sshll.u32 %s5415_s28, 4  ;;  %s76_s15 = sshll.u32 %s5416_s14, 4  ;;  %s55_s30 = int_to_ptr.vmem [resolvable:$true] %s54_s30  ;;  %s5576_s15 = int_to_ptr.vmem [resolvable:$true] %s76_s15 }
  0x6d   :  { %s5261_s8 = scalar_lea.hbm %s5841_s3, 20480 }
  0x6e   :  { %p5262_p6 = scmp.ne.s32.totalorder %s5841_s3, %s5261_s8  ;;  %p5265_p7 = scmp.lt.u32.totalorder %s5261_s8, %s5841_s3 }
  0x70   :  { %p5267_p8 = pnand %p5265_p7, %p5262_p6 }
  0x72   :  { %5270 = shalt.err (!%p5267_p8)
}
  0x73   :  { %s5271_s1 = scalar_lea.vmem %s55_s30, 20480  ;;  %p5276_p10 = scmp.lt.s32.totalorder %s55_s30, %s55_s30 }
  0x74   :  { %p5272_p9 = scmp.ne.s32.totalorder %s55_s30, %s5271_s1  ;;  %p5277_p11 = scmp.lt.s32.totalorder %s5271_s1, %s5271_s1 }
  0x76   :  { %p5278_p12 = por %p5277_p11, %p5276_p10 }
  0x78   :  { %p5279_p13 = pnand %p5278_p12, %p5272_p9 }
  0x7a   :  { %5282 = shalt.err (!%p5279_p13)
}
  0x7b   :  { %60 = dma.hbm_to_vmem [thread:$0]  %s5841_s3, 20480, %s55_s30, [#allocation10], %s5413_s10, %s5413_s10, %s5414_s25  }
  0x7c   :  { %s5283_s6 = scalar_lea.hbm %s5843_s5, 20480 }
  0x7d   :  { %p5284_p0 = scmp.ne.s32.totalorder %s5843_s5, %s5283_s6  ;;  %p5287_p1 = scmp.lt.u32.totalorder %s5283_s6, %s5843_s5 }
  0x7f   :  { %p5289_p2 = pnand %p5287_p1, %p5284_p0 }
  0x81   :  { %5292 = shalt.err (!%p5289_p2)
}
  0x82   :  { %s5293_s28 = scalar_lea.vmem %s5576_s15, 20480  ;;  %p5298_p4 = scmp.lt.s32.totalorder %s5576_s15, %s5576_s15 }
  0x83   :  { %p5294_p3 = scmp.ne.s32.totalorder %s5576_s15, %s5293_s28  ;;  %p5299_p5 = scmp.lt.s32.totalorder %s5293_s28, %s5293_s28 }
  0x85   :  { %p5300_p6 = por %p5299_p5, %p5298_p4 }
  0x87   :  { %p5301_p7 = pnand %p5300_p6, %p5294_p3 }
  0x89   :  { %5304 = shalt.err (!%p5301_p7)
}
  0x8a   :  { %82 = dma.hbm_to_vmem [thread:$0]  %s5843_s5, 20480, %s5576_s15, [#allocation13], %s5413_s10, %s5413_s10, %s5414_s25  }
  0x8b   :  { %s5417_s14 = smov [#allocation17]   ;;  %s5418_s2 = smov [#allocation20]  }
  0x8c   :  { %s99_s16 = sshll.u32 %s5417_s14, 4  ;;  %s118_s8 = sshll.u32 %s5418_s2, 4  ;;  %s100_s16 = int_to_ptr.vmem [resolvable:$true] %s99_s16  ;;  %s5613_s8 = int_to_ptr.vmem [resolvable:$true] %s118_s8 }
  0x8d   :  { %s5305_s17 = scalar_lea.hbm %s5845_s7, 16 }
  0x8e   :  { %p5306_p8 = scmp.ne.s32.totalorder %s5845_s7, %s5305_s17  ;;  %p5309_p9 = scmp.lt.u32.totalorder %s5305_s17, %s5845_s7 }
  0x90   :  { %p5311_p10 = pnand %p5309_p9, %p5306_p8 }
  0x92   :  { %5314 = shalt.err (!%p5311_p10)
}
  0x93   :  { %s5315_s5 = scalar_lea.vmem %s100_s16, 16  ;;  %s5319_s10 = scalar_lea.vmem %s100_s16, 32 }
  0x94   :  { %p5316_p11 = scmp.ne.s32.totalorder %s100_s16, %s5315_s5  ;;  %p5320_p12 = scmp.lt.s32.totalorder %s100_s16, %s100_s16 }
  0x95   :  { %p5321_p13 = scmp.lt.s32.totalorder %s5319_s10, %s5315_s5 }
  0x97   :  { %p5322_p0 = por %p5321_p13, %p5320_p12 }
  0x99   :  { %p5323_p1 = pnand %p5322_p0, %p5316_p11 }
  0x9b   :  { %5326 = shalt.err (!%p5323_p1)
}
  0x9c   :  { %102 = dma.hbm_to_vmem [thread:$0]  %s5845_s7, 16, %s100_s16, [#allocation16]  }
  0x9d   :  { %s5327_s6 = scalar_lea.hbm %s5847_s9, 40960 }
  0x9e   :  { %p5328_p2 = scmp.ne.s32.totalorder %s5847_s9, %s5327_s6  ;;  %p5331_p3 = scmp.lt.u32.totalorder %s5327_s6, %s5847_s9 }
  0xa0   :  { %p5333_p4 = pnand %p5331_p3, %p5328_p2 }
  0xa2   :  { %5336 = shalt.err (!%p5333_p4)
}
  0xa3   :  { %s5337_s28 = scalar_lea.vmem %s5613_s8, 40960  ;;  %p5342_p6 = scmp.lt.s32.totalorder %s5613_s8, %s5613_s8 }
  0xa4   :  { %p5338_p5 = scmp.ne.s32.totalorder %s5613_s8, %s5337_s28  ;;  %p5343_p7 = scmp.lt.s32.totalorder %s5337_s28, %s5337_s28 }
  0xa6   :  { %p5344_p8 = por %p5343_p7, %p5342_p6 }
  0xa8   :  { %p5345_p9 = pnand %p5344_p8, %p5338_p5 }
  0xaa   :  { %5348 = shalt.err (!%p5345_p9)
}
  0xab   :  { %s5419_s7 = smov 256   ;;  %s5420_s3 = smov 16  }
  0xac   :  { %124 = dma.hbm_to_vmem [thread:$0]  %s5847_s9, 40960, %s5613_s8, [#allocation19], %s5419_s7, %s5419_s7, %s5420_s3  }
  0xad   :  { %s5421_s16 = smov [#allocation23]   ;;  %s5422_s20 = smov [#allocation24]  }
  0xae   :  { %s141_s2 = sshll.u32 %s5421_s16, 4  ;;  %s151_s26 = sshll.u32 %s5422_s20, 4  ;;  %s142_s2 = int_to_ptr.vmem [resolvable:$true] %s141_s2  ;;  %s152_s26 = int_to_ptr.vmem [resolvable:$true] %s151_s26 }
  0xaf   :  { %s5349_s1 = scalar_lea.hbm %s5849_s11, 32 }
  0xb0   :  { %p5350_p10 = scmp.ne.s32.totalorder %s5849_s11, %s5349_s1  ;;  %p5353_p11 = scmp.lt.u32.totalorder %s5349_s1, %s5849_s11 }
  0xb2   :  { %p5355_p12 = pnand %p5353_p11, %p5350_p10 }
  0xb4   :  { %5358 = shalt.err (!%p5355_p12)
}
  0xb5   :  { %s5359_s9 = scalar_lea.vmem %s142_s2, 32  ;;  %p5364_p0 = scmp.lt.s32.totalorder %s142_s2, %s142_s2 }
  0xb6   :  { %p5360_p13 = scmp.ne.s32.totalorder %s142_s2, %s5359_s9  ;;  %p5365_p1 = scmp.lt.s32.totalorder %s5359_s9, %s5359_s9 }
  0xb8   :  { %p5366_p2 = por %p5365_p1, %p5364_p0 }
  0xba   :  { %p5367_p3 = pnand %p5366_p2, %p5360_p13 }
  0xbc   :  { %5370 = shalt.err (!%p5367_p3)
}
  0xbd   :  { %144 = dma.hbm_to_vmem [thread:$0]  %s5849_s11, 32, %s142_s2, [#allocation22]  }
  0xbe   :  { %s5371_s23 = scalar_lea.hbm %s5850_s12, 32 }
  0xbf   :  { %p5372_p4 = scmp.ne.s32.totalorder %s5850_s12, %s5371_s23  ;;  %p5375_p5 = scmp.lt.u32.totalorder %s5371_s23, %s5850_s12 }
  0xc1   :  { %p5377_p6 = pnand %p5375_p5, %p5372_p4 }
  0xc3   :  { %5380 = shalt.err (!%p5377_p6)
}
  0xc4   :  { %s5381_s4 = scalar_lea.vmem %s152_s26, 32  ;;  %p5386_p8 = scmp.lt.s32.totalorder %s152_s26, %s152_s26 }
  0xc5   :  { %p5382_p7 = scmp.ne.s32.totalorder %s152_s26, %s5381_s4  ;;  %p5387_p9 = scmp.lt.s32.totalorder %s5381_s4, %s5381_s4 }
  0xc7   :  { %p5388_p10 = por %p5387_p9, %p5386_p8 }
  0xc9   :  { %p5389_p11 = pnand %p5388_p10, %p5382_p7 }
  0xcb   :  { %5392 = shalt.err (!%p5389_p11)
}
  0xcc   :  { %154 = dma.hbm_to_vmem [thread:$0]  %s5850_s12, 32, %s152_s26, [#allocation25]  }
  0xcd   :  { %5393 = dma.done.wait [#allocation8], 20480  }
  0xce   :  { %5394 = vsyncadd [#allocation8], 4294946816 }
  0xcf   :  { %5395 = dma.done.wait [#allocation10], 20496  }
  0xd0   :  { %5396 = vsyncadd [#allocation10], 4294946800 }
  0xd1   :  { %5397 = dma.done.wait [#allocation13], 20496  }
  0xd2   :  { %5398 = vsyncadd [#allocation13], 4294946800 }
  0xd3   :  { %5399 = dma.done.wait [#allocation16], 32  }
  0xd4   :  { %5400 = vsyncadd [#allocation16], 4294967264 }
  0xd5   :  { %5401 = dma.done.wait [#allocation19], 40976  }
  0xd6   :  { %5402 = vsyncadd [#allocation19], 4294926320 }
  0xd7   :  { %5403 = dma.done.wait [#allocation22], 64  }
  0xd8   :  { %5404 = vsyncadd [#allocation22], 4294967232 }
  0xd9   :  { %5405 = dma.done.wait [#allocation25], 32  }
  0xda   :  { %5406 = vsyncadd [#allocation25], 4294967264  ;;  %v5423_v0 = vmov 0.0   ;;  %v598_v1 = vld [vmem:[#allocation7 + $0x80] sm:$0xff]  ;;  %v599_v2 = vld [vmem:[#allocation7 + $0x88] sm:$0xff]  ;;  %vm237_vm0 = vcmask 48128  }
  0xdb   :  { %191 = vst [vmem:[#allocation2] sm:$0xff] %v5423_v0  ;;  %192 = vst [vmem:[#allocation2 + $0x8] sm:$0xff] %v5423_v0  ;;  %v582_v3 = vld [vmem:[#allocation7] sm:$0xff]  ;;  %v4296_v4 = vpack.c.bf16 %v599_v2, %v598_v1  ;;  %v583_v5 = vld [vmem:[#allocation7 + $0x8] sm:$0xff]  ;;  %vm245_vm1 = vcmask 44032  }
  0xdc   :  { %193 = vst [vmem:[#allocation2 + $0x10] sm:$0xff] %v5423_v0  ;;  %194 = vst [vmem:[#allocation2 + $0x18] sm:$0xff] %v5423_v0  ;;  %v630_v6 = vld [vmem:[#allocation7 + $0x180] sm:$0xff]  ;;  %v631_v7 = vld [vmem:[#allocation7 + $0x188] sm:$0xff]  ;;  %v4298_v8 = vpack.c.bf16 %v583_v5, %v582_v3 }
  0xdd   :  { %195 = vst [vmem:[#allocation2 + $0x20] sm:$0xff] %v5423_v0  ;;  %196 = vst [vmem:[#allocation2 + $0x28] sm:$0xff] %v5423_v0  ;;  %v4328_v9 = vpack.c.bf16 %v631_v7, %v630_v6  ;;  %v614_v10 = vld [vmem:[#allocation7 + $0x100] sm:$0xff]  ;;  %v615_v11 = vld [vmem:[#allocation7 + $0x108] sm:$0xff]  ;;  %4297 = vmatprep.subr.bf16.mxu0 %v4296_v4 }
  0xde   :  { %197 = vst [vmem:[#allocation2 + $0x30] sm:$0xff] %v5423_v0  ;;  %198 = vst [vmem:[#allocation2 + $0x38] sm:$0xff] %v5423_v0  ;;  %v600_v12 = vld [vmem:[#allocation7 + $0x90] sm:$0xff]  ;;  %v4330_v13 = vpack.c.bf16 %v615_v11, %v614_v10  ;;  %v601_v14 = vld [vmem:[#allocation7 + $0x98] sm:$0xff]  ;;  %4299 = vmatpush3.bf16.msra.mxu0 %v4298_v8 }
  0xdf   :  { %199 = vst [vmem:[#allocation2 + $0x40] sm:$0xff] %v5423_v0  ;;  %200 = vst [vmem:[#allocation2 + $0x48] sm:$0xff] %v5423_v0  ;;  %v584_v15 = vld [vmem:[#allocation7 + $0x10] sm:$0xff]  ;;  %v585_v16 = vld [vmem:[#allocation7 + $0x18] sm:$0xff]  ;;  %4329 = vmatprep.subr.bf16.mxu1 %v4328_v9  ;;  %v4300_v17 = vpack.c.bf16 %v601_v14, %v600_v12 }
  0xe0   :  { %201 = vst [vmem:[#allocation2 + $0x50] sm:$0xff] %v5423_v0  ;;  %202 = vst [vmem:[#allocation2 + $0x58] sm:$0xff] %v5423_v0  ;;  %v4302_v18 = vpack.c.bf16 %v585_v16, %v584_v15  ;;  %v632_v19 = vld [vmem:[#allocation7 + $0x190] sm:$0xff]  ;;  %v633_v20 = vld [vmem:[#allocation7 + $0x198] sm:$0xff]  ;;  %4331 = vmatpush3.bf16.msra.mxu1 %v4330_v13 }
  0xe1   :  { %203 = vst [vmem:[#allocation2 + $0x60] sm:$0xff] %v5423_v0  ;;  %204 = vst [vmem:[#allocation2 + $0x68] sm:$0xff] %v5423_v0  ;;  %v616_v21 = vld [vmem:[#allocation7 + $0x110] sm:$0xff]  ;;  %v4332_v22 = vpack.c.bf16 %v633_v20, %v632_v19  ;;  %v617_v23 = vld [vmem:[#allocation7 + $0x118] sm:$0xff]  ;;  %4301 = vmatprep.subr.bf16.mxu0 %v4300_v17 }
  0xe2   :  { %205 = vst [vmem:[#allocation2 + $0x70] sm:$0xff] %v5423_v0  ;;  %206 = vst [vmem:[#allocation2 + $0x78] sm:$0xff] %v5423_v0  ;;  %v602_v24 = vld [vmem:[#allocation7 + $0xa0] sm:$0xff]  ;;  %v603_v25 = vld [vmem:[#allocation7 + $0xa8] sm:$0xff]  ;;  %v4334_v26 = vpack.c.bf16 %v617_v23, %v616_v21  ;;  %4303 = vmatpush3.bf16.msra.mxu0 %v4302_v18 }
  0xe3   :  { %207 = vst [vmem:[#allocation2 + $0x80] sm:$0xff] %v5423_v0  ;;  %208 = vst [vmem:[#allocation2 + $0x88] sm:$0xff] %v5423_v0  ;;  %v4304_v27 = vpack.c.bf16 %v603_v25, %v602_v24  ;;  %v586_v28 = vld [vmem:[#allocation7 + $0x20] sm:$0xff]  ;;  %v587_v29 = vld [vmem:[#allocation7 + $0x28] sm:$0xff]  ;;  %4333 = vmatprep.subr.bf16.mxu1 %v4332_v22 }
  0xe4   :  { %209 = vst [vmem:[#allocation3] sm:$0xff] %v5423_v0  ;;  %210 = vst [vmem:[#allocation3 + $0x8] sm:$0xff] %v5423_v0  ;;  %v634_v30 = vld [vmem:[#allocation7 + $0x1a0] sm:$0xff]  ;;  %v635_v31 = vld [vmem:[#allocation7 + $0x1a8] sm:$0xff]  ;;  %v4306_v34 = vpack.c.bf16 %v587_v29, %v586_v28  ;;  %4335 = vmatpush3.bf16.msra.mxu1 %v4334_v26 }
  0xe5   :  { %211 = vst [vmem:[#allocation3 + $0x10] sm:$0xff] %v5423_v0  ;;  %212 = vst [vmem:[#allocation3 + $0x18] sm:$0xff] %v5423_v0  ;;  %v618_v32 = vld [vmem:[#allocation7 + $0x120] sm:$0xff]  ;;  %v619_v33 = vld [vmem:[#allocation7 + $0x128] sm:$0xff]  ;;  %v4336_v35 = vpack.c.bf16 %v635_v31, %v634_v30  ;;  %4305 = vmatprep.subr.bf16.mxu0 %v4304_v27 }
  0xe6   :  { %213 = vst [vmem:[#allocation3 + $0x20] sm:$0xff] %v5423_v0  ;;  %214 = vst [vmem:[#allocation3 + $0x28] sm:$0xff] %v5423_v0  ;;  %v604_v36 = vld [vmem:[#allocation7 + $0xb0] sm:$0xff]  ;;  %v605_v37 = vld [vmem:[#allocation7 + $0xb8] sm:$0xff]  ;;  %v4338_v39 = vpack.c.bf16 %v619_v33, %v618_v32  ;;  %4307 = vmatpush3.bf16.msra.mxu0 %v4306_v34 }
  0xe7   :  { %215 = vst [vmem:[#allocation3 + $0x30] sm:$0xff] %v5423_v0  ;;  %216 = vst [vmem:[#allocation3 + $0x38] sm:$0xff] %v5423_v0  ;;  %v588_v38 = vld [vmem:[#allocation7 + $0x30] sm:$0xff]  ;;  %v4308_v40 = vpack.c.bf16 %v605_v37, %v604_v36  ;;  %v589_v41 = vld [vmem:[#allocation7 + $0x38] sm:$0xff]  ;;  %4337 = vmatprep.subr.bf16.mxu1 %v4336_v35 }
  0xe8   :  { %217 = vst [vmem:[#allocation3 + $0x40] sm:$0xff] %v5423_v0  ;;  %218 = vst [vmem:[#allocation3 + $0x48] sm:$0xff] %v5423_v0  ;;  %v636_v42 = vld [vmem:[#allocation7 + $0x1b0] sm:$0xff]  ;;  %v637_v43 = vld [vmem:[#allocation7 + $0x1b8] sm:$0xff]  ;;  %v4310_v49 = vpack.c.bf16 %v589_v41, %v588_v38  ;;  %4339 = vmatpush3.bf16.msra.mxu1 %v4338_v39 }
  0xe9   :  { %219 = vst [vmem:[#allocation4] sm:$0xff] %v5423_v0  ;;  %220 = vst [vmem:[#allocation4 + $0x8] sm:$0xff] %v5423_v0  ;;  %v4340_v44 = vpack.c.bf16 %v637_v43, %v636_v42  ;;  %v620_v45 = vld [vmem:[#allocation7 + $0x130] sm:$0xff]  ;;  %v621_v46 = vld [vmem:[#allocation7 + $0x138] sm:$0xff]  ;;  %4309 = vmatprep.subr.bf16.mxu0 %v4308_v40 }
  0xea   :  { %221 = vst [vmem:[#allocation4 + $0x10] sm:$0xff] %v5423_v0  ;;  %222 = vst [vmem:[#allocation4 + $0x18] sm:$0xff] %v5423_v0  ;;  %v606_v47 = vld [vmem:[#allocation7 + $0xc0] sm:$0xff]  ;;  %v607_v48 = vld [vmem:[#allocation7 + $0xc8] sm:$0xff]  ;;  %v4342_v52 = vpack.c.bf16 %v621_v46, %v620_v45  ;;  %4311 = vmatpush3.bf16.msra.mxu0 %v4310_v49 }
  0xeb   :  { %223 = vst [vmem:[#allocation4 + $0x20] sm:$0xff] %v5423_v0  ;;  %224 = vst [vmem:[#allocation4 + $0x28] sm:$0xff] %v5423_v0  ;;  %v638_v50 = vld [vmem:[#allocation7 + $0x1c0] sm:$0xff]  ;;  %v639_v51 = vld [vmem:[#allocation7 + $0x1c8] sm:$0xff]  ;;  %v4312_v53 = vpack.c.bf16 %v607_v48, %v606_v47  ;;  %4341 = vmatprep.subr.bf16.mxu1 %v4340_v44 }
  0xec   :  { %225 = vst [vmem:[#allocation5] sm:$0xff] %v5423_v0  ;;  %226 = vst [vmem:[#allocation5 + $0x8] sm:$0xff] %v5423_v0  ;;  %v590_v54 = vld [vmem:[#allocation7 + $0x40] sm:$0xff]  ;;  %v591_v55 = vld [vmem:[#allocation7 + $0x48] sm:$0xff]  ;;  %v4344_v57 = vpack.c.bf16 %v639_v51, %v638_v50  ;;  %4343 = vmatpush3.bf16.msra.mxu1 %v4342_v52 }
  0xed   :  { %227 = vst [vmem:[#allocation5 + $0x10] sm:$0xff] %v5423_v0  ;;  %228 = vst [vmem:[#allocation5 + $0x18] sm:$0xff] %v5423_v0  ;;  %v622_v56 = vld [vmem:[#allocation7 + $0x140] sm:$0xff]  ;;  %v623_v58 = vld [vmem:[#allocation7 + $0x148] sm:$0xff]  ;;  %v4314_v63 = vpack.c.bf16 %v591_v55, %v590_v54  ;;  %4313 = vmatprep.subr.bf16.mxu0 %v4312_v53 }
  0xee   :  { %v608_v59 = vld [vmem:[#allocation7 + $0xd0] sm:$0xff]  ;;  %v609_v60 = vld [vmem:[#allocation7 + $0xd8] sm:$0xff]  ;;  %v4346_v0 = vpack.c.bf16 %v623_v58, %v622_v56  ;;  %4345 = vmatprep.subr.bf16.mxu1 %v4344_v57  ;;  %v610_v7 = vld [vmem:[#allocation7 + $0xe0] sm:$0xff] }
  0xef   :  { %v640_v61 = vld [vmem:[#allocation7 + $0x1d0] sm:$0xff]  ;;  %v641_v62 = vld [vmem:[#allocation7 + $0x1d8] sm:$0xff]  ;;  %v4316_v1 = vpack.c.bf16 %v609_v60, %v608_v59  ;;  %v611_v8 = vld [vmem:[#allocation7 + $0xe8] sm:$0xff]  ;;  %4315 = vmatpush3.bf16.msra.mxu0 %v4314_v63 }
  0xf0   :  { %v592_v2 = vld [vmem:[#allocation7 + $0x50] sm:$0xff]  ;;  %v593_v3 = vld [vmem:[#allocation7 + $0x58] sm:$0xff]  ;;  %v4348_v5 = vpack.c.bf16 %v641_v62, %v640_v61  ;;  %v642_v9 = vld [vmem:[#allocation7 + $0x1e0] sm:$0xff]  ;;  %4347 = vmatpush3.bf16.msra.mxu1 %v4346_v0  ;;  %v4320_v15 = vpack.c.bf16 %v611_v8, %v610_v7 }
  0xf1   :  { %v624_v4 = vld [vmem:[#allocation7 + $0x150] sm:$0xff]  ;;  %v625_v6 = vld [vmem:[#allocation7 + $0x158] sm:$0xff]  ;;  %v643_v10 = vld [vmem:[#allocation7 + $0x1e8] sm:$0xff]  ;;  %v4318_v11 = vpack.c.bf16 %v593_v3, %v592_v2  ;;  %4317 = vmatprep.subr.bf16.mxu0 %v4316_v1 }
  0xf2   :  { %v594_v12 = vld [vmem:[#allocation7 + $0x60] sm:$0xff]  ;;  %v229_v13 = vld [vmem:[%s5838_s0] sm:$0xff]  ;;  %v4350_v14 = vpack.c.bf16 %v625_v6, %v624_v4  ;;  %v595_v16 = vld [vmem:[#allocation7 + $0x68] sm:$0xff]  ;;  %4349 = vmatprep.subr.bf16.mxu1 %v4348_v5  ;;  %v4352_v19 = vpack.c.bf16 %v643_v10, %v642_v9 }
  0xf3   :  { %v626_v17 = vld [vmem:[#allocation7 + $0x160] sm:$0xff]  ;;  %v230_v18 = vld [vmem:[%s5838_s0 + $0x8] sm:$0xff]  ;;  %238 = vst.msk [vmem:[#allocation2 + $0x6] sm:$0xff] %vm237_vm0, %v229_v13  ;;  %v627_v20 = vld [vmem:[#allocation7 + $0x168] sm:$0xff]  ;;  %4319 = vmatpush3.bf16.msra.mxu0 %v4318_v11  ;;  %v4322_v25 = vpack.c.bf16 %v595_v16, %v594_v12 }
  0xf4   :  { %v612_v21 = vld [vmem:[#allocation7 + $0xf0] sm:$0xff]  ;;  %v613_v22 = vld [vmem:[#allocation7 + $0xf8] sm:$0xff]  ;;  %239 = vst.msk [vmem:[#allocation2 + $0xe] sm:$0xff] %vm237_vm0, %v230_v18  ;;  %v231_v27 = vld [vmem:[%s5838_s0 + $0x10] sm:$0xff]  ;;  %4351 = vmatpush3.bf16.msra.mxu1 %v4350_v14  ;;  %4321 = vmatprep.subr.bf16.mxu0 %v4320_v15  ;;  %v4354_v29 = vpack.c.bf16 %v627_v20, %v626_v17 }
  0xf5   :  { %v644_v23 = vld [vmem:[#allocation7 + $0x1f0] sm:$0xff]  ;;  %v645_v24 = vld [vmem:[#allocation7 + $0x1f8] sm:$0xff]  ;;  %v232_v28 = vld [vmem:[%s5838_s0 + $0x18] sm:$0xff]  ;;  %v4324_v30 = vpack.c.bf16 %v613_v22, %v612_v21  ;;  %240 = vst.msk [vmem:[#allocation2 + $0x16] sm:$0xff] %vm237_vm0, %v231_v27  ;;  %4353 = vmatprep.subr.bf16.mxu1 %v4352_v19 }
  0xf6   :  { %v596_v26 = vld [vmem:[#allocation7 + $0x70] sm:$0xff]  ;;  %v597_v31 = vld [vmem:[#allocation7 + $0x78] sm:$0xff]  ;;  %241 = vst.msk [vmem:[#allocation2 + $0x1e] sm:$0xff] %vm237_vm0, %v232_v28  ;;  %v4356_v34 = vpack.c.bf16 %v645_v24, %v644_v23  ;;  %v662_v35 = vld [vmem:[#allocation7 + $0x280] sm:$0xff] }
  0xf7   :  { %v628_v32 = vld [vmem:[#allocation7 + $0x170] sm:$0xff]  ;;  %v629_v33 = vld [vmem:[#allocation7 + $0x178] sm:$0xff]  ;;  %v663_v36 = vld [vmem:[#allocation7 + $0x288] sm:$0xff]  ;;  %4323 = vmatpush3.bf16.msra.mxu0 %v4322_v25  ;;  %v4326_v41 = vpack.c.bf16 %v597_v31, %v596_v26 }
  0xf8   :  { %v694_v37 = vld [vmem:[#allocation7 + $0x380] sm:$0xff]  ;;  %v695_v38 = vld [vmem:[#allocation7 + $0x388] sm:$0xff]  ;;  %v233_v39 = vld [vmem:[%s5838_s0 + $0x20] sm:$0xff]  ;;  %4355 = vmatpush3.bf16.msra.mxu1 %v4354_v29  ;;  %4325 = vmatprep.subr.bf16.mxu0 %v4324_v30  ;;  %v4358_v45 = vpack.c.bf16 %v629_v33, %v628_v32  ;;  %v4360_v46 = vpack.c.bf16 %v663_v36, %v662_v35 }
  0xf9   :  { %v234_v40 = vld [vmem:[%s5838_s0 + $0x28] sm:$0xff]  ;;  %v646_v42 = vld [vmem:[#allocation7 + $0x200] sm:$0xff]  ;;  %v647_v43 = vld [vmem:[#allocation7 + $0x208] sm:$0xff]  ;;  %242 = vst.msk [vmem:[#allocation2 + $0x26] sm:$0xff] %vm237_vm0, %v233_v39  ;;  %4357 = vmatprep.subr.bf16.mxu1 %v4356_v34  ;;  %v4392_v49 = vpack.c.bf16 %v695_v38, %v694_v37 }
  0xfa   :  { %243 = vst.msk [vmem:[#allocation2 + $0x2e] sm:$0xff] %vm237_vm0, %v234_v40  ;;  %v678_v48 = vld [vmem:[#allocation7 + $0x300] sm:$0xff]  ;;  %v679_v50 = vld [vmem:[#allocation7 + $0x308] sm:$0xff]  ;;  %v664_v51 = vld [vmem:[#allocation7 + $0x290] sm:$0xff]  ;;  %v4362_v58 = vpack.c.bf16 %v647_v43, %v646_v42 }
  0xfb   :  { %v287_v44 = vld [vmem:[#allocation2 + $0x1] ss:$2 sm:$0xff]  ;;  %4327 = vmatpush3.bf16.msra.mxu0 %v4326_v41  ;;  %v263_v57 = vld [vmem:[#allocation2] ss:$2 sm:$0xff]  ;;  %v4394_v62 = vpack.c.bf16 %v679_v50, %v678_v48  ;;  %v235_v63 = vld [vmem:[%s5838_s0 + $0x30] sm:$0xff] }
  0xfc   :  { %v335_v47 = vld [vmem:[#allocation2 + $0x3] ss:$2 sm:$0xff]  ;;  %813 = vmatprep.mubr.f32.mxu0 %v287_v44  ;;  %4359 = vmatpush3.bf16.msra.mxu1 %v4358_v45  ;;  %v311_v61 = vld [vmem:[#allocation2 + $0x2] ss:$2 sm:$0xff]  ;;  %v236_v0 = vld [vmem:[%s5838_s0 + $0x38] sm:$0xf] }
  0xfd   :  { %v665_v52 = vld [vmem:[#allocation7 + $0x298] sm:$0xff]  ;;  %918 = vmatprep.mubr.f32.mxu1 %v335_v47  ;;  %v648_v53 = vld [vmem:[#allocation7 + $0x210] sm:$0xff]  ;;  %4361 = vmatprep.subr.bf16.mxu0 %v4360_v46  ;;  %v289_v1 = vld [vmem:[#allocation2 + $0x11] ss:$2 sm:$0xff]  ;;  %244 = vst.msk [vmem:[#allocation2 + $0x36] sm:$0xff] %vm237_vm0, %v235_v63 }
  0xfe   :  { %v649_v54 = vld [vmem:[#allocation7 + $0x218] sm:$0xff]  ;;  %v696_v55 = vld [vmem:[#allocation7 + $0x390] sm:$0xff]  ;;  %4393 = vmatprep.subr.bf16.mxu1 %v4392_v49  ;;  %v4364_v2 = vpack.c.bf16 %v665_v52, %v664_v51  ;;  %v666_v3 = vld [vmem:[#allocation7 + $0x2a0] sm:$0xff]  ;;  %246 = vst.msk [vmem:[#allocation2 + $0x3e] sm:$0xf] %vm245_vm1, %v236_v0  ;;  %814 = vmatmul.mubr.f32.vlgmr.msra.gmra.mrb[0].mxu0 %v263_v57 }
  0xff   :  { %v697_v56 = vld [vmem:[#allocation7 + $0x398] sm:$0xff]  ;;  %v680_v59 = vld [vmem:[#allocation7 + $0x310] sm:$0xff]  ;;  %v667_v4 = vld [vmem:[#allocation7 + $0x2a8] sm:$0xff]  ;;  %4363 = vmatpush3.bf16.msra.mxu0 %v4362_v58  ;;  %919 = vmatmul.mubr.f32.vlgmr.msra.gmra.mrb[0].mxu1 %v311_v61  ;;  %v4366_v12 = vpack.c.bf16 %v649_v54, %v648_v53 }
 0x100   :  { %v681_v60 = vld [vmem:[#allocation7 + $0x318] sm:$0xff]  ;;  %v337_v5 = vld [vmem:[#allocation2 + $0x13] ss:$2 sm:$0xff]  ;;  %v4396_v6 = vpack.c.bf16 %v697_v56, %v696_v55  ;;  %v265_v11 = vld [vmem:[#allocation2 + $0x10] ss:$2 sm:$0xff]  ;;  %818 = vmatprep.mubr.f32.mxu0 %v289_v1  ;;  %4395 = vmatpush3.bf16.msra.mxu1 %v4394_v62  ;;  %v4368_v20 = vpack.c.bf16 %v667_v4, %v666_v3 }
 0x101   :  { %v650_v7 = vld [vmem:[#allocation7 + $0x220] sm:$0xff]  ;;  %v651_v8 = vld [vmem:[#allocation7 + $0x228] sm:$0xff]  ;;  %v291_v15 = vld [vmem:[#allocation2 + $0x21] ss:$2 sm:$0xff]  ;;  %v4398_v16 = vpack.c.bf16 %v681_v60, %v680_v59  ;;  %4365 = vmatprep.subr.bf16.mxu0 %v4364_v2  ;;  %923 = vmatprep.mubr.f32.mxu1 %v337_v5 }
 0x102   :  { %v698_v9 = vld [vmem:[#allocation7 + $0x3a0] sm:$0xff]  ;;  %v699_v10 = vld [vmem:[#allocation7 + $0x3a8] sm:$0xff]  ;;  %v668_v18 = vld [vmem:[#allocation7 + $0x2b0] sm:$0xff]  ;;  %819 = vmatmul.mubr.f32.gmra.mrb[2].mxu0 %v265_v11  ;;  %4397 = vmatprep.subr.bf16.mxu1 %v4396_v6  ;;  %v4370_v29 = vpack.c.bf16 %v651_v8, %v650_v7 }
 0x103   :  { %v313_v13 = vld [vmem:[#allocation2 + $0x12] ss:$2 sm:$0xff]  ;;  %v339_v21 = vld [vmem:[#allocation2 + $0x23] ss:$2 sm:$0xff]  ;;  %v315_v24 = vld [vmem:[#allocation2 + $0x22] ss:$2 sm:$0xff]  ;;  %v4400_v25 = vpack.c.bf16 %v699_v10, %v698_v9  ;;  %4367 = vmatpush3.bf16.msra.mxu0 %v4366_v12  ;;  %823 = vmatprep.mubr.f32.mxu0 %v291_v15 }
 0x104   :  { %v682_v14 = vld [vmem:[#allocation7 + $0x320] sm:$0xff]  ;;  %v683_v17 = vld [vmem:[#allocation7 + $0x328] sm:$0xff]  ;;  %v267_v19 = vld [vmem:[#allocation2 + $0x20] ss:$2 sm:$0xff]  ;;  %924 = vmatmul.mubr.f32.gmra.mrb[2].mxu1 %v313_v13  ;;  %4369 = vmatprep.subr.bf16.mxu0 %v4368_v20 }
 0x105   :  { %v247_v22 = vld [vmem:[%s5838_s0 + $0x3c] sm:$0xff]  ;;  %v248_v23 = vld [vmem:[%s5838_s0 + $0x44] sm:$0xff]  ;;  %4399 = vmatpush3.bf16.msra.mxu1 %v4398_v16  ;;  %v4402_v33 = vpack.c.bf16 %v683_v17, %v682_v14  ;;  %v670_v35 = vld [vmem:[#allocation7 + $0x2c0] sm:$0xff]  ;;  %928 = vmatprep.mubr.f32.mxu1 %v339_v21 }
 0x106   :  { %v669_v26 = vld [vmem:[#allocation7 + $0x2b8] sm:$0xff]  ;;  %v652_v27 = vld [vmem:[#allocation7 + $0x230] sm:$0xff]  ;;  %255 = vst.msk [vmem:[#allocation2 + $0x4e] sm:$0xff] %vm237_vm0, %v247_v22  ;;  %256 = vst.msk [vmem:[#allocation2 + $0x56] sm:$0xff] %vm237_vm0, %v248_v23  ;;  %824 = vmatmul.mubr.f32.gmra.mrb[4].mxu0 %v267_v19  ;;  %4401 = vmatprep.subr.bf16.mxu1 %v4400_v25 }
 0x107   :  { %v653_v28 = vld [vmem:[#allocation7 + $0x238] sm:$0xff]  ;;  %v700_v30 = vld [vmem:[#allocation7 + $0x3b0] sm:$0xff]  ;;  %v671_v36 = vld [vmem:[#allocation7 + $0x2c8] sm:$0xff]  ;;  %v4372_v38 = vpack.c.bf16 %v669_v26, %v668_v18  ;;  %4371 = vmatpush3.bf16.msra.mxu0 %v4370_v29 }
 0x108   :  { %v701_v31 = vld [vmem:[#allocation7 + $0x3b8] sm:$0xff]  ;;  %v684_v32 = vld [vmem:[#allocation7 + $0x330] sm:$0xff]  ;;  %v293_v37 = vld [vmem:[#allocation2 + $0x31] ss:$2 sm:$0xff]  ;;  %929 = vmatmul.mubr.f32.gmra.mrb[4].mxu1 %v315_v24  ;;  %v4374_v47 = vpack.c.bf16 %v653_v28, %v652_v27  ;;  %v4376_v57 = vpack.c.bf16 %v671_v36, %v670_v35 }
 0x109   :  { %v685_v34 = vld [vmem:[#allocation7 + $0x338] sm:$0xff]  ;;  %v702_v39 = vld [vmem:[#allocation7 + $0x3c0] sm:$0xff]  ;;  %v4404_v43 = vpack.c.bf16 %v701_v31, %v700_v30  ;;  %v655_v45 = vld [vmem:[#allocation7 + $0x248] sm:$0xff]  ;;  %828 = vmatprep.mubr.f32.mxu0 %v293_v37  ;;  %4403 = vmatpush3.bf16.msra.mxu1 %v4402_v33 }
 0x10a   :  { %v249_v40 = vld [vmem:[%s5838_s0 + $0x4c] sm:$0xff]  ;;  %v250_v46 = vld [vmem:[%s5838_s0 + $0x54] sm:$0xff]  ;;  %v4406_v51 = vpack.c.bf16 %v685_v34, %v684_v32  ;;  %v672_v53 = vld [vmem:[#allocation7 + $0x2d0] sm:$0xff]  ;;  %4373 = vmatprep.subr.bf16.mxu0 %v4372_v38 }
 0x10b   :  { %v269_v41 = vld [vmem:[#allocation2 + $0x30] ss:$2 sm:$0xff]  ;;  %v341_v42 = vld [vmem:[#allocation2 + $0x33] ss:$2 sm:$0xff]  ;;  %257 = vst.msk [vmem:[#allocation2 + $0x5e] sm:$0xff] %vm237_vm0, %v249_v40  ;;  %258 = vst.msk [vmem:[#allocation2 + $0x66] sm:$0xff] %vm237_vm0, %v250_v46  ;;  %4405 = vmatprep.subr.bf16.mxu1 %v4404_v43  ;;  %4375 = vmatpush3.bf16.msra.mxu0 %v4374_v47 }
 0x10c   :  { %v654_v44 = vld [vmem:[#allocation7 + $0x240] sm:$0xff]  ;;  %v703_v49 = vld [vmem:[#allocation7 + $0x3c8] sm:$0xff]  ;;  %v673_v54 = vld [vmem:[#allocation7 + $0x2d8] sm:$0xff]  ;;  %933 = vmatprep.mubr.f32.mxu1 %v341_v42  ;;  %829 = vmatmul.mubr.f32.gmra.mrb[6].mxu0 %v269_v41 }
 0x10d   :  { %v317_v48 = vld [vmem:[#allocation2 + $0x32] ss:$2 sm:$0xff]  ;;  %v299_v55 = vld [vmem:[#allocation2 + $0x49] ss:$2 sm:$0xff]  ;;  %v4408_v60 = vpack.c.bf16 %v703_v49, %v702_v39  ;;  %v4378_v0 = vpack.c.bf16 %v655_v45, %v654_v44  ;;  %4407 = vmatpush3.bf16.msra.mxu1 %v4406_v51  ;;  %4377 = vmatprep.subr.bf16.mxu0 %v4376_v57  ;;  %v4380_v8 = vpack.c.bf16 %v673_v54, %v672_v53 }
 0x10e   :  { %v686_v50 = vld [vmem:[#allocation7 + $0x340] sm:$0xff]  ;;  %v687_v52 = vld [vmem:[#allocation7 + $0x348] sm:$0xff]  ;;  %v656_v61 = vld [vmem:[#allocation7 + $0x250] sm:$0xff]  ;;  %934 = vmatmul.mubr.f32.gmra.mrb[6].mxu1 %v317_v48  ;;  %833 = vmatprep.mubr.f32.mxu0 %v299_v55 }
 0x10f   :  { %v275_v56 = vld [vmem:[#allocation2 + $0x48] ss:$2 sm:$0xff]  ;;  %v347_v58 = vld [vmem:[#allocation2 + $0x4b] ss:$2 sm:$0xff]  ;;  %v251_v62 = vld [vmem:[%s5838_s0 + $0x5c] sm:$0xff]  ;;  %v4410_v4 = vpack.c.bf16 %v687_v52, %v686_v50  ;;  %4409 = vmatprep.subr.bf16.mxu1 %v4408_v60  ;;  %4379 = vmatpush3.bf16.msra.mxu0 %v4378_v0 }
 0x110   :  { %v323_v59 = vld [vmem:[#allocation2 + $0x4a] ss:$2 sm:$0xff]  ;;  %v704_v2 = vld [vmem:[#allocation7 + $0x3d0] sm:$0xff]  ;;  %259 = vst.msk [vmem:[#allocation2 + $0x6e] sm:$0xff] %vm237_vm0, %v251_v62  ;;  %938 = vmatprep.mubr.f32.mxu1 %v347_v58  ;;  %834 = vmatmul.mubr.f32.gmra.mrb[8].mxu0 %v275_v56 }
 0x111   :  { %v252_v63 = vld [vmem:[%s5838_s0 + $0x64] sm:$0xff]  ;;  %v674_v7 = vld [vmem:[#allocation7 + $0x2e0] sm:$0xff]  ;;  %v675_v9 = vld [vmem:[#allocation7 + $0x2e8] sm:$0xff]  ;;  %4411 = vmatpush3.bf16.msra.mxu1 %v4410_v4  ;;  %4381 = vmatprep.subr.bf16.mxu0 %v4380_v8 }
 0x112   :  { %v657_v1 = vld [vmem:[#allocation7 + $0x258] sm:$0xff]  ;;  %260 = vst.msk [vmem:[#allocation2 + $0x76] sm:$0xff] %vm237_vm0, %v252_v63  ;;  %v688_v5 = vld [vmem:[#allocation7 + $0x350] sm:$0xff]  ;;  %v706_v10 = vld [vmem:[#allocation7 + $0x3e0] sm:$0xff]  ;;  %939 = vmatmul.mubr.f32.gmra.mrb[8].mxu1 %v323_v59  ;;  %v4384_v24 = vpack.c.bf16 %v675_v9, %v674_v7 }
 0x113   :  { %v705_v3 = vld [vmem:[#allocation7 + $0x3d8] sm:$0xff]  ;;  %v301_v12 = vld [vmem:[#allocation2 + $0x59] ss:$2 sm:$0xff]  ;;  %v277_v13 = vld [vmem:[#allocation2 + $0x58] ss:$2 sm:$0xff]  ;;  %v4382_v16 = vpack.c.bf16 %v657_v1, %v656_v61 }
 0x114   :  { %v689_v6 = vld [vmem:[#allocation7 + $0x358] sm:$0xff]  ;;  %v4412_v15 = vpack.c.bf16 %v705_v3, %v704_v2  ;;  %v707_v18 = vld [vmem:[#allocation7 + $0x3e8] sm:$0xff]  ;;  %v254_v19 = vld [vmem:[%s5838_s0 + $0x74] sm:$0xf]  ;;  %838 = vmatprep.mubr.f32.mxu0 %v301_v12 }
 0x115   :  { %v253_v11 = vld [vmem:[%s5838_s0 + $0x6c] sm:$0xff]  ;;  %v349_v14 = vld [vmem:[#allocation2 + $0x5b] ss:$2 sm:$0xff]  ;;  %v325_v17 = vld [vmem:[#allocation2 + $0x5a] ss:$2 sm:$0xff]  ;;  %v4414_v20 = vpack.c.bf16 %v689_v6, %v688_v5  ;;  %839 = vmatmul.mubr.f32.gmra.mrb[10].mxu0 %v277_v13  ;;  %v4416_v31 = vpack.c.bf16 %v707_v18, %v706_v10 }
 0x116   :  { %261 = vst.msk [vmem:[#allocation2 + $0x7e] sm:$0xff] %vm237_vm0, %v253_v11  ;;  %v658_v21 = vld [vmem:[#allocation7 + $0x260] sm:$0xff]  ;;  %v659_v22 = vld [vmem:[#allocation7 + $0x268] sm:$0xff]  ;;  %943 = vmatprep.mubr.f32.mxu1 %v349_v14  ;;  %v676_v26 = vld [vmem:[#allocation7 + $0x2f0] sm:$0xff]  ;;  %4413 = vmatprep.subr.bf16.mxu1 %v4412_v15 }
 0x117   :  { %262 = vst.msk [vmem:[#allocation2 + $0x86] sm:$0xf] %vm245_vm1, %v254_v19  ;;  %v690_v23 = vld [vmem:[#allocation7 + $0x360] sm:$0xff]  ;;  %v691_v25 = vld [vmem:[#allocation7 + $0x368] sm:$0xff]  ;;  %v677_v27 = vld [vmem:[#allocation7 + $0x2f8] sm:$0xff]  ;;  %4383 = vmatpush3.bf16.msra.mxu0 %v4382_v16  ;;  %944 = vmatmul.mubr.f32.gmra.mrb[10].mxu1 %v325_v17  ;;  %v4386_v32 = vpack.c.bf16 %v659_v22, %v658_v21 }
 0x118   :  { %v708_v34 = vld [vmem:[#allocation7 + $0x3f0] sm:$0xff]  ;;  %v709_v35 = vld [vmem:[#allocation7 + $0x3f8] sm:$0xff]  ;;  %4415 = vmatpush3.bf16.msra.mxu1 %v4414_v20  ;;  %v4418_v36 = vpack.c.bf16 %v691_v25, %v690_v23  ;;  %4385 = vmatprep.subr.bf16.mxu0 %v4384_v24  ;;  %v4388_v39 = vpack.c.bf16 %v677_v27, %v676_v26  ;;  %v726_v43 = vld [vmem:[#allocation7 + $0x480] sm:$0xff] }
 0x119   :  { %v303_v28 = vld [vmem:[#allocation2 + $0x69] ss:$2 sm:$0xff]  ;;  %v279_v29 = vld [vmem:[#allocation2 + $0x68] ss:$2 sm:$0xff]  ;;  %v660_v37 = vld [vmem:[#allocation7 + $0x270] sm:$0xff]  ;;  %4417 = vmatprep.subr.bf16.mxu1 %v4416_v31  ;;  %v4420_v42 = vpack.c.bf16 %v709_v35, %v708_v34 }
 0x11a   :  { %v351_v30 = vld [vmem:[#allocation2 + $0x6b] ss:$2 sm:$0xff]  ;;  %v327_v33 = vld [vmem:[#allocation2 + $0x6a] ss:$2 sm:$0xff]  ;;  %843 = vmatprep.mubr.f32.mxu0 %v303_v28  ;;  %v692_v40 = vld [vmem:[#allocation7 + $0x370] sm:$0xff] }
 0x11b   :  { %v661_v38 = vld [vmem:[#allocation7 + $0x278] sm:$0xff]  ;;  %948 = vmatprep.mubr.f32.mxu1 %v351_v30  ;;  %844 = vmatmul.mubr.f32.gmra.mrb[12].mxu0 %v279_v29  ;;  %v727_v44 = vld [vmem:[#allocation7 + $0x488] sm:$0xff]  ;;  %v710_v51 = vld [vmem:[#allocation7 + $0x400] sm:$0xff] }
 0x11c   :  { %v693_v41 = vld [vmem:[#allocation7 + $0x378] sm:$0xff]  ;;  %4387 = vmatpush3.bf16.msra.mxu0 %v4386_v32  ;;  %949 = vmatmul.mubr.f32.gmra.mrb[12].mxu1 %v327_v33  ;;  %v4390_v48 = vpack.c.bf16 %v661_v38, %v660_v37  ;;  %v711_v52 = vld [vmem:[#allocation7 + $0x408] sm:$0xff]  ;;  %v4424_v54 = vpack.c.bf16 %v727_v44, %v726_v43  ;;  %v728_v55 = vld [vmem:[#allocation7 + $0x490] sm:$0xff] }
 0x11d   :  { %4419 = vmatpush3.bf16.msra.mxu1 %v4418_v36  ;;  %v4422_v50 = vpack.c.bf16 %v693_v41, %v692_v40  ;;  %4389 = vmatprep.subr.bf16.mxu0 %v4388_v39  ;;  %v383_v53 = vld [vmem:[#allocation2 + $0x5] ss:$2 sm:$0xff]  ;;  %v359_v58 = vld [vmem:[#allocation2 + $0x4] ss:$2 sm:$0xff]  ;;  %v4426_v59 = vpack.c.bf16 %v711_v52, %v710_v51  ;;  %v385_v0 = vld [vmem:[#allocation2 + $0x15] ss:$2 sm:$0xff] }
 0x11e   :  { %v305_v45 = vld [vmem:[#allocation2 + $0x79] ss:$2 sm:$0xff]  ;;  %v281_v46 = vld [vmem:[#allocation2 + $0x78] ss:$2 sm:$0xff]  ;;  %v729_v56 = vld [vmem:[#allocation7 + $0x498] sm:$0xff]  ;;  %4421 = vmatprep.subr.bf16.mxu1 %v4420_v42 }
 0x11f   :  { %v353_v47 = vld [vmem:[#allocation2 + $0x7b] ss:$2 sm:$0xff]  ;;  %848 = vmatprep.mubr.f32.mxu0 %v305_v45  ;;  %v329_v49 = vld [vmem:[#allocation2 + $0x7a] ss:$2 sm:$0xff]  ;;  %v4428_v61 = vpack.c.bf16 %v729_v56, %v728_v55  ;;  %v730_v1 = vld [vmem:[#allocation7 + $0x4a0] sm:$0xff] }
 0x120   :  { %953 = vmatprep.mubr.f32.mxu1 %v353_v47  ;;  %849 = vmatmul.mubr.f32.gmra.mrb[14].mxu0 %v281_v46  ;;  %v431_v57 = vld [vmem:[#allocation2 + $0x7] ss:$2 sm:$0xff]  ;;  %v407_v60 = vld [vmem:[#allocation2 + $0x6] ss:$2 sm:$0xff]  ;;  %v731_v2 = vld [vmem:[#allocation7 + $0x4a8] sm:$0xff] }
 0x121   :  { %4391 = vmatpush3.bf16.msra.mxu0 %v4390_v48  ;;  %954 = vmatmul.mubr.f32.gmra.mrb[14].mxu1 %v329_v49  ;;  %v712_v62 = vld [vmem:[#allocation7 + $0x410] sm:$0xff]  ;;  %v713_v63 = vld [vmem:[#allocation7 + $0x418] sm:$0xff]  ;;  %v714_v8 = vld [vmem:[#allocation7 + $0x420] sm:$0xff]  ;;  %v4432_v9 = vpack.c.bf16 %v731_v2, %v730_v1 }
 0x122   :  { %1023 = vmatprep.mubr.f32.mxu0 %v383_v53  ;;  %4423 = vmatpush3.bf16.msra.mxu1 %v4422_v50  ;;  %v361_v3 = vld [vmem:[#allocation2 + $0x14] ss:$2 sm:$0xff]  ;;  %v433_v4 = vld [vmem:[#allocation2 + $0x17] ss:$2 sm:$0xff]  ;;  %v4430_v5 = vpack.c.bf16 %v713_v63, %v712_v62  ;;  %v363_v13 = vld [vmem:[#allocation2 + $0x24] ss:$2 sm:$0xff] }
 0x123   :  { %4425 = vmatprep.subr.bf16.mxu0 %v4424_v54  ;;  %1128 = vmatprep.mubr.f32.mxu1 %v431_v57  ;;  %v409_v6 = vld [vmem:[#allocation2 + $0x16] ss:$2 sm:$0xff]  ;;  %v387_v7 = vld [vmem:[#allocation2 + $0x25] ss:$2 sm:$0xff]  ;;  %v411_v18 = vld [vmem:[#allocation2 + $0x26] ss:$2 sm:$0xff] }
 0x124   :  { %1024 = vmatmul.mubr.f32.vlgmr.msra.gmra.mrb[16].mxu0 %v359_v58  ;;  %v715_v10 = vld [vmem:[#allocation7 + $0x428] sm:$0xff]  ;;  %v732_v14 = vld [vmem:[#allocation7 + $0x4b0] sm:$0xff]  ;;  %v733_v15 = vld [vmem:[#allocation7 + $0x4b8] sm:$0xff] }
 0x125   :  { %4427 = vmatpush3.bf16.msra.mxu0 %v4426_v59  ;;  %1129 = vmatmul.mubr.f32.vlgmr.msra.gmra.mrb[16].mxu1 %v407_v60  ;;  %v395_v11 = vld [vmem:[#allocation2 + $0x4d] ss:$2 sm:$0xff]  ;;  %v371_v12 = vld [vmem:[#allocation2 + $0x4c] ss:$2 sm:$0xff]  ;;  %v4434_v20 = vpack.c.bf16 %v715_v10, %v714_v8  ;;  %v716_v22 = vld [vmem:[#allocation7 + $0x430] sm:$0xff]  ;;  %v4436_v25 = vpack.c.bf16 %v733_v15, %v732_v14 }
 0x126   :  { %1028 = vmatprep.mubr.f32.mxu0 %v385_v0  ;;  %4429 = vmatprep.subr.bf16.mxu0 %v4428_v61  ;;  %v443_v16 = vld [vmem:[#allocation2 + $0x4f] ss:$2 sm:$0xff]  ;;  %v419_v19 = vld [vmem:[#allocation2 + $0x4e] ss:$2 sm:$0xff]  ;;  %v445_v28 = vld [vmem:[#allocation2 + $0x5f] ss:$2 sm:$0xff] }
 0x127   :  { %1133 = vmatprep.mubr.f32.mxu1 %v433_v4  ;;  %v435_v17 = vld [vmem:[#allocation2 + $0x27] ss:$2 sm:$0xff]  ;;  %v5732_v24 = vld [vmem:[#allocation2 + $0x5c] ss:$2 sm:$0xff]  ;;  %v437_v33 = vld [vmem:[#allocation2 + $0x37] ss:$2 sm:$0xff] }
 0x128   :  { %1029 = vmatmul.mubr.f32.gmra.mrb[18].mxu0 %v361_v3  ;;  %v389_v21 = vld [vmem:[#allocation2 + $0x35] ss:$2 sm:$0xff]  ;;  %v717_v26 = vld [vmem:[#allocation7 + $0x438] sm:$0xff]  ;;  %v365_v29 = vld [vmem:[#allocation2 + $0x34] ss:$2 sm:$0xff] }
 0x129   :  { %4431 = vmatpush3.bf16.msra.mxu0 %v4430_v5  ;;  %1134 = vmatmul.mubr.f32.gmra.mrb[18].mxu1 %v409_v6  ;;  %v397_v23 = vld [vmem:[#allocation2 + $0x5d] ss:$2 sm:$0xff]  ;;  %v734_v27 = vld [vmem:[#allocation7 + $0x4c0] sm:$0xff]  ;;  %v421_v31 = vld [vmem:[#allocation2 + $0x5e] ss:$2 sm:$0xff]  ;;  %v4438_v36 = vpack.c.bf16 %v717_v26, %v716_v22 }
 0x12a   :  { %1033 = vmatprep.mubr.f32.mxu0 %v387_v7  ;;  %4433 = vmatprep.subr.bf16.mxu0 %v4432_v9  ;;  %v735_v30 = vld [vmem:[#allocation7 + $0x4c8] sm:$0xff]  ;;  %v718_v37 = vld [vmem:[#allocation7 + $0x440] sm:$0xff]  ;;  %v736_v44 = vld [vmem:[#allocation7 + $0x4d0] sm:$0xff] }
 0x12b   :  { %1138 = vmatprep.mubr.f32.mxu1 %v435_v17  ;;  %v399_v32 = vld [vmem:[#allocation2 + $0x6d] ss:$2 sm:$0xff]  ;;  %v413_v34 = vld [vmem:[#allocation2 + $0x36] ss:$2 sm:$0xff]  ;;  %v4440_v40 = vpack.c.bf16 %v735_v30, %v734_v27  ;;  %v401_v42 = vld [vmem:[#allocation2 + $0x7d] ss:$2 sm:$0xff] }
 0x12c   :  { %1034 = vmatmul.mubr.f32.gmra.mrb[20].mxu0 %v363_v13  ;;  %v375_v35 = vld [vmem:[#allocation2 + $0x6c] ss:$2 sm:$0xff]  ;;  %v447_v39 = vld [vmem:[#allocation2 + $0x6f] ss:$2 sm:$0xff]  ;;  %v377_v43 = vld [vmem:[#allocation2 + $0x7c] ss:$2 sm:$0xff] }
 0x12d   :  { %4435 = vmatpush3.bf16.msra.mxu0 %v4434_v20  ;;  %1139 = vmatmul.mubr.f32.gmra.mrb[20].mxu1 %v411_v18  ;;  %v719_v38 = vld [vmem:[#allocation7 + $0x448] sm:$0xff]  ;;  %v737_v45 = vld [vmem:[#allocation7 + $0x4d8] sm:$0xff]  ;;  %v720_v50 = vld [vmem:[#allocation7 + $0x450] sm:$0xff] }
 0x12e   :  { %1038 = vmatprep.mubr.f32.mxu0 %v389_v21  ;;  %4437 = vmatprep.subr.bf16.mxu0 %v4436_v25  ;;  %v423_v41 = vld [vmem:[#allocation2 + $0x6e] ss:$2 sm:$0xff]  ;;  %v449_v46 = vld [vmem:[#allocation2 + $0x7f] ss:$2 sm:$0xff]  ;;  %v425_v47 = vld [vmem:[#allocation2 + $0x7e] ss:$2 sm:$0xff]  ;;  %v4442_v48 = vpack.c.bf16 %v719_v38, %v718_v37  ;;  %v4444_v49 = vpack.c.bf16 %v737_v45, %v736_v44 }
 0x12f   :  { %1143 = vmatprep.mubr.f32.mxu1 %v437_v33  ;;  %v721_v51 = vld [vmem:[#allocation7 + $0x458] sm:$0xff]  ;;  %v738_v52 = vld [vmem:[#allocation7 + $0x4e0] sm:$0xff]  ;;  %v739_v53 = vld [vmem:[#allocation7 + $0x4e8] sm:$0xff] }
 0x130   :  { %1039 = vmatmul.mubr.f32.gmra.mrb[22].mxu0 %v365_v29  ;;  %v491_v54 = vld [vmem:[#allocation2 + $0x51] ss:$2 sm:$0xff]  ;;  %v467_v55 = vld [vmem:[#allocation2 + $0x50] ss:$2 sm:$0xff]  ;;  %v493_v56 = vld [vmem:[#allocation2 + $0x61] ss:$2 sm:$0xff]  ;;  %v4446_v58 = vpack.c.bf16 %v721_v51, %v720_v50  ;;  %v4448_v62 = vpack.c.bf16 %v739_v53, %v738_v52 }
 0x131   :  { %4439 = vmatpush3.bf16.msra.mxu0 %v4438_v36  ;;  %1144 = vmatmul.mubr.f32.gmra.mrb[22].mxu1 %v413_v34  ;;  %v469_v57 = vld [vmem:[#allocation2 + $0x60] ss:$2 sm:$0xff]  ;;  %v495_v59 = vld [vmem:[#allocation2 + $0x71] ss:$2 sm:$0xff]  ;;  %v471_v60 = vld [vmem:[#allocation2 + $0x70] ss:$2 sm:$0xff] }
 0x132   :  { %1043 = vmatprep.mubr.f32.mxu0 %v395_v11  ;;  %4441 = vmatprep.subr.bf16.mxu0 %v4440_v40  ;;  %v497_v61 = vld [vmem:[#allocation2 + $0x81] ss:$2 sm:$0xff]  ;;  %v722_v63 = vld [vmem:[#allocation7 + $0x460] sm:$0xff]  ;;  %v723_v0 = vld [vmem:[#allocation7 + $0x468] sm:$0xff] }
 0x133   :  { %1148 = vmatprep.mubr.f32.mxu1 %v443_v16  ;;  %v473_v1 = vld [vmem:[#allocation2 + $0x80] ss:$2 sm:$0xff]  ;;  %v4450_v4 = vpack.c.bf16 %v723_v0, %v722_v63  ;;  %v479_v9 = vld [vmem:[#allocation2 + $0x9] ss:$2 sm:$0xff]  ;;  %v481_v11 = vld [vmem:[#allocation2 + $0x19] ss:$2 sm:$0xff] }
 0x134   :  { %1044 = vmatmul.mubr.f32.gmra.mrb[24].mxu0 %v371_v12  ;;  %v740_v2 = vld [vmem:[#allocation7 + $0x4f0] sm:$0xff]  ;;  %v741_v3 = vld [vmem:[#allocation7 + $0x4f8] sm:$0xff]  ;;  %v1473_v17 = vld [vmem:[#allocation11 + $0x80] sm:$0xff] }
 0x135   :  { %4443 = vmatpush3.bf16.msra.mxu0 %v4442_v48  ;;  %1149 = vmatmul.mubr.f32.gmra.mrb[24].mxu1 %v419_v19  ;;  %v4452_v5 = vpack.c.bf16 %v741_v3, %v740_v2  ;;  %v724_v6 = vld [vmem:[#allocation7 + $0x470] sm:$0xff]  ;;  %v725_v7 = vld [vmem:[#allocation7 + $0x478] sm:$0xff]  ;;  %v1505_v19 = vld [vmem:[#allocation11 + $0x180] sm:$0xff] }
 0x136   :  { %1048 = vmatprep.mubr.f32.mxu0 %v397_v23  ;;  %4445 = vmatprep.subr.bf16.mxu0 %v4444_v49  ;;  %v4454_v8 = vpack.c.bf16 %v725_v7, %v724_v6  ;;  %v455_v10 = vld [vmem:[#allocation2 + $0x8] ss:$2 sm:$0xff]  ;;  %v457_v12 = vld [vmem:[#allocation2 + $0x18] ss:$2 sm:$0xff]  ;;  %v483_v13 = vld [vmem:[#allocation2 + $0x29] ss:$2 sm:$0xff] }
 0x137   :  { %1153 = vmatprep.mubr.f32.mxu1 %v445_v28  ;;  %v459_v14 = vld [vmem:[#allocation2 + $0x28] ss:$2 sm:$0xff]  ;;  %v485_v15 = vld [vmem:[#allocation2 + $0x39] ss:$2 sm:$0xff]  ;;  %v461_v16 = vld [vmem:[#allocation2 + $0x38] ss:$2 sm:$0xff] }
 0x138   :  { %1049 = vmatmul.mubr.f32.gmra.mrb[26].mxu0 %v5732_v24  ;;  %v1474_v18 = vld [vmem:[#allocation11 + $0x88] sm:$0xff]  ;;  %v1457_v22 = vld [vmem:[#allocation11] sm:$0xff]  ;;  %v1475_v29 = vld [vmem:[#allocation11 + $0x90] sm:$0xff] }
 0x139   :  { %4447 = vmatpush3.bf16.msra.mxu0 %v4446_v58  ;;  %1154 = vmatmul.mubr.f32.gmra.mrb[26].mxu1 %v421_v31  ;;  %v4456_v20 = vpack.c.bf16 %v1474_v18, %v1473_v17  ;;  %v1506_v21 = vld [vmem:[#allocation11 + $0x188] sm:$0xff]  ;;  %v1489_v26 = vld [vmem:[#allocation11 + $0x100] sm:$0xff]  ;;  %v1476_v30 = vld [vmem:[#allocation11 + $0x98] sm:$0xff] }
 0x13a   :  { %1053 = vmatprep.mubr.f32.mxu0 %v399_v32  ;;  %4449 = vmatprep.subr.bf16.mxu0 %v4448_v62  ;;  %v1458_v23 = vld [vmem:[#allocation11 + $0x8] sm:$0xff]  ;;  %v4488_v24 = vpack.c.bf16 %v1506_v21, %v1505_v19  ;;  %v1507_v31 = vld [vmem:[#allocation11 + $0x190] sm:$0xff]  ;;  %v4460_v32 = vpack.c.bf16 %v1476_v30, %v1475_v29  ;;  %v1508_v33 = vld [vmem:[#allocation11 + $0x198] sm:$0xff] }
 0x13b   :  { %1158 = vmatprep.mubr.f32.mxu1 %v447_v39  ;;  %v4458_v25 = vpack.c.bf16 %v1458_v23, %v1457_v22  ;;  %v1490_v27 = vld [vmem:[#allocation11 + $0x108] sm:$0xff]  ;;  %4457 = vmatprep.subr.bf16.mxu1 %v4456_v20  ;;  %v1459_v34 = vld [vmem:[#allocation11 + $0x10] sm:$0xff]  ;;  %v4492_v36 = vpack.c.bf16 %v1508_v33, %v1507_v31  ;;  %v1492_v39 = vld [vmem:[#allocation11 + $0x118] sm:$0xff] }
 0x13c   :  { %1054 = vmatmul.mubr.f32.gmra.mrb[28].mxu0 %v375_v35  ;;  %v4490_v28 = vpack.c.bf16 %v1490_v27, %v1489_v26  ;;  %v1460_v35 = vld [vmem:[#allocation11 + $0x18] sm:$0xff]  ;;  %v1491_v38 = vld [vmem:[#allocation11 + $0x110] sm:$0xff]  ;;  %v1510_v45 = vld [vmem:[#allocation11 + $0x1a8] sm:$0xff] }
 0x13d   :  { %4451 = vmatpush3.bf16.msra.mxu0 %v4450_v4  ;;  %1159 = vmatmul.mubr.f32.gmra.mrb[28].mxu1 %v423_v41  ;;  %v4462_v37 = vpack.c.bf16 %v1460_v35, %v1459_v34  ;;  %v4494_v40 = vpack.c.bf16 %v1492_v39, %v1491_v38  ;;  %v1477_v41 = vld [vmem:[#allocation11 + $0xa0] sm:$0xff]  ;;  %v1494_v51 = vld [vmem:[#allocation11 + $0x128] sm:$0xff]  ;;  %v1479_v53 = vld [vmem:[#allocation11 + $0xb0] sm:$0xff] }
 0x13e   :  { %1058 = vmatprep.mubr.f32.mxu0 %v401_v42  ;;  %4453 = vmatprep.subr.bf16.mxu0 %v4452_v5  ;;  %v1478_v42 = vld [vmem:[#allocation11 + $0xa8] sm:$0xff]  ;;  %v1493_v50 = vld [vmem:[#allocation11 + $0x120] sm:$0xff]  ;;  %v1463_v58 = vld [vmem:[#allocation11 + $0x30] sm:$0xff] }
 0x13f   :  { %1163 = vmatprep.mubr.f32.mxu1 %v449_v46  ;;  %4459 = vmatpush3.bf16.msra.mxu1 %v4458_v25  ;;  %v4464_v44 = vpack.c.bf16 %v1478_v42, %v1477_v41  ;;  %v1461_v46 = vld [vmem:[#allocation11 + $0x20] sm:$0xff]  ;;  %v4498_v52 = vpack.c.bf16 %v1494_v51, %v1493_v50  ;;  %v1495_v62 = vld [vmem:[#allocation11 + $0x130] sm:$0xff]  ;;  %v1496_v63 = vld [vmem:[#allocation11 + $0x138] sm:$0xff] }
 0x140   :  { %1059 = vmatmul.mubr.f32.gmra.mrb[30].mxu0 %v377_v43  ;;  %4461 = vmatprep.subr.bf16.mxu1 %v4460_v32  ;;  %v1509_v43 = vld [vmem:[#allocation11 + $0x1a0] sm:$0xff]  ;;  %v4502_v0 = vpack.c.bf16 %v1496_v63, %v1495_v62  ;;  %v1482_v2 = vld [vmem:[#allocation11 + $0xc8] sm:$0xff]  ;;  %v1516_v17 = vld [vmem:[#allocation11 + $0x1d8] sm:$0xff] }
 0x141   :  { %4455 = vmatpush3.bf16.msra.mxu0 %v4454_v8  ;;  %1164 = vmatmul.mubr.f32.gmra.mrb[30].mxu1 %v425_v47  ;;  %v1462_v47 = vld [vmem:[#allocation11 + $0x28] sm:$0xff]  ;;  %v4496_v48 = vpack.c.bf16 %v1510_v45, %v1509_v43  ;;  %v1513_v3 = vld [vmem:[#allocation11 + $0x1c0] sm:$0xff]  ;;  %v1467_v18 = vld [vmem:[#allocation11 + $0x50] sm:$0xff] }
 0x142   :  { %1233 = vmatprep.mubr.f32.mxu0 %v479_v9  ;;  %4489 = vmatprep.subr.bf16.mxu0 %v4488_v24  ;;  %v4466_v49 = vpack.c.bf16 %v1462_v47, %v1461_v46  ;;  %v1514_v5 = vld [vmem:[#allocation11 + $0x1c8] sm:$0xff]  ;;  %v1465_v6 = vld [vmem:[#allocation11 + $0x40] sm:$0xff]  ;;  %v1468_v19 = vld [vmem:[#allocation11 + $0x58] sm:$0xff] }
 0x143   :  { %4463 = vmatpush3.bf16.msra.mxu1 %v4462_v37  ;;  %v1466_v7 = vld [vmem:[#allocation11 + $0x48] sm:$0xff]  ;;  %v4504_v8 = vpack.c.bf16 %v1514_v5, %v1513_v3  ;;  %v4478_v21 = vpack.c.bf16 %v1468_v19, %v1467_v18  ;;  %v1499_v22 = vld [vmem:[#allocation11 + $0x150] sm:$0xff]  ;;  %v1500_v23 = vld [vmem:[#allocation11 + $0x158] sm:$0xff] }
 0x144   :  { %1234 = vmatmul.mubr.f32.vlgmr.msra.gmra.mrb[32].mxu0 %v455_v10  ;;  %4465 = vmatprep.subr.bf16.mxu1 %v4464_v44  ;;  %v4474_v9 = vpack.c.bf16 %v1466_v7, %v1465_v6  ;;  %v1497_v10 = vld [vmem:[#allocation11 + $0x140] sm:$0xff]  ;;  %v4510_v24 = vpack.c.bf16 %v1500_v23, %v1499_v22  ;;  %v1486_v26 = vld [vmem:[#allocation11 + $0xe8] sm:$0xff]  ;;  %v1487_v37 = vld [vmem:[#allocation11 + $0xf0] sm:$0xff] }
 0x145   :  { %1238 = vmatprep.mubr.f32.mxu0 %v481_v11  ;;  %4491 = vmatpush3.bf16.msra.mxu0 %v4490_v28  ;;  %v1498_v11 = vld [vmem:[#allocation11 + $0x148] sm:$0xff]  ;;  %v1485_v25 = vld [vmem:[#allocation11 + $0xe0] sm:$0xff]  ;;  %v1488_v38 = vld [vmem:[#allocation11 + $0xf8] sm:$0xff] }
 0x146   :  { %4493 = vmatprep.subr.bf16.mxu0 %v4492_v36  ;;  %v1517_v27 = vld [vmem:[#allocation11 + $0x1e0] sm:$0xff]  ;;  %v4480_v28 = vpack.c.bf16 %v1486_v26, %v1485_v25  ;;  %v1518_v29 = vld [vmem:[#allocation11 + $0x1e8] sm:$0xff]  ;;  %v1519_v39 = vld [vmem:[#allocation11 + $0x1f0] sm:$0xff] }
 0x147   :  { %4467 = vmatpush3.bf16.msra.mxu1 %v4466_v49  ;;  %v1469_v30 = vld [vmem:[#allocation11 + $0x60] sm:$0xff]  ;;  %v1470_v31 = vld [vmem:[#allocation11 + $0x68] sm:$0xff]  ;;  %v4512_v32 = vpack.c.bf16 %v1518_v29, %v1517_v27  ;;  %v1520_v41 = vld [vmem:[#allocation11 + $0x1f8] sm:$0xff] }
 0x148   :  { %1239 = vmatmul.mubr.f32.gmra.mrb[34].mxu0 %v457_v12  ;;  %v4506_v12 = vpack.c.bf16 %v1498_v11, %v1497_v10  ;;  %v4482_v33 = vpack.c.bf16 %v1470_v31, %v1469_v30  ;;  %v1501_v34 = vld [vmem:[#allocation11 + $0x160] sm:$0xff]  ;;  %v1502_v35 = vld [vmem:[#allocation11 + $0x168] sm:$0xff]  ;;  %v1471_v42 = vld [vmem:[#allocation11 + $0x70] sm:$0xff]  ;;  %v4516_v44 = vpack.c.bf16 %v1520_v41, %v1519_v39 }
 0x149   :  { %1243 = vmatprep.mubr.f32.mxu0 %v483_v13  ;;  %4495 = vmatpush3.bf16.msra.mxu0 %v4494_v40  ;;  %v1483_v13 = vld [vmem:[#allocation11 + $0xd0] sm:$0xff]  ;;  %v4514_v36 = vpack.c.bf16 %v1502_v35, %v1501_v34  ;;  %v4484_v40 = vpack.c.bf16 %v1488_v38, %v1487_v37  ;;  %v1472_v43 = vld [vmem:[#allocation11 + $0x78] sm:$0xff]  ;;  %v1537_v49 = vld [vmem:[#allocation11 + $0x280] sm:$0xff] }
 0x14a   :  { %4497 = vmatprep.subr.bf16.mxu0 %v4496_v48  ;;  %v4486_v45 = vpack.c.bf16 %v1472_v43, %v1471_v42  ;;  %v1503_v46 = vld [vmem:[#allocation11 + $0x170] sm:$0xff]  ;;  %v1504_v47 = vld [vmem:[#allocation11 + $0x178] sm:$0xff]  ;;  %v1538_v50 = vld [vmem:[#allocation11 + $0x288] sm:$0xff] }
 0x14b   :  { %v4518_v48 = vpack.c.bf16 %v1504_v47, %v1503_v46  ;;  %v1569_v51 = vld [vmem:[#allocation11 + $0x380] sm:$0xff] }
 0x14c   :  { %1244 = vmatmul.mubr.f32.gmra.mrb[36].mxu0 %v459_v14  ;;  %v1484_v14 = vld [vmem:[#allocation11 + $0xd8] sm:$0xff] }
 0x14d   :  { %1248 = vmatprep.mubr.f32.mxu0 %v485_v15  ;;  %4499 = vmatpush3.bf16.msra.mxu0 %v4498_v52  ;;  %v1515_v15 = vld [vmem:[#allocation11 + $0x1d0] sm:$0xff]  ;;  %v4520_v52 = vpack.c.bf16 %v1538_v50, %v1537_v49 }
 0x14e   :  { %v4508_v20 = vpack.c.bf16 %v1516_v17, %v1515_v15 }
 0x150   :  { %1249 = vmatmul.mubr.f32.gmra.mrb[38].mxu0 %v461_v16  ;;  %v4476_v16 = vpack.c.bf16 %v1484_v14, %v1483_v13 }
 0x151   :  { %1253 = vmatprep.mubr.f32.mxu0 %v491_v54  ;;  %v1480_v54 = vld [vmem:[#allocation11 + $0xb8] sm:$0xff] }
 0x154   :  { %1254 = vmatmul.mubr.f32.gmra.mrb[40].mxu0 %v467_v55  ;;  %v1511_v55 = vld [vmem:[#allocation11 + $0x1b0] sm:$0xff] }
 0x155   :  { %1258 = vmatprep.mubr.f32.mxu0 %v493_v56  ;;  %v4468_v56 = vpack.c.bf16 %v1480_v54, %v1479_v53  ;;  %v1570_v53 = vld [vmem:[#allocation11 + $0x388] sm:$0xff] }
 0x156   :  { %v4552_v54 = vpack.c.bf16 %v1570_v53, %v1569_v51 }
 0x157   :  { %4469 = vmatprep.subr.bf16.mxu1 %v4468_v56  ;;  %v3601_v56 = vld [vmem:[#allocation9] ss:$0 sm:$0xff] }
 0x158   :  { %1259 = vmatmul.mubr.f32.gmra.mrb[42].mxu0 %v469_v57  ;;  %v1512_v57 = vld [vmem:[#allocation11 + $0x1b8] sm:$0xff] }
 0x159   :  { %1263 = vmatprep.mubr.f32.mxu0 %v495_v59  ;;  %v1464_v59 = vld [vmem:[#allocation11 + $0x38] sm:$0xff] }
 0x15c   :  { %1264 = vmatmul.mubr.f32.gmra.mrb[44].mxu0 %v471_v60  ;;  %v4500_v60 = vpack.c.bf16 %v1512_v57, %v1511_v55 }
 0x15d   :  { %1268 = vmatprep.mubr.f32.mxu0 %v497_v61  ;;  %v4470_v61 = vpack.c.bf16 %v1464_v59, %v1463_v58 }
 0x15e   :  { %4501 = vmatprep.subr.bf16.mxu0 %v4500_v60 }
 0x15f   :  { %4471 = vmatpush3.bf16.msra.mxu1 %v4470_v61  ;;  %4503 = vmatpush3.bf16.msra.mxu0 %v4502_v0 }
 0x160   :  { %1269 = vmatmul.mubr.f32.gmra.mrb[46].mxu0 %v473_v1  ;;  %v1481_v1 = vld [vmem:[#allocation11 + $0xc0] sm:$0xff]  ;;  %4505 = vmatprep.subr.bf16.mxu0 %v4504_v8 }
 0x161   :  { %v4472_v4 = vpack.c.bf16 %v1482_v2, %v1481_v1 }
 0x163   :  { %4473 = vmatprep.subr.bf16.mxu1 %v4472_v4  ;;  %4507 = vmatpush3.bf16.msra.mxu0 %v4506_v12 }
 0x164   :  { %4475 = vmatpush3.bf16.msra.mxu1 %v4474_v9  ;;  %4509 = vmatprep.subr.bf16.mxu0 %v4508_v20 }
 0x165   :  { %4477 = vmatprep.subr.bf16.mxu1 %v4476_v16 }
 0x167   :  { %4511 = vmatpush3.bf16.msra.mxu0 %v4510_v24 }
 0x168   :  { %4479 = vmatpush3.bf16.msra.mxu1 %v4478_v21  ;;  %4513 = vmatprep.subr.bf16.mxu0 %v4512_v32 }
 0x169   :  { %4481 = vmatprep.subr.bf16.mxu1 %v4480_v28 }
 0x16b   :  { %4515 = vmatpush3.bf16.msra.mxu0 %v4514_v36 }
 0x16c   :  { %4483 = vmatpush3.bf16.msra.mxu1 %v4482_v33  ;;  %4517 = vmatprep.subr.bf16.mxu0 %v4516_v44 }
 0x16d   :  { %4485 = vmatprep.subr.bf16.mxu1 %v4484_v40 }
 0x16f   :  { %4519 = vmatpush3.bf16.msra.mxu0 %v4518_v48 }
 0x170   :  { %4487 = vmatpush3.bf16.msra.mxu1 %v4486_v45  ;;  %4553 = vmatprep.subr.bf16.mxu0 %v4552_v54 }
 0x171   :  { %4521 = vmatprep.subr.bf16.mxu1 %v4520_v52 }
 0x1d1   :  { %v3638_v55 = vpop.f32.mrb[0].mxu0 }
 0x1d2   :  { %v3639_v57 = vpop.f32.mrb[1].mxu0  ;;  %v3694_v58 = vpop.f32.mrb[0].mxu1 }
 0x1d3   :  { %v3640_v59 = vadd.f32 %v3639_v57, %v3638_v55  ;;  %v3695_v60 = vpop.f32.mrb[1].mxu1 }
 0x1d4   :  { %v3696_v61 = vadd.f32 %v3695_v60, %v3694_v58 }
 0x1d5   :  { %v816_v62 = vadd.f32 %v3640_v59, %v3601_v56  ;;  %v3641_v63 = vpop.f32.mrb[2].mxu0 }
 0x1d6   :  { %v3642_v0 = vpop.f32.mrb[3].mxu0 }
 0x1d7   :  { %v3697_v1 = vpop.f32.mrb[2].mxu1  ;;  %v921_v2 = vadd.f32 %v3696_v61, %v816_v62  ;;  %v3643_v3 = vadd.f32 %v3642_v0, %v3641_v63 }
 0x1d8   :  { %v3698_v4 = vpop.f32.mrb[3].mxu1 }
 0x1d9   :  { %v3699_v5 = vadd.f32 %v3698_v4, %v3697_v1  ;;  %v821_v6 = vadd.f32 %v3643_v3, %v3601_v56  ;;  %v3644_v7 = vpop.f32.mrb[4].mxu0 }
 0x1da   :  { %v3645_v8 = vpop.f32.mrb[5].mxu0 }
 0x1db   :  { %v3700_v9 = vpop.f32.mrb[4].mxu1  ;;  %v926_v10 = vadd.f32 %v3699_v5, %v821_v6  ;;  %v3646_v11 = vadd.f32 %v3645_v8, %v3644_v7 }
 0x1dc   :  { %v3701_v12 = vpop.f32.mrb[5].mxu1 }
 0x1dd   :  { %v3702_v13 = vadd.f32 %v3701_v12, %v3700_v9  ;;  %v826_v14 = vadd.f32 %v3646_v11, %v3601_v56 }
 0x1df   :  { %v3647_v15 = vpop.f32.mrb[6].mxu0  ;;  %v931_v18 = vadd.f32 %v3702_v13, %v826_v14 }
 0x1e0   :  { %v3648_v16 = vpop.f32.mrb[7].mxu0 }
 0x1e1   :  { %v3703_v17 = vpop.f32.mrb[6].mxu1  ;;  %v3649_v19 = vadd.f32 %v3648_v16, %v3647_v15 }
 0x1e2   :  { %v3704_v20 = vpop.f32.mrb[7].mxu1 }
 0x1e3   :  { %v3705_v21 = vadd.f32 %v3704_v20, %v3703_v17  ;;  %v831_v22 = vadd.f32 %v3649_v19, %v3601_v56  ;;  %v3650_v23 = vpop.f32.mrb[8].mxu0 }
 0x1e4   :  { %v3651_v24 = vpop.f32.mrb[9].mxu0 }
 0x1e5   :  { %v3706_v25 = vpop.f32.mrb[8].mxu1  ;;  %v936_v26 = vadd.f32 %v3705_v21, %v831_v22  ;;  %v3652_v27 = vadd.f32 %v3651_v24, %v3650_v23 }
 0x1e6   :  { %v3707_v28 = vpop.f32.mrb[9].mxu1 }
 0x1e7   :  { %v3708_v29 = vadd.f32 %v3707_v28, %v3706_v25  ;;  %v836_v30 = vadd.f32 %v3652_v27, %v3601_v56 }
 0x1e8   :  { %v3653_v31 = vpop.f32.mrb[10].mxu0 }
 0x1e9   :  { %v3654_v32 = vpop.f32.mrb[11].mxu0  ;;  %v941_v34 = vadd.f32 %v3708_v29, %v836_v30 }
 0x1ea   :  { %v3709_v33 = vpop.f32.mrb[10].mxu1  ;;  %v3655_v35 = vadd.f32 %v3654_v32, %v3653_v31 }
 0x1eb   :  { %v3710_v36 = vpop.f32.mrb[11].mxu1 }
 0x1ec   :  { %v3711_v37 = vadd.f32 %v3710_v36, %v3709_v33  ;;  %v841_v38 = vadd.f32 %v3655_v35, %v3601_v56 }
 0x1ee   :  { %v3656_v39 = vpop.f32.mrb[12].mxu0  ;;  %v946_v42 = vadd.f32 %v3711_v37, %v841_v38 }
 0x1ef   :  { %v3657_v40 = vpop.f32.mrb[13].mxu0  ;;  %v3712_v41 = vpop.f32.mrb[12].mxu1 }
 0x1f0   :  { %v3658_v43 = vadd.f32 %v3657_v40, %v3656_v39  ;;  %v3713_v44 = vpop.f32.mrb[13].mxu1 }
 0x1f1   :  { %v3714_v45 = vadd.f32 %v3713_v44, %v3712_v41 }
 0x1f2   :  { %v846_v46 = vadd.f32 %v3658_v43, %v3601_v56 }
 0x1f3   :  { %v3659_v47 = vpop.f32.mrb[14].mxu0 }
 0x1f4   :  { %v3660_v48 = vpop.f32.mrb[15].mxu0  ;;  %v3715_v49 = vpop.f32.mrb[14].mxu1  ;;  %v951_v50 = vadd.f32 %v3714_v45, %v846_v46 }
 0x1f5   :  { %v3661_v51 = vadd.f32 %v3660_v48, %v3659_v47  ;;  %v3716_v52 = vpop.f32.mrb[15].mxu1 }
 0x1f6   :  { %v3717_v53 = vadd.f32 %v3716_v52, %v3715_v49 }
 0x1f7   :  { %v851_v54 = vadd.f32 %v3661_v51, %v3601_v56  ;;  %v3750_v55 = vpop.f32.mrb[16].mxu0 }
 0x1f8   :  { %v3751_v57 = vpop.f32.mrb[17].mxu0  ;;  %v3806_v58 = vpop.f32.mrb[16].mxu1 }
 0x1f9   :  { %v956_v59 = vadd.f32 %v3717_v53, %v851_v54  ;;  %v3752_v60 = vadd.f32 %v3751_v57, %v3750_v55  ;;  %v3807_v61 = vpop.f32.mrb[17].mxu1 }
 0x1fa   :  { %v3808_v62 = vadd.f32 %v3807_v61, %v3806_v58 }
 0x1fb   :  { %v1026_v63 = vadd.f32 %v3752_v60, %v921_v2  ;;  %v3753_v0 = vpop.f32.mrb[18].mxu0 }
 0x1fc   :  { %v3754_v1 = vpop.f32.mrb[19].mxu0  ;;  %v3809_v3 = vpop.f32.mrb[18].mxu1 }
 0x1fd   :  { %v1131_v4 = vadd.f32 %v3808_v62, %v1026_v63  ;;  %v3755_v5 = vadd.f32 %v3754_v1, %v3753_v0  ;;  %v3810_v6 = vpop.f32.mrb[19].mxu1 }
 0x1fe   :  { %v3811_v7 = vadd.f32 %v3810_v6, %v3809_v3 }
 0x1ff   :  { %v1031_v8 = vadd.f32 %v3755_v5, %v926_v10  ;;  %v3756_v9 = vpop.f32.mrb[20].mxu0 }
 0x200   :  { %v3757_v11 = vpop.f32.mrb[21].mxu0  ;;  %v3812_v12 = vpop.f32.mrb[20].mxu1 }
 0x201   :  { %v1136_v56 = vadd.f32 %v3811_v7, %v1031_v8  ;;  %v3758_v13 = vadd.f32 %v3757_v11, %v3756_v9  ;;  %v3813_v14 = vpop.f32.mrb[21].mxu1 }
 0x202   :  { %v3814_v15 = vadd.f32 %v3813_v14, %v3812_v12 }
 0x203   :  { %v1036_v16 = vadd.f32 %v3758_v13, %v931_v18  ;;  %v3759_v17 = vpop.f32.mrb[22].mxu0 }
 0x204   :  { %v3760_v19 = vpop.f32.mrb[23].mxu0  ;;  %v3815_v20 = vpop.f32.mrb[22].mxu1 }
 0x205   :  { %v1141_v2 = vadd.f32 %v3814_v15, %v1036_v16  ;;  %v3761_v21 = vadd.f32 %v3760_v19, %v3759_v17  ;;  %v3816_v22 = vpop.f32.mrb[23].mxu1  ;;  %v1521_v19 = vld [vmem:[#allocation11 + $0x200] sm:$0xff] }
 0x206   :  { %v3817_v23 = vadd.f32 %v3816_v22, %v3815_v20  ;;  %v1522_v20 = vld [vmem:[#allocation11 + $0x208] sm:$0xff] }
 0x207   :  { %v1041_v24 = vadd.f32 %v3761_v21, %v936_v26  ;;  %v3762_v25 = vpop.f32.mrb[24].mxu0  ;;  %v1553_v21 = vld [vmem:[#allocation11 + $0x300] sm:$0xff] }
 0x208   :  { %v3763_v27 = vpop.f32.mrb[25].mxu0  ;;  %v3818_v28 = vpop.f32.mrb[24].mxu1 }
 0x209   :  { %v1146_v10 = vadd.f32 %v3817_v23, %v1041_v24  ;;  %v3764_v29 = vadd.f32 %v3763_v27, %v3762_v25  ;;  %v3819_v30 = vpop.f32.mrb[25].mxu1  ;;  %v1539_v23 = vld [vmem:[#allocation11 + $0x290] sm:$0xff]  ;;  %v1540_v24 = vld [vmem:[#allocation11 + $0x298] sm:$0xff] }
 0x20a   :  { %v3820_v31 = vadd.f32 %v3819_v30, %v3818_v28  ;;  %v1571_v28 = vld [vmem:[#allocation11 + $0x390] sm:$0xff]  ;;  %v1524_v30 = vld [vmem:[#allocation11 + $0x218] sm:$0xff] }
 0x20b   :  { %v1046_v32 = vadd.f32 %v3764_v29, %v941_v34  ;;  %v3765_v33 = vpop.f32.mrb[26].mxu0  ;;  %v1523_v29 = vld [vmem:[#allocation11 + $0x210] sm:$0xff] }
 0x20c   :  { %v3766_v35 = vpop.f32.mrb[27].mxu0  ;;  %v3821_v36 = vpop.f32.mrb[26].mxu1 }
 0x20d   :  { %v5735_v18 = vadd.f32 %v3820_v31, %v1046_v32  ;;  %v3767_v37 = vadd.f32 %v3766_v35, %v3765_v33  ;;  %v3822_v38 = vpop.f32.mrb[27].mxu1  ;;  %v1555_v31 = vld [vmem:[#allocation11 + $0x310] sm:$0xff]  ;;  %v1556_v32 = vld [vmem:[#allocation11 + $0x318] sm:$0xff] }
 0x20e   :  { %v3823_v39 = vadd.f32 %v3822_v38, %v3821_v36  ;;  %v4522_v36 = vpack.c.bf16 %v1522_v20, %v1521_v19  ;;  %v1541_v38 = vld [vmem:[#allocation11 + $0x2a0] sm:$0xff] }
 0x20f   :  { %v1051_v40 = vadd.f32 %v3767_v37, %v946_v42  ;;  %v3768_v41 = vpop.f32.mrb[28].mxu0  ;;  %v1577_v19 = vld [vmem:[#allocation11 + $0x3c0] sm:$0xff] }
 0x210   :  { %v3769_v43 = vpop.f32.mrb[29].mxu0  ;;  %v3824_v26 = vpop.f32.mrb[28].mxu1 }
 0x211   :  { %v5737_v44 = vadd.f32 %v3823_v39, %v1051_v40  ;;  %v3770_v45 = vadd.f32 %v3769_v43, %v3768_v41  ;;  %v3825_v46 = vpop.f32.mrb[29].mxu1  ;;  %v1542_v39 = vld [vmem:[#allocation11 + $0x2a8] sm:$0xff]  ;;  %v1573_v40 = vld [vmem:[#allocation11 + $0x3a0] sm:$0xff] }
 0x212   :  { %v3826_v47 = vadd.f32 %v3825_v46, %v3824_v26 }
 0x213   :  { %v1056_v48 = vadd.f32 %v3770_v45, %v951_v50  ;;  %v3771_v49 = vpop.f32.mrb[30].mxu0  ;;  %v4524_v45 = vpack.c.bf16 %v1540_v24, %v1539_v23  ;;  %v1578_v24 = vld [vmem:[#allocation11 + $0x3c8] sm:$0xff] }
 0x214   :  { %v3772_v34 = vpop.f32.mrb[31].mxu0  ;;  %v3827_v51 = vpop.f32.mrb[30].mxu1 }
 0x215   :  { %v5739_v52 = vadd.f32 %v3826_v47, %v1056_v48  ;;  %v3773_v53 = vadd.f32 %v3772_v34, %v3771_v49  ;;  %v3828_v54 = vpop.f32.mrb[31].mxu1  ;;  %v1574_v47 = vld [vmem:[#allocation11 + $0x3a8] sm:$0xff] }
 0x216   :  { %v3829_v55 = vadd.f32 %v3828_v54, %v3827_v51 }
 0x217   :  { %v1061_v57 = vadd.f32 %v3773_v53, %v956_v59  ;;  %v3862_v58 = vpop.f32.mrb[32].mxu0 }
 0x218   :  { %v3863_v42 = vpop.f32.mrb[33].mxu0 }
 0x219   :  { %v5741_v60 = vadd.f32 %v3829_v55, %v1061_v57  ;;  %v3864_v61 = vadd.f32 %v3863_v42, %v3862_v58  ;;  %v4558_v57 = vpack.c.bf16 %v1556_v32, %v1555_v31  ;;  %v1525_v58 = vld [vmem:[#allocation11 + $0x220] sm:$0xff]  ;;  %v1526_v42 = vld [vmem:[#allocation11 + $0x228] sm:$0xff] }
 0x21a   :  { %v1529_v32 = vld [vmem:[#allocation11 + $0x240] sm:$0xff] }
 0x21b   :  { %v1236_v62 = vadd.f32 %v3864_v61, %v1131_v4  ;;  %v3865_v63 = vpop.f32.mrb[34].mxu0  ;;  %v1557_v61 = vld [vmem:[#allocation11 + $0x320] sm:$0xff] }
 0x21c   :  { %v3866_v0 = vpop.f32.mrb[35].mxu0 }
 0x21d   :  { %v1274_v1 = vmul.f32 0.2, %v1236_v62  ;;  %v3867_v3 = vadd.f32 %v3866_v0, %v3865_v63  ;;  %v4528_v63 = vpack.c.bf16 %v1542_v39, %v1541_v38  ;;  %v4560_v0 = vpack.c.bf16 %v1574_v47, %v1573_v40  ;;  %v1547_v38 = vld [vmem:[#allocation11 + $0x2d0] sm:$0xff]  ;;  %v1548_v40 = vld [vmem:[#allocation11 + $0x2d8] sm:$0xff] }
 0x21f   :  { %v1282_v50 = vmax.f32 %v1236_v62, %v1274_v1  ;;  %v1241_v5 = vadd.f32 %v3867_v3, %v1136_v56  ;;  %v3868_v6 = vpop.f32.mrb[36].mxu0  ;;  %v1554_v56 = vld [vmem:[#allocation11 + $0x308] sm:$0xff]  ;;  %v1543_v3 = vld [vmem:[#allocation11 + $0x2b0] sm:$0xff] }
 0x220   :  { %v3869_v7 = vpop.f32.mrb[37].mxu0  ;;  %v4554_v37 = vpack.c.bf16 %v1554_v56, %v1553_v21  ;;  %v1558_v1 = vld [vmem:[#allocation11 + $0x328] sm:$0xff] }
 0x221   :  { %1290 = vst [vmem:[#allocation3 + $0x4] sm:$0xff] %v1282_v50  ;;  %v1275_v8 = vmul.f32 0.2, %v1241_v5  ;;  %v3870_v9 = vadd.f32 %v3869_v7, %v3868_v6  ;;  %v1544_v50 = vld [vmem:[#allocation11 + $0x2b8] sm:$0xff]  ;;  %v1575_v7 = vld [vmem:[#allocation11 + $0x3b0] sm:$0xff] }
 0x222   :  { %v4532_v56 = vpack.c.bf16 %v1544_v50, %v1543_v3  ;;  %v1534_v50 = vld [vmem:[#allocation11 + $0x268] sm:$0xff] }
 0x223   :  { %v1283_v11 = vmax.f32 %v1241_v5, %v1275_v8  ;;  %v1246_v12 = vadd.f32 %v3870_v9, %v1141_v2  ;;  %v3871_v59 = vpop.f32.mrb[38].mxu0  ;;  %v1572_v2 = vld [vmem:[#allocation11 + $0x398] sm:$0xff]  ;;  %v1527_v8 = vld [vmem:[#allocation11 + $0x230] sm:$0xff]  ;;  %v4530_v9 = vpack.c.bf16 %v1526_v42, %v1525_v58  ;;  %v4540_v58 = vpack.c.bf16 %v1548_v40, %v1547_v38  ;;  %v1586_v40 = vld [vmem:[#allocation11 + $0x408] sm:$0xff] }
 0x224   :  { %v3872_v13 = vpop.f32.mrb[39].mxu0  ;;  %v4556_v46 = vpack.c.bf16 %v1572_v2, %v1571_v28 }
 0x225   :  { %1291 = vst [vmem:[#allocation3 + $0xc] sm:$0xff] %v1283_v11  ;;  %v1276_v14 = vmul.f32 0.2, %v1246_v12  ;;  %v3873_v15 = vadd.f32 %v3872_v13, %v3871_v59  ;;  %v1528_v11 = vld [vmem:[#allocation11 + $0x238] sm:$0xff] }
 0x226   :  { %v1560_v59 = vld [vmem:[#allocation11 + $0x338] sm:$0xff]  ;;  %v4534_v2 = vpack.c.bf16 %v1528_v11, %v1527_v8  ;;  %v1551_v8 = vld [vmem:[#allocation11 + $0x2f0] sm:$0xff] }
 0x227   :  { %v1284_v16 = vmax.f32 %v1246_v12, %v1276_v14  ;;  %v1251_v4 = vadd.f32 %v3873_v15, %v1146_v10  ;;  %v3874_v17 = vpop.f32.mrb[40].mxu0  ;;  %v1559_v12 = vld [vmem:[#allocation11 + $0x330] sm:$0xff] }
 0x228   :  { %v3875_v22 = vpop.f32.mrb[41].mxu0  ;;  %v4566_v31 = vpack.c.bf16 %v1560_v59, %v1559_v12 }
 0x229   :  { %1292 = vst [vmem:[#allocation3 + $0x14] sm:$0xff] %v1284_v16  ;;  %v1277_v25 = vmul.f32 0.2, %v1251_v4  ;;  %v3876_v27 = vadd.f32 %v3875_v22, %v3874_v17  ;;  %v4562_v16 = vpack.c.bf16 %v1558_v1, %v1557_v61  ;;  %v1546_v17 = vld [vmem:[#allocation11 + $0x2c8] sm:$0xff] }
 0x22b   :  { %v1285_v33 = vmax.f32 %v1251_v4, %v1277_v25  ;;  %v1256_v10 = vadd.f32 %v3876_v27, %v5735_v18  ;;  %v3877_v35 = vpop.f32.mrb[42].mxu0  ;;  %v4526_v18 = vpack.c.bf16 %v1524_v30, %v1523_v29  ;;  %v1545_v4 = vld [vmem:[#allocation11 + $0x2c0] sm:$0xff] }
 0x22c   :  { %v3878_v41 = vpop.f32.mrb[43].mxu0  ;;  %v1310_v43 = vld [vmem:[#allocation3 + $0x1] ss:$2 sm:$0xff]  ;;  %v1298_v34 = vld [vmem:[#allocation3] ss:$2 sm:$0xff] }
 0x22d   :  { %v1334_v26 = vld [vmem:[#allocation3 + $0x3] ss:$2 sm:$0xff]  ;;  %1293 = vst [vmem:[#allocation3 + $0x1c] sm:$0xff] %v1285_v33  ;;  %v1278_v48 = vmul.f32 0.2, %v1256_v10  ;;  %v3879_v49 = vadd.f32 %v3878_v41, %v3877_v35  ;;  %1688 = vmatprep.mubr.f32.mxu1 %v1310_v43  ;;  %v4568_v35 = vpack.c.bf16 %v1578_v24, %v1577_v19  ;;  %v1579_v41 = vld [vmem:[#allocation11 + $0x3d0] sm:$0xff] }
 0x22e   :  { %1773 = vmatprep.mubr.f32.mxu0 %v1334_v26  ;;  %v1322_v51 = vld [vmem:[#allocation3 + $0x2] ss:$2 sm:$0xff]  ;;  %1689 = vmatmul.mubr.f32.vlgmr.msra.gmra.mrb[32].mxu1 %v1298_v34  ;;  %v1580_v43 = vld [vmem:[#allocation11 + $0x3d8] sm:$0xff]  ;;  %v1531_v26 = vld [vmem:[#allocation11 + $0x250] sm:$0xff] }
 0x22f   :  { %1774 = vmatmul.mubr.f32.vlgmr.msra.gmra.mrb[48].mxu0 %v1322_v51  ;;  %v1286_v53 = vmax.f32 %v1256_v10, %v1278_v48  ;;  %v1261_v54 = vadd.f32 %v3879_v49, %v5737_v44  ;;  %v3880_v55 = vpop.f32.mrb[44].mxu0  ;;  %4523 = vmatpush3.bf16.msra.mxu1 %v4522_v36  ;;  %v1576_v44 = vld [vmem:[#allocation11 + $0x3b8] sm:$0xff]  ;;  %v1530_v33 = vld [vmem:[#allocation11 + $0x248] sm:$0xff]  ;;  %v4536_v10 = vpack.c.bf16 %v1546_v17, %v1545_v4  ;;  %v1561_v36 = vld [vmem:[#allocation11 + $0x340] sm:$0xff] }
 0x230   :  { %4555 = vmatpush3.bf16.msra.mxu0 %v4554_v37  ;;  %v3881_v62 = vpop.f32.mrb[45].mxu0  ;;  %4525 = vmatprep.subr.bf16.mxu1 %v4524_v45  ;;  %v4564_v23 = vpack.c.bf16 %v1576_v44, %v1575_v7  ;;  %v1562_v37 = vld [vmem:[#allocation11 + $0x348] sm:$0xff]  ;;  %v1532_v45 = vld [vmem:[#allocation11 + $0x258] sm:$0xff]  ;;  %v4538_v48 = vpack.c.bf16 %v1530_v33, %v1529_v32  ;;  %v1549_v34 = vld [vmem:[#allocation11 + $0x2e0] sm:$0xff]  ;;  %v4572_v42 = vpack.c.bf16 %v1580_v43, %v1579_v41 }
 0x231   :  { %4557 = vmatprep.subr.bf16.mxu0 %v4556_v46  ;;  %1294 = vst [vmem:[#allocation3 + $0x2c] sm:$0xff] %v1286_v53  ;;  %v1279_v5 = vmul.f32 0.2, %v1261_v54  ;;  %v3882_v6 = vadd.f32 %v3881_v62, %v3880_v55  ;;  %v1564_v46 = vld [vmem:[#allocation11 + $0x358] sm:$0xff]  ;;  %v4570_v49 = vpack.c.bf16 %v1562_v37, %v1561_v36  ;;  %v1550_v51 = vld [vmem:[#allocation11 + $0x2e8] sm:$0xff]  ;;  %v4542_v1 = vpack.c.bf16 %v1532_v45, %v1531_v26  ;;  %v1567_v17 = vld [vmem:[#allocation11 + $0x370] sm:$0xff] }
 0x232   :  { %v1582_v53 = vld [vmem:[#allocation11 + $0x3e8] sm:$0xff]  ;;  %v4544_v7 = vpack.c.bf16 %v1550_v51, %v1549_v34  ;;  %v1536_v4 = vld [vmem:[#allocation11 + $0x278] sm:$0xff]  ;;  %v1603_v41 = vld [vmem:[#allocation11 + $0x490] sm:$0xff] }
 0x233   :  { %v1287_v13 = vmax.f32 %v1261_v54, %v1279_v5  ;;  %v1266_v14 = vadd.f32 %v3882_v6, %v5739_v52  ;;  %v3883_v15 = vpop.f32.mrb[46].mxu0  ;;  %4527 = vmatpush3.bf16.msra.mxu1 %v4526_v18  ;;  %v1581_v18 = vld [vmem:[#allocation11 + $0x3e0] sm:$0xff]  ;;  %v1566_v6 = vld [vmem:[#allocation11 + $0x368] sm:$0xff]  ;;  %v1604_v43 = vld [vmem:[#allocation11 + $0x498] sm:$0xff] }
 0x234   :  { %4559 = vmatpush3.bf16.msra.mxu0 %v4558_v57  ;;  %v3884_v20 = vpop.f32.mrb[47].mxu0  ;;  %v1312_v21 = vld [vmem:[#allocation3 + $0x11] ss:$2 sm:$0xff]  ;;  %4529 = vmatprep.subr.bf16.mxu1 %v4528_v63  ;;  %v1300_v52 = vld [vmem:[#allocation3 + $0x10] ss:$2 sm:$0xff]  ;;  %v1565_v5 = vld [vmem:[#allocation11 + $0x360] sm:$0xff]  ;;  %v4576_v44 = vpack.c.bf16 %v1582_v53, %v1581_v18 }
 0x235   :  { %v1336_v22 = vld [vmem:[#allocation3 + $0x13] ss:$2 sm:$0xff]  ;;  %4561 = vmatprep.subr.bf16.mxu0 %v4560_v0  ;;  %1295 = vst [vmem:[#allocation3 + $0x34] sm:$0xff] %v1287_v13  ;;  %v1280_v25 = vmul.f32 0.2, %v1266_v14  ;;  %v3885_v27 = vadd.f32 %v3884_v20, %v3883_v15  ;;  %1693 = vmatprep.mubr.f32.mxu1 %v1312_v21  ;;  %v1533_v0 = vld [vmem:[#allocation11 + $0x260] sm:$0xff]  ;;  %v4578_v20 = vpack.c.bf16 %v1566_v6, %v1565_v5 }
 0x236   :  { %1778 = vmatprep.mubr.f32.mxu0 %v1336_v22  ;;  %v1324_v28 = vld [vmem:[#allocation3 + $0x12] ss:$2 sm:$0xff]  ;;  %1694 = vmatmul.mubr.f32.gmra.mrb[34].mxu1 %v1300_v52  ;;  %v4546_v19 = vpack.c.bf16 %v1534_v50, %v1533_v0  ;;  %v1601_v22 = vld [vmem:[#allocation11 + $0x480] sm:$0xff]  ;;  %v1606_v18 = vld [vmem:[#allocation11 + $0x4a8] sm:$0xff] }
 0x237   :  { %1779 = vmatmul.mubr.f32.gmra.mrb[50].mxu0 %v1324_v28  ;;  %v1288_v29 = vmax.f32 %v1266_v14, %v1280_v25  ;;  %v1271_v30 = vadd.f32 %v3885_v27, %v5741_v60  ;;  %4531 = vmatpush3.bf16.msra.mxu1 %v4530_v9  ;;  %v1563_v60 = vld [vmem:[#allocation11 + $0x350] sm:$0xff]  ;;  %v1552_v9 = vld [vmem:[#allocation11 + $0x2f8] sm:$0xff]  ;;  %v1609_v6 = vld [vmem:[#allocation11 + $0x4c0] sm:$0xff] }
 0x238   :  { %4563 = vmatpush3.bf16.msra.mxu0 %v4562_v16  ;;  %4533 = vmatprep.subr.bf16.mxu1 %v4532_v56  ;;  %v4574_v3 = vpack.c.bf16 %v1564_v46, %v1563_v60  ;;  %v1583_v13 = vld [vmem:[#allocation11 + $0x3f0] sm:$0xff]  ;;  %v1584_v14 = vld [vmem:[#allocation11 + $0x3f8] sm:$0xff]  ;;  %v1602_v56 = vld [vmem:[#allocation11 + $0x488] sm:$0xff]  ;;  %v4548_v52 = vpack.c.bf16 %v1552_v9, %v1551_v8 }
 0x239   :  { %4565 = vmatprep.subr.bf16.mxu0 %v4564_v23  ;;  %1296 = vst [vmem:[#allocation3 + $0x3c] sm:$0xff] %v1288_v29  ;;  %v1281_v39 = vmul.f32 0.2, %v1271_v30  ;;  %v1535_v16 = vld [vmem:[#allocation11 + $0x270] sm:$0xff]  ;;  %v1568_v21 = vld [vmem:[#allocation11 + $0x378] sm:$0xff]  ;;  %v4580_v28 = vpack.c.bf16 %v1584_v14, %v1583_v13  ;;  %v4584_v38 = vpack.c.bf16 %v1602_v56, %v1601_v22  ;;  %v1593_v8 = vld [vmem:[#allocation11 + $0x440] sm:$0xff] }
 0x23a   :  { %v1358_v33 = vld [vmem:[#allocation3 + $0x5] ss:$2 sm:$0xff]  ;;  %v4582_v36 = vpack.c.bf16 %v1568_v21, %v1567_v17  ;;  %v1588_v60 = vld [vmem:[#allocation11 + $0x418] sm:$0xff]  ;;  %v1346_v46 = vld [vmem:[#allocation3 + $0x4] ss:$2 sm:$0xff] }
 0x23b   :  { %v1289_v47 = vmax.f32 %v1271_v30, %v1281_v39  ;;  %4535 = vmatpush3.bf16.msra.mxu1 %v4534_v2  ;;  %v1585_v39 = vld [vmem:[#allocation11 + $0x400] sm:$0xff]  ;;  %v1587_v45 = vld [vmem:[#allocation11 + $0x410] sm:$0xff]  ;;  %v1608_v0 = vld [vmem:[#allocation11 + $0x4b8] sm:$0xff] }
 0x23c   :  { %4567 = vmatpush3.bf16.msra.mxu0 %v4566_v31  ;;  %v1316_v54 = vld [vmem:[#allocation3 + $0x29] ss:$2 sm:$0xff]  ;;  %4537 = vmatprep.subr.bf16.mxu1 %v4536_v10  ;;  %v1304_v57 = vld [vmem:[#allocation3 + $0x28] ss:$2 sm:$0xff]  ;;  %v4586_v26 = vpack.c.bf16 %v1586_v40, %v1585_v39  ;;  %v4590_v53 = vpack.c.bf16 %v1588_v60, %v1587_v45  ;;  %v1592_v5 = vld [vmem:[#allocation11 + $0x438] sm:$0xff] }
 0x23d   :  { %v1340_v55 = vld [vmem:[#allocation3 + $0x2b] ss:$2 sm:$0xff]  ;;  %4569 = vmatprep.subr.bf16.mxu0 %v4568_v35  ;;  %1297 = vst [vmem:[#allocation3 + $0x44] sm:$0xff] %v1289_v47  ;;  %1698 = vmatprep.mubr.f32.mxu1 %v1316_v54  ;;  %v1328_v61 = vld [vmem:[#allocation3 + $0x2a] ss:$2 sm:$0xff]  ;;  %v4550_v35 = vpack.c.bf16 %v1536_v4, %v1535_v16  ;;  %v1589_v54 = vld [vmem:[#allocation11 + $0x420] sm:$0xff] }
 0x23e   :  { %1783 = vmatprep.mubr.f32.mxu0 %v1340_v55  ;;  %v5747_v62 = vld [vmem:[#allocation3 + $0x2d] ss:$2 sm:$0xff]  ;;  %v5749_v63 = vld [vmem:[#allocation3 + $0x2c] ss:$2 sm:$0xff]  ;;  %1699 = vmatmul.mubr.f32.gmra.mrb[36].mxu1 %v1304_v57  ;;  %v1613_v17 = vld [vmem:[#allocation11 + $0x4e0] sm:$0xff] }
 0x23f   :  { %1784 = vmatmul.mubr.f32.gmra.mrb[52].mxu0 %v1328_v61  ;;  %4539 = vmatpush3.bf16.msra.mxu1 %v4538_v48  ;;  %v1382_v10 = vld [vmem:[#allocation3 + $0x7] ss:$2 sm:$0xff]  ;;  %v1370_v47 = vld [vmem:[#allocation3 + $0x6] ss:$2 sm:$0xff]  ;;  %v4588_v48 = vpack.c.bf16 %v1604_v43, %v1603_v41  ;;  %v1384_v51 = vld [vmem:[#allocation3 + $0x17] ss:$2 sm:$0xff] }
 0x240   :  { %4571 = vmatpush3.bf16.msra.mxu0 %v4570_v49  ;;  %4541 = vmatprep.subr.bf16.mxu1 %v4540_v58  ;;  %v5751_v11 = vld [vmem:[#allocation3 + $0x2f] ss:$2 sm:$0xff]  ;;  %v5753_v12 = vld [vmem:[#allocation3 + $0x2e] ss:$2 sm:$0xff]  ;;  %v1605_v49 = vld [vmem:[#allocation11 + $0x4a0] sm:$0xff] }
 0x241   :  { %4573 = vmatprep.subr.bf16.mxu0 %v4572_v42  ;;  %v5755_v59 = vld [vmem:[#allocation3 + $0x31] ss:$2 sm:$0xff]  ;;  %v5757_v15 = vld [vmem:[#allocation3 + $0x30] ss:$2 sm:$0xff]  ;;  %v4592_v58 = vpack.c.bf16 %v1606_v18, %v1605_v49  ;;  %v1597_v22 = vld [vmem:[#allocation11 + $0x460] sm:$0xff] }
 0x242   :  { %v1360_v34 = vld [vmem:[#allocation3 + $0x15] ss:$2 sm:$0xff]  ;;  %v1348_v55 = vld [vmem:[#allocation3 + $0x14] ss:$2 sm:$0xff]  ;;  %v1590_v42 = vld [vmem:[#allocation11 + $0x428] sm:$0xff] }
 0x243   :  { %4543 = vmatpush3.bf16.msra.mxu1 %v4542_v1  ;;  %v1372_v57 = vld [vmem:[#allocation3 + $0x16] ss:$2 sm:$0xff]  ;;  %v4594_v1 = vpack.c.bf16 %v1590_v42, %v1589_v54  ;;  %v1594_v9 = vld [vmem:[#allocation11 + $0x448] sm:$0xff] }
 0x244   :  { %4575 = vmatpush3.bf16.msra.mxu0 %v4574_v3  ;;  %v1318_v23 = vld [vmem:[#allocation3 + $0x39] ss:$2 sm:$0xff]  ;;  %4545 = vmatprep.subr.bf16.mxu1 %v4544_v7  ;;  %v1306_v25 = vld [vmem:[#allocation3 + $0x38] ss:$2 sm:$0xff]  ;;  %v1610_v7 = vld [vmem:[#allocation11 + $0x4c8] sm:$0xff] }
 0x245   :  { %v1342_v24 = vld [vmem:[#allocation3 + $0x3b] ss:$2 sm:$0xff]  ;;  %4577 = vmatprep.subr.bf16.mxu0 %v4576_v44  ;;  %1703 = vmatprep.mubr.f32.mxu1 %v1318_v23  ;;  %v1330_v27 = vld [vmem:[#allocation3 + $0x3a] ss:$2 sm:$0xff]  ;;  %v1607_v61 = vld [vmem:[#allocation11 + $0x4b0] sm:$0xff]  ;;  %v4600_v44 = vpack.c.bf16 %v1610_v7, %v1609_v6 }
 0x246   :  { %1788 = vmatprep.mubr.f32.mxu0 %v1342_v24  ;;  %v5759_v2 = vld [vmem:[#allocation3 + $0x3d] ss:$2 sm:$0xff]  ;;  %1704 = vmatmul.mubr.f32.gmra.mrb[38].mxu1 %v1306_v25  ;;  %v5763_v30 = vld [vmem:[#allocation3 + $0x3c] ss:$2 sm:$0xff]  ;;  %v4596_v3 = vpack.c.bf16 %v1608_v0, %v1607_v61  ;;  %v1591_v50 = vld [vmem:[#allocation11 + $0x430] sm:$0xff] }
 0x247   :  { %v5761_v29 = vld [vmem:[#allocation3 + $0x3f] ss:$2 sm:$0xff]  ;;  %1789 = vmatmul.mubr.f32.gmra.mrb[54].mxu0 %v1330_v27  ;;  %v5765_v31 = vld [vmem:[#allocation3 + $0x3e] ss:$2 sm:$0xff]  ;;  %4547 = vmatpush3.bf16.msra.mxu1 %v4546_v19  ;;  %v1595_v16 = vld [vmem:[#allocation11 + $0x450] sm:$0xff] }
 0x248   :  { %v5767_v32 = vld [vmem:[#allocation3 + $0x41] ss:$2 sm:$0xff]  ;;  %4579 = vmatpush3.bf16.msra.mxu0 %v4578_v20  ;;  %v5769_v37 = vld [vmem:[#allocation3 + $0x40] ss:$2 sm:$0xff]  ;;  %1858 = vmatprep.mubr.f32.mxu1 %v1358_v33  ;;  %v1615_v23 = vld [vmem:[#allocation11 + $0x4f0] sm:$0xff] }
 0x249   :  { %1943 = vmatprep.mubr.f32.mxu0 %v1382_v10  ;;  %4549 = vmatprep.subr.bf16.mxu1 %v4548_v52  ;;  %v1612_v13 = vld [vmem:[#allocation11 + $0x4d8] sm:$0xff]  ;;  %v1614_v19 = vld [vmem:[#allocation11 + $0x4e8] sm:$0xff]  ;;  %v1599_v52 = vld [vmem:[#allocation11 + $0x470] sm:$0xff] }
 0x24a   :  { %4581 = vmatprep.subr.bf16.mxu0 %v4580_v28  ;;  %v1596_v4 = vld [vmem:[#allocation11 + $0x458] sm:$0xff]  ;;  %v4608_v21 = vpack.c.bf16 %v1614_v19, %v1613_v17  ;;  %v1598_v56 = vld [vmem:[#allocation11 + $0x468] sm:$0xff] }
 0x24b   :  { %4551 = vmatpush3.bf16.msra.mxu1 %v4550_v35  ;;  %v4606_v20 = vpack.c.bf16 %v1596_v4, %v1595_v16  ;;  %v1616_v24 = vld [vmem:[#allocation11 + $0x4f8] sm:$0xff]  ;;  %v4610_v25 = vpack.c.bf16 %v1598_v56, %v1597_v22  ;;  %v2156_v33 = vld [vmem:[#allocation14 + $0x80] sm:$0xff]  ;;  %v2157_v10 = vld [vmem:[#allocation14 + $0x88] sm:$0xff] }
 0x24c   :  { %4583 = vmatpush3.bf16.msra.mxu0 %v4582_v36  ;;  %4585 = vmatprep.subr.bf16.mxu1 %v4584_v38  ;;  %v4612_v27 = vpack.c.bf16 %v1616_v24, %v1615_v23  ;;  %v1600_v28 = vld [vmem:[#allocation11 + $0x478] sm:$0xff]  ;;  %v2188_v35 = vld [vmem:[#allocation14 + $0x180] sm:$0xff]  ;;  %v4616_v36 = vpack.c.bf16 %v2157_v10, %v2156_v33  ;;  %v2189_v38 = vld [vmem:[#allocation14 + $0x188] sm:$0xff] }
 0x24d   :  { %v2140_v39 = vld [vmem:[#allocation14] sm:$0xff]  ;;  %v2141_v40 = vld [vmem:[#allocation14 + $0x8] sm:$0xff]  ;;  %v4648_v41 = vpack.c.bf16 %v2189_v38, %v2188_v35  ;;  %v2175_v18 = vld [vmem:[#allocation14 + $0x118] sm:$0xff] }
 0x24e   :  { %1859 = vmatmul.mubr.f32.vlgmr.msra.gmra.mrb[40].mxu1 %v1346_v46  ;;  %v4618_v43 = vpack.c.bf16 %v2141_v40, %v2140_v39  ;;  %v2173_v45 = vld [vmem:[#allocation14 + $0x108] sm:$0xff]  ;;  %4617 = vmatprep.subr.bf16.mxu0 %v4616_v36  ;;  %v2191_v46 = vld [vmem:[#allocation14 + $0x198] sm:$0xff]  ;;  %v2160_v54 = vld [vmem:[#allocation14 + $0xa0] sm:$0xff] }
 0x24f   :  { %1944 = vmatmul.mubr.f32.vlgmr.msra.gmra.mrb[56].mxu0 %v1370_v47  ;;  %1863 = vmatprep.mubr.f32.mxu1 %v1360_v34  ;;  %v2142_v47 = vld [vmem:[#allocation14 + $0x10] sm:$0xff]  ;;  %v2193_v42 = vld [vmem:[#allocation14 + $0x1a8] sm:$0xff]  ;;  %v2144_v61 = vld [vmem:[#allocation14 + $0x20] sm:$0xff] }
 0x250   :  { %1948 = vmatprep.mubr.f32.mxu0 %v1384_v51  ;;  %4587 = vmatpush3.bf16.msra.mxu1 %v4586_v26  ;;  %v2172_v26 = vld [vmem:[#allocation14 + $0x100] sm:$0xff]  ;;  %v2174_v51 = vld [vmem:[#allocation14 + $0x110] sm:$0xff]  ;;  %v2145_v0 = vld [vmem:[#allocation14 + $0x28] sm:$0xff] }
 0x251   :  { %4589 = vmatprep.subr.bf16.mxu1 %v4588_v48  ;;  %v4650_v60 = vpack.c.bf16 %v2173_v45, %v2172_v26  ;;  %4619 = vmatpush3.bf16.msra.mxu0 %v4618_v43  ;;  %v2143_v48 = vld [vmem:[#allocation14 + $0x18] sm:$0xff]  ;;  %v2162_v7 = vld [vmem:[#allocation14 + $0xb0] sm:$0xff]  ;;  %v2164_v17 = vld [vmem:[#allocation14 + $0xc0] sm:$0xff] }
 0x252   :  { %1864 = vmatmul.mubr.f32.gmra.mrb[42].mxu1 %v1348_v55  ;;  %v4622_v34 = vpack.c.bf16 %v2143_v48, %v2142_v47  ;;  %v2161_v55 = vld [vmem:[#allocation14 + $0xa8] sm:$0xff]  ;;  %v2179_v16 = vld [vmem:[#allocation14 + $0x138] sm:$0xff]  ;;  %v2148_v56 = vld [vmem:[#allocation14 + $0x40] sm:$0xff] }
 0x253   :  { %1949 = vmatmul.mubr.f32.gmra.mrb[58].mxu0 %v1372_v57  ;;  %1868 = vmatprep.mubr.f32.mxu1 %v5747_v62  ;;  %v4598_v62 = vpack.c.bf16 %v1592_v5, %v1591_v50  ;;  %v2192_v57 = vld [vmem:[#allocation14 + $0x1a0] sm:$0xff]  ;;  %v2177_v5 = vld [vmem:[#allocation14 + $0x128] sm:$0xff]  ;;  %v2199_v33 = vld [vmem:[#allocation14 + $0x1d8] sm:$0xff] }
 0x254   :  { %1953 = vmatprep.mubr.f32.mxu0 %v5751_v11  ;;  %4591 = vmatpush3.bf16.msra.mxu1 %v4590_v53  ;;  %v1406_v11 = vld [vmem:[#allocation3 + $0x9] ss:$2 sm:$0xff]  ;;  %v4654_v53 = vpack.c.bf16 %v2175_v18, %v2174_v51  ;;  %v2151_v35 = vld [vmem:[#allocation14 + $0x58] sm:$0xff] }
 0x255   :  { %4593 = vmatprep.subr.bf16.mxu1 %v4592_v58  ;;  %v4624_v58 = vpack.c.bf16 %v2161_v55, %v2160_v54  ;;  %v2176_v50 = vld [vmem:[#allocation14 + $0x120] sm:$0xff]  ;;  %v2165_v19 = vld [vmem:[#allocation14 + $0xc8] sm:$0xff]  ;;  %v2150_v10 = vld [vmem:[#allocation14 + $0x50] sm:$0xff] }
 0x256   :  { %1869 = vmatmul.mubr.f32.gmra.mrb[44].mxu1 %v5749_v63  ;;  %v1611_v63 = vld [vmem:[#allocation11 + $0x4d0] sm:$0xff]  ;;  %v4658_v6 = vpack.c.bf16 %v2177_v5, %v2176_v50  ;;  %v4638_v38 = vpack.c.bf16 %v2151_v35, %v2150_v10  ;;  %v2183_v40 = vld [vmem:[#allocation14 + $0x158] sm:$0xff]  ;;  %v2168_v43 = vld [vmem:[#allocation14 + $0xe0] sm:$0xff] }
 0x257   :  { %1954 = vmatmul.mubr.f32.gmra.mrb[60].mxu0 %v5753_v12  ;;  %1873 = vmatprep.mubr.f32.mxu1 %v5759_v2  ;;  %v4602_v12 = vpack.c.bf16 %v1594_v9, %v1593_v8  ;;  %v4604_v14 = vpack.c.bf16 %v1612_v13, %v1611_v63  ;;  %v4614_v2 = vpack.c.bf16 %v1600_v28, %v1599_v52  ;;  %v2195_v9 = vld [vmem:[#allocation14 + $0x1b8] sm:$0xff]  ;;  %v2197_v22 = vld [vmem:[#allocation14 + $0x1c8] sm:$0xff]  ;;  %v2182_v39 = vld [vmem:[#allocation14 + $0x150] sm:$0xff] }
 0x258   :  { %1958 = vmatprep.mubr.f32.mxu0 %v5761_v29  ;;  %4595 = vmatpush3.bf16.msra.mxu1 %v4594_v1  ;;  %v1394_v29 = vld [vmem:[#allocation3 + $0x8] ss:$2 sm:$0xff]  ;;  %v4656_v1 = vpack.c.bf16 %v2193_v42, %v2192_v57  ;;  %v2147_v63 = vld [vmem:[#allocation14 + $0x38] sm:$0xff] }
 0x259   :  { %4597 = vmatprep.subr.bf16.mxu1 %v4596_v3  ;;  %v4626_v3 = vpack.c.bf16 %v2145_v0, %v2144_v61  ;;  %v2149_v23 = vld [vmem:[#allocation14 + $0x48] sm:$0xff]  ;;  %v2200_v45 = vld [vmem:[#allocation14 + $0x1e0] sm:$0xff]  ;;  %v2171_v51 = vld [vmem:[#allocation14 + $0xf8] sm:$0xff] }
 0x25a   :  { %1874 = vmatmul.mubr.f32.gmra.mrb[46].mxu1 %v5763_v30  ;;  %v1408_v30 = vld [vmem:[#allocation3 + $0x19] ss:$2 sm:$0xff]  ;;  %v2181_v52 = vld [vmem:[#allocation14 + $0x148] sm:$0xff] }
 0x25b   :  { %1959 = vmatmul.mubr.f32.gmra.mrb[62].mxu0 %v5765_v31  ;;  %2028 = vmatprep.mubr.f32.mxu1 %v1406_v11  ;;  %v1396_v31 = vld [vmem:[#allocation3 + $0x18] ss:$2 sm:$0xff]  ;;  %v2169_v26 = vld [vmem:[#allocation14 + $0xe8] sm:$0xff] }
 0x25c   :  { %4599 = vmatpush3.bf16.msra.mxu1 %v4598_v62  ;;  %v2163_v62 = vld [vmem:[#allocation14 + $0xb8] sm:$0xff]  ;;  %v2146_v11 = vld [vmem:[#allocation14 + $0x30] sm:$0xff]  ;;  %v2184_v47 = vld [vmem:[#allocation14 + $0x160] sm:$0xff] }
 0x25d   :  { %4601 = vmatprep.subr.bf16.mxu1 %v4600_v44  ;;  %v2194_v44 = vld [vmem:[#allocation14 + $0x1b0] sm:$0xff]  ;;  %v4628_v8 = vpack.c.bf16 %v2163_v62, %v2162_v7  ;;  %v2185_v48 = vld [vmem:[#allocation14 + $0x168] sm:$0xff]  ;;  %v2203_v54 = vld [vmem:[#allocation14 + $0x1f8] sm:$0xff] }
 0x25e   :  { %v4660_v13 = vpack.c.bf16 %v2195_v9, %v2194_v44  ;;  %v2202_v18 = vld [vmem:[#allocation14 + $0x1f0] sm:$0xff]  ;;  %v2155_v57 = vld [vmem:[#allocation14 + $0x78] sm:$0xff]  ;;  %v2221_v50 = vld [vmem:[#allocation14 + $0x288] sm:$0xff] }
 0x25f   :  { %v2154_v55 = vld [vmem:[#allocation14 + $0x70] sm:$0xff]  ;;  %v2187_v0 = vld [vmem:[#allocation14 + $0x178] sm:$0xff]  ;;  %v2252_v5 = vld [vmem:[#allocation14 + $0x380] sm:$0xff] }
 0x260   :  { %4603 = vmatpush3.bf16.msra.mxu1 %v4602_v12  ;;  %v4630_v12 = vpack.c.bf16 %v2147_v63, %v2146_v11  ;;  %v4646_v42 = vpack.c.bf16 %v2155_v57, %v2154_v55  ;;  %v2186_v61 = vld [vmem:[#allocation14 + $0x170] sm:$0xff]  ;;  %v2253_v7 = vld [vmem:[#allocation14 + $0x388] sm:$0xff]  ;;  %v3602_v9 = vld [vmem:[#allocation12] ss:$0 sm:$0xff] }
 0x261   :  { %4605 = vmatprep.subr.bf16.mxu1 %v4604_v14  ;;  %v2178_v14 = vld [vmem:[#allocation14 + $0x130] sm:$0xff]  ;;  %v4712_v62 = vpack.c.bf16 %v2253_v7, %v2252_v5 }
 0x262   :  { %v4662_v4 = vpack.c.bf16 %v2179_v16, %v2178_v14 }
 0x264   :  { %4607 = vmatpush3.bf16.msra.mxu1 %v4606_v20  ;;  %v2196_v20 = vld [vmem:[#allocation14 + $0x1c0] sm:$0xff] }
 0x265   :  { %4609 = vmatprep.subr.bf16.mxu1 %v4608_v21  ;;  %v4632_v21 = vpack.c.bf16 %v2165_v19, %v2164_v17  ;;  %v4664_v24 = vpack.c.bf16 %v2197_v22, %v2196_v20 }
 0x268   :  { %4611 = vmatpush3.bf16.msra.mxu1 %v4610_v25  ;;  %v4634_v25 = vpack.c.bf16 %v2149_v23, %v2148_v56 }
 0x269   :  { %4613 = vmatprep.subr.bf16.mxu1 %v4612_v27  ;;  %v2180_v27 = vld [vmem:[#allocation14 + $0x140] sm:$0xff] }
 0x26a   :  { %v4666_v28 = vpack.c.bf16 %v2181_v52, %v2180_v27 }
 0x26c   :  { %4615 = vmatpush3.bf16.msra.mxu1 %v4614_v2  ;;  %v2166_v2 = vld [vmem:[#allocation14 + $0xd0] sm:$0xff] }
 0x26d   :  { %4649 = vmatprep.subr.bf16.mxu1 %v4648_v41  ;;  %v4670_v41 = vpack.c.bf16 %v2183_v40, %v2182_v39 }
 0x26f   :  { %2029 = vmatmul.mubr.f32.vlgmr.msra.gmra.mrb[48].mxu1 %v1394_v29  ;;  %v2167_v29 = vld [vmem:[#allocation14 + $0xd8] sm:$0xff] }
 0x270   :  { %2033 = vmatprep.mubr.f32.mxu1 %v1408_v30  ;;  %4651 = vmatpush3.bf16.msra.mxu1 %v4650_v60  ;;  %v2198_v30 = vld [vmem:[#allocation14 + $0x1d0] sm:$0xff]  ;;  %v4640_v60 = vpack.c.bf16 %v2169_v26, %v2168_v43 }
 0x271   :  { %v4668_v36 = vpack.c.bf16 %v2199_v33, %v2198_v30 }
 0x273   :  { %2034 = vmatmul.mubr.f32.gmra.mrb[50].mxu1 %v1396_v31  ;;  %v4636_v31 = vpack.c.bf16 %v2167_v29, %v2166_v2 }
 0x274   :  { %2038 = vmatprep.mubr.f32.mxu1 %v5755_v59  ;;  %v2158_v59 = vld [vmem:[#allocation14 + $0x90] sm:$0xff] }
 0x277   :  { %2039 = vmatmul.mubr.f32.gmra.mrb[52].mxu1 %v5757_v15  ;;  %v2159_v15 = vld [vmem:[#allocation14 + $0x98] sm:$0xff] }
 0x278   :  { %2043 = vmatprep.mubr.f32.mxu1 %v5767_v32  ;;  %v2190_v32 = vld [vmem:[#allocation14 + $0x190] sm:$0xff] }
 0x279   :  { %v4652_v49 = vpack.c.bf16 %v2191_v46, %v2190_v32  ;;  %v2153_v32 = vld [vmem:[#allocation14 + $0x68] sm:$0xff] }
 0x27b   :  { %2044 = vmatmul.mubr.f32.gmra.mrb[54].mxu1 %v5769_v37  ;;  %v4620_v37 = vpack.c.bf16 %v2159_v15, %v2158_v59  ;;  %4653 = vmatprep.subr.bf16.mxu1 %v4652_v49  ;;  %v2201_v59 = vld [vmem:[#allocation14 + $0x1e8] sm:$0xff]  ;;  %v2152_v15 = vld [vmem:[#allocation14 + $0x60] sm:$0xff]  ;;  %v4674_v49 = vpack.c.bf16 %v2185_v48, %v2184_v47 }
 0x27c   :  { %4655 = vmatpush3.bf16.msra.mxu1 %v4654_v53  ;;  %v4642_v46 = vpack.c.bf16 %v2153_v32, %v2152_v15 }
 0x27d   :  { %4621 = vmatprep.subr.bf16.mxu0 %v4620_v37  ;;  %4657 = vmatprep.subr.bf16.mxu1 %v4656_v1  ;;  %v4672_v37 = vpack.c.bf16 %v2201_v59, %v2200_v45  ;;  %v4678_v1 = vpack.c.bf16 %v2187_v0, %v2186_v61 }
 0x27e   :  { %4623 = vmatpush3.bf16.msra.mxu0 %v4622_v34  ;;  %v2170_v34 = vld [vmem:[#allocation14 + $0xf0] sm:$0xff] }
 0x27f   :  { %4625 = vmatprep.subr.bf16.mxu0 %v4624_v58  ;;  %v4644_v53 = vpack.c.bf16 %v2171_v51, %v2170_v34  ;;  %v4676_v58 = vpack.c.bf16 %v2203_v54, %v2202_v18 }
 0x280   :  { %4659 = vmatpush3.bf16.msra.mxu1 %v4658_v6 }
 0x281   :  { %4661 = vmatprep.subr.bf16.mxu1 %v4660_v13 }
 0x282   :  { %4627 = vmatpush3.bf16.msra.mxu0 %v4626_v3  ;;  %v2220_v3 = vld [vmem:[#allocation14 + $0x280] sm:$0xff] }
 0x283   :  { %4629 = vmatprep.subr.bf16.mxu0 %v4628_v8  ;;  %v4680_v6 = vpack.c.bf16 %v2221_v50, %v2220_v3 }
 0x284   :  { %4663 = vmatpush3.bf16.msra.mxu1 %v4662_v4 }
 0x285   :  { %4665 = vmatprep.subr.bf16.mxu1 %v4664_v24 }
 0x286   :  { %4631 = vmatpush3.bf16.msra.mxu0 %v4630_v12 }
 0x287   :  { %4633 = vmatprep.subr.bf16.mxu0 %v4632_v21 }
 0x288   :  { %4667 = vmatpush3.bf16.msra.mxu1 %v4666_v28 }
 0x289   :  { %4669 = vmatprep.subr.bf16.mxu1 %v4668_v36 }
 0x28a   :  { %4635 = vmatpush3.bf16.msra.mxu0 %v4634_v25 }
 0x28b   :  { %4637 = vmatprep.subr.bf16.mxu0 %v4636_v31 }
 0x28c   :  { %4671 = vmatpush3.bf16.msra.mxu1 %v4670_v41 }
 0x28d   :  { %4673 = vmatprep.subr.bf16.mxu1 %v4672_v37 }
 0x28e   :  { %4639 = vmatpush3.bf16.msra.mxu0 %v4638_v38 }
 0x28f   :  { %4641 = vmatprep.subr.bf16.mxu0 %v4640_v60 }
 0x290   :  { %4675 = vmatpush3.bf16.msra.mxu1 %v4674_v49 }
 0x291   :  { %4677 = vmatprep.subr.bf16.mxu1 %v4676_v58 }
 0x292   :  { %4643 = vmatpush3.bf16.msra.mxu0 %v4642_v46 }
 0x293   :  { %4645 = vmatprep.subr.bf16.mxu0 %v4644_v53 }
 0x294   :  { %4679 = vmatpush3.bf16.msra.mxu1 %v4678_v1 }
 0x295   :  { %4713 = vmatprep.subr.bf16.mxu1 %v4712_v62 }
 0x296   :  { %4647 = vmatpush3.bf16.msra.mxu0 %v4646_v42 }
 0x297   :  { %4681 = vmatprep.subr.bf16.mxu0 %v4680_v6 }
 0x301   :  { %v3918_v44 = vpop.f32.mrb[32].mxu1 }
 0x302   :  { %v3962_v8 = vpop.f32.mrb[48].mxu0  ;;  %v3919_v11 = vpop.f32.mrb[33].mxu1 }
 0x303   :  { %v3963_v63 = vpop.f32.mrb[49].mxu0  ;;  %v3920_v13 = vadd.f32 %v3919_v11, %v3918_v44 }
 0x304   :  { %v3964_v12 = vadd.f32 %v3963_v63, %v3962_v8 }
 0x305   :  { %v1691_v14 = vadd.f32 %v3920_v13, %v3602_v9 }
 0x307   :  { %v1776_v16 = vadd.f32 %v3964_v12, %v1691_v14 }
 0x309   :  { %v3921_v4 = vpop.f32.mrb[34].mxu1 }
 0x30a   :  { %v3965_v17 = vpop.f32.mrb[50].mxu0  ;;  %v3922_v19 = vpop.f32.mrb[35].mxu1 }
 0x30b   :  { %v3966_v20 = vpop.f32.mrb[51].mxu0  ;;  %v3923_v21 = vadd.f32 %v3922_v19, %v3921_v4 }
 0x30c   :  { %v3967_v22 = vadd.f32 %v3966_v20, %v3965_v17 }
 0x30d   :  { %v1696_v56 = vadd.f32 %v3923_v21, %v3602_v9 }
 0x30f   :  { %v1781_v23 = vadd.f32 %v3967_v22, %v1696_v56 }
 0x311   :  { %v3924_v24 = vpop.f32.mrb[36].mxu1 }
 0x312   :  { %v3968_v25 = vpop.f32.mrb[52].mxu0  ;;  %v3925_v27 = vpop.f32.mrb[37].mxu1 }
 0x313   :  { %v3969_v52 = vpop.f32.mrb[53].mxu0  ;;  %v3926_v28 = vadd.f32 %v3925_v27, %v3924_v24 }
 0x314   :  { %v3970_v2 = vadd.f32 %v3969_v52, %v3968_v25 }
 0x315   :  { %v1701_v29 = vadd.f32 %v3926_v28, %v3602_v9 }
 0x317   :  { %v1786_v30 = vadd.f32 %v3970_v2, %v1701_v29  ;;  %v2204_v29 = vld [vmem:[#allocation14 + $0x200] sm:$0xff] }
 0x319   :  { %v3927_v31 = vpop.f32.mrb[38].mxu1 }
 0x31a   :  { %v3971_v33 = vpop.f32.mrb[54].mxu0  ;;  %v3928_v10 = vpop.f32.mrb[39].mxu1 }
 0x31b   :  { %v3972_v35 = vpop.f32.mrb[55].mxu0  ;;  %v3929_v36 = vadd.f32 %v3928_v10, %v3927_v31  ;;  %v2236_v31 = vld [vmem:[#allocation14 + $0x300] sm:$0xff]  ;;  %v2222_v10 = vld [vmem:[#allocation14 + $0x290] sm:$0xff] }
 0x31c   :  { %v3973_v38 = vadd.f32 %v3972_v35, %v3971_v33  ;;  %v2237_v33 = vld [vmem:[#allocation14 + $0x308] sm:$0xff] }
 0x31d   :  { %v1706_v39 = vadd.f32 %v3929_v36, %v3602_v9  ;;  %v2223_v36 = vld [vmem:[#allocation14 + $0x298] sm:$0xff] }
 0x31f   :  { %v1791_v40 = vadd.f32 %v3973_v38, %v1706_v39  ;;  %v2254_v38 = vld [vmem:[#allocation14 + $0x390] sm:$0xff]  ;;  %v2255_v39 = vld [vmem:[#allocation14 + $0x398] sm:$0xff] }
 0x321   :  { %v4006_v41 = vpop.f32.mrb[40].mxu1 }
 0x322   :  { %v4050_v43 = vpop.f32.mrb[56].mxu0  ;;  %v4007_v26 = vpop.f32.mrb[41].mxu1 }
 0x323   :  { %v4051_v45 = vpop.f32.mrb[57].mxu0  ;;  %v4008_v60 = vadd.f32 %v4007_v26, %v4006_v41  ;;  %v2207_v41 = vld [vmem:[#allocation14 + $0x218] sm:$0xff] }
 0x324   :  { %v4052_v59 = vadd.f32 %v4051_v45, %v4050_v43  ;;  %v2238_v43 = vld [vmem:[#allocation14 + $0x310] sm:$0xff]  ;;  %v2239_v26 = vld [vmem:[#allocation14 + $0x318] sm:$0xff] }
 0x325   :  { %v1861_v15 = vadd.f32 %v4008_v60, %v1776_v16  ;;  %v4009_v32 = vpop.f32.mrb[42].mxu1 }
 0x326   :  { %v4053_v37 = vpop.f32.mrb[58].mxu0  ;;  %v4010_v46 = vpop.f32.mrb[43].mxu1 }
 0x327   :  { %v4054_v47 = vpop.f32.mrb[59].mxu0  ;;  %v1946_v48 = vadd.f32 %v4052_v59, %v1861_v15  ;;  %v4011_v49 = vadd.f32 %v4010_v46, %v4009_v32  ;;  %v4714_v59 = vpack.c.bf16 %v2237_v33, %v2236_v31  ;;  %v2224_v15 = vld [vmem:[#allocation14 + $0x2a0] sm:$0xff]  ;;  %v2225_v32 = vld [vmem:[#allocation14 + $0x2a8] sm:$0xff] }
 0x328   :  { %v4055_v34 = vadd.f32 %v4054_v47, %v4053_v37  ;;  %v2256_v37 = vld [vmem:[#allocation14 + $0x3a0] sm:$0xff]  ;;  %v2257_v46 = vld [vmem:[#allocation14 + $0x3a8] sm:$0xff] }
 0x329   :  { %v1866_v51 = vadd.f32 %v4011_v49, %v1781_v23  ;;  %v4012_v18 = vpop.f32.mrb[44].mxu1  ;;  %v2212_v33 = vld [vmem:[#allocation14 + $0x240] sm:$0xff] }
 0x32a   :  { %v4056_v53 = vpop.f32.mrb[60].mxu0  ;;  %v4013_v54 = vpop.f32.mrb[45].mxu1 }
 0x32b   :  { %v4057_v55 = vpop.f32.mrb[61].mxu0  ;;  %v1951_v57 = vadd.f32 %v4055_v34, %v1866_v51  ;;  %v4014_v58 = vadd.f32 %v4013_v54, %v4012_v18  ;;  %v4684_v34 = vpack.c.bf16 %v2223_v36, %v2222_v10  ;;  %v4716_v51 = vpack.c.bf16 %v2255_v39, %v2254_v38  ;;  %v2213_v10 = vld [vmem:[#allocation14 + $0x248] sm:$0xff]  ;;  %v2244_v39 = vld [vmem:[#allocation14 + $0x340] sm:$0xff] }
 0x32c   :  { %v4058_v42 = vadd.f32 %v4057_v55, %v4056_v53 }
 0x32d   :  { %v1871_v61 = vadd.f32 %v4014_v58, %v1786_v30  ;;  %v4015_v0 = vpop.f32.mrb[46].mxu1  ;;  %v2205_v30 = vld [vmem:[#allocation14 + $0x208] sm:$0xff] }
 0x32e   :  { %v4059_v1 = vpop.f32.mrb[62].mxu0  ;;  %v4016_v3 = vpop.f32.mrb[47].mxu1  ;;  %v4682_v60 = vpack.c.bf16 %v2205_v30, %v2204_v29 }
 0x32f   :  { %v4060_v50 = vpop.f32.mrb[63].mxu0  ;;  %v1956_v5 = vadd.f32 %v4058_v42, %v1871_v61  ;;  %v4017_v6 = vadd.f32 %v4016_v3, %v4015_v0  ;;  %v4718_v61 = vpack.c.bf16 %v2239_v26, %v2238_v43  ;;  %v2208_v0 = vld [vmem:[#allocation14 + $0x220] sm:$0xff]  ;;  %v2231_v43 = vld [vmem:[#allocation14 + $0x2d8] sm:$0xff]  ;;  %v2262_v26 = vld [vmem:[#allocation14 + $0x3d0] sm:$0xff] }
 0x330   :  { %v4061_v7 = vadd.f32 %v4060_v50, %v4059_v1  ;;  %v2209_v1 = vld [vmem:[#allocation14 + $0x228] sm:$0xff]  ;;  %v4688_v50 = vpack.c.bf16 %v2225_v32, %v2224_v15  ;;  %v2214_v15 = vld [vmem:[#allocation14 + $0x250] sm:$0xff]  ;;  %v2215_v32 = vld [vmem:[#allocation14 + $0x258] sm:$0xff] }
 0x331   :  { %v1876_v62 = vadd.f32 %v4017_v6, %v1791_v40  ;;  %v2206_v40 = vld [vmem:[#allocation14 + $0x210] sm:$0xff]  ;;  %v2240_v6 = vld [vmem:[#allocation14 + $0x320] sm:$0xff] }
 0x332   :  { %v4686_v42 = vpack.c.bf16 %v2207_v41, %v2206_v40  ;;  %v2245_v40 = vld [vmem:[#allocation14 + $0x348] sm:$0xff]  ;;  %v2230_v41 = vld [vmem:[#allocation14 + $0x2d0] sm:$0xff] }
 0x333   :  { %v1961_v44 = vadd.f32 %v4061_v7, %v1876_v62  ;;  %v2241_v7 = vld [vmem:[#allocation14 + $0x328] sm:$0xff]  ;;  %v2226_v62 = vld [vmem:[#allocation14 + $0x2b0] sm:$0xff] }
 0x342   :  { %v4094_v8 = vpop.f32.mrb[48].mxu1 }
 0x343   :  { %v4095_v9 = vpop.f32.mrb[49].mxu1 }
 0x344   :  { %v4096_v11 = vadd.f32 %v4095_v9, %v4094_v8  ;;  %v2258_v8 = vld [vmem:[#allocation14 + $0x3b0] sm:$0xff]  ;;  %v2259_v9 = vld [vmem:[#allocation14 + $0x3b8] sm:$0xff] }
 0x346   :  { %v2031_v63 = vadd.f32 %v4096_v11, %v1946_v48  ;;  %v4097_v13 = vpop.f32.mrb[50].mxu1  ;;  %v2210_v11 = vld [vmem:[#allocation14 + $0x230] sm:$0xff] }
 0x347   :  { %v4098_v12 = vpop.f32.mrb[51].mxu1 }
 0x348   :  { %v2049_v14 = vmul.f32 0.2, %v2031_v63  ;;  %v4099_v16 = vadd.f32 %v4098_v12, %v4097_v13  ;;  %v2242_v13 = vld [vmem:[#allocation14 + $0x330] sm:$0xff]  ;;  %v2243_v12 = vld [vmem:[#allocation14 + $0x338] sm:$0xff] }
 0x349   :  { %v4726_v31 = vpack.c.bf16 %v2243_v12, %v2242_v13  ;;  %v2219_v12 = vld [vmem:[#allocation14 + $0x278] sm:$0xff] }
 0x34a   :  { %v2053_v4 = vmax.f32 %v2031_v63, %v2049_v14  ;;  %v2036_v17 = vadd.f32 %v4099_v16, %v1951_v57  ;;  %v4100_v19 = vpop.f32.mrb[52].mxu1  ;;  %v2211_v63 = vld [vmem:[#allocation14 + $0x238] sm:$0xff]  ;;  %v4690_v14 = vpack.c.bf16 %v2209_v1, %v2208_v0  ;;  %v4722_v16 = vpack.c.bf16 %v2241_v7, %v2240_v6  ;;  %v2234_v6 = vld [vmem:[#allocation14 + $0x2f0] sm:$0xff] }
 0x34b   :  { %v4101_v20 = vpop.f32.mrb[53].mxu1  ;;  %v4694_v30 = vpack.c.bf16 %v2211_v63, %v2210_v11  ;;  %v2235_v7 = vld [vmem:[#allocation14 + $0x2f8] sm:$0xff]  ;;  %v2218_v11 = vld [vmem:[#allocation14 + $0x270] sm:$0xff] }
 0x34c   :  { %2057 = vst [vmem:[#allocation4 + $0x4] sm:$0xff] %v2053_v4  ;;  %v2050_v21 = vmul.f32 0.2, %v2036_v17  ;;  %v4102_v22 = vadd.f32 %v4101_v20, %v4100_v19  ;;  %v2228_v4 = vld [vmem:[#allocation14 + $0x2c0] sm:$0xff]  ;;  %v2261_v20 = vld [vmem:[#allocation14 + $0x3c8] sm:$0xff]  ;;  %v4708_v63 = vpack.c.bf16 %v2235_v7, %v2234_v6 }
 0x34d   :  { %v2260_v19 = vld [vmem:[#allocation14 + $0x3c0] sm:$0xff]  ;;  %v2831_v7 = vld [vmem:[#allocation20 + $0x8] sm:$0xff] }
 0x34e   :  { %v2054_v56 = vmax.f32 %v2036_v17, %v2050_v21  ;;  %v2041_v23 = vadd.f32 %v4102_v22, %v1956_v5  ;;  %v4103_v24 = vpop.f32.mrb[54].mxu1  ;;  %v4720_v5 = vpack.c.bf16 %v2257_v46, %v2256_v37  ;;  %v2229_v17 = vld [vmem:[#allocation14 + $0x2c8] sm:$0xff]  ;;  %v4728_v38 = vpack.c.bf16 %v2261_v20, %v2260_v19 }
 0x34f   :  { %v4104_v25 = vpop.f32.mrb[55].mxu1  ;;  %v4696_v36 = vpack.c.bf16 %v2229_v17, %v2228_v4  ;;  %v4700_v37 = vpack.c.bf16 %v2231_v43, %v2230_v41  ;;  %v2284_v4 = vld [vmem:[#allocation14 + $0x480] sm:$0xff]  ;;  %v2285_v17 = vld [vmem:[#allocation14 + $0x488] sm:$0xff]  ;;  %v4710_v19 = vpack.c.bf16 %v2219_v12, %v2218_v11  ;;  %v2290_v43 = vld [vmem:[#allocation14 + $0x4b0] sm:$0xff] }
 0x350   :  { %2058 = vst [vmem:[#allocation4 + $0xc] sm:$0xff] %v2054_v56  ;;  %v2051_v27 = vmul.f32 0.2, %v2041_v23  ;;  %v4105_v52 = vadd.f32 %v4104_v25, %v4103_v24  ;;  %v4724_v25 = vpack.c.bf16 %v2259_v9, %v2258_v8  ;;  %v2273_v41 = vld [vmem:[#allocation14 + $0x428] sm:$0xff] }
 0x351   :  { %v2830_v11 = vld [vmem:[#allocation20] sm:$0xff] }
 0x352   :  { %v2055_v28 = vmax.f32 %v2041_v23, %v2051_v27  ;;  %v2046_v2 = vadd.f32 %v4105_v52, %v1961_v44  ;;  %v2227_v44 = vld [vmem:[#allocation14 + $0x2b8] sm:$0xff] }
 0x353   :  { %v4692_v24 = vpack.c.bf16 %v2227_v44, %v2226_v62  ;;  %v2266_v62 = vld [vmem:[#allocation14 + $0x3f0] sm:$0xff]  ;;  %v2267_v44 = vld [vmem:[#allocation14 + $0x3f8] sm:$0xff] }
 0x354   :  { %2059 = vst [vmem:[#allocation4 + $0x1c] sm:$0xff] %v2055_v28  ;;  %v2052_v35 = vmul.f32 0.2, %v2046_v2  ;;  %v4740_v13 = vpack.c.bf16 %v2267_v44, %v2266_v62  ;;  %v2833_v62 = vld [vmem:[#allocation20 + $0x18] sm:$0xff]  ;;  %v2959_v44 = vld [vmem:[#allocation20 + $0x408] sm:$0xff] }
 0x356   :  { %v2056_v45 = vmax.f32 %v2046_v2, %v2052_v35 }
 0x357   :  { %v2067_v47 = vld [vmem:[#allocation4 + $0x1] ss:$2 sm:$0xff]  ;;  %v2061_v49 = vld [vmem:[#allocation4] ss:$2 sm:$0xff] }
 0x358   :  { %v2079_v48 = vld [vmem:[#allocation4 + $0x3] ss:$2 sm:$0xff]  ;;  %2060 = vst [vmem:[#allocation4 + $0x24] sm:$0xff] %v2056_v45  ;;  %2068 = vst [vmem:[#allocation6 + $0x8] sm:$0xff] %v2067_v47  ;;  %2371 = vmatprep.mubr.f32.mxu0 %v2067_v47  ;;  %v2073_v18 = vld [vmem:[#allocation4 + $0x2] ss:$2 sm:$0xff] }
 0x359   :  { %2080 = vst [vmem:[#allocation6 + $0x18] sm:$0xff] %v2079_v48  ;;  %2446 = vmatprep.mubr.f32.mxu1 %v2079_v48  ;;  %2062 = vst [vmem:[#allocation6] sm:$0xff] %v2061_v49  ;;  %v5783_v53 = vld [vmem:[#allocation4 + $0x5] ss:$2 sm:$0xff]  ;;  %2372 = vmatmul.mubr.f32.vlgmr.msra.gmra.mrb[64].mxu0 %v2061_v49  ;;  %v5789_v55 = vld [vmem:[#allocation4 + $0x4] ss:$2 sm:$0xff] }
 0x35a   :  { %v5785_v54 = vld [vmem:[#allocation4 + $0x7] ss:$2 sm:$0xff]  ;;  %2074 = vst [vmem:[#allocation6 + $0x10] sm:$0xff] %v2073_v18  ;;  %2447 = vmatmul.mubr.f32.vlgmr.msra.gmra.mrb[56].mxu1 %v2073_v18  ;;  %2092 = vst [vmem:[#allocation6 + $0x28] sm:$0xff] %v5783_v53  ;;  %v5791_v57 = vld [vmem:[#allocation4 + $0x6] ss:$2 sm:$0xff]  ;;  %4683 = vmatpush3.bf16.msra.mxu0 %v4682_v60  ;;  %v4698_v60 = vpack.c.bf16 %v2213_v10, %v2212_v33 }
 0x35b   :  { %2104 = vst [vmem:[#allocation6 + $0x38] sm:$0xff] %v5785_v54  ;;  %v5793_v58 = vld [vmem:[#allocation4 + $0x9] ss:$2 sm:$0xff]  ;;  %4715 = vmatpush3.bf16.msra.mxu1 %v4714_v59  ;;  %2086 = vst [vmem:[#allocation6 + $0x20] sm:$0xff] %v5789_v55  ;;  %v5798_v3 = vld [vmem:[#allocation4 + $0x8] ss:$2 sm:$0xff]  ;;  %4685 = vmatprep.subr.bf16.mxu0 %v4684_v34  ;;  %v4730_v59 = vpack.c.bf16 %v2245_v40, %v2244_v39 }
 0x35c   :  { %2098 = vst [vmem:[#allocation6 + $0x30] sm:$0xff] %v5791_v57  ;;  %2116 = vst [vmem:[#allocation6 + $0x48] sm:$0xff] %v5793_v58  ;;  %4717 = vmatprep.subr.bf16.mxu1 %v4716_v51  ;;  %v2263_v45 = vld [vmem:[#allocation14 + $0x3d8] sm:$0xff]  ;;  %v2246_v47 = vld [vmem:[#allocation14 + $0x350] sm:$0xff] }
 0x35d   :  { %2110 = vst [vmem:[#allocation6 + $0x40] sm:$0xff] %v5798_v3  ;;  %v4732_v46 = vpack.c.bf16 %v2263_v45, %v2262_v26  ;;  %v2247_v48 = vld [vmem:[#allocation14 + $0x358] sm:$0xff]  ;;  %v2232_v49 = vld [vmem:[#allocation14 + $0x2e0] sm:$0xff]  ;;  %v2233_v34 = vld [vmem:[#allocation14 + $0x2e8] sm:$0xff] }
 0x35e   :  { %4687 = vmatpush3.bf16.msra.mxu0 %v4686_v42  ;;  %v2264_v51 = vld [vmem:[#allocation14 + $0x3e0] sm:$0xff]  ;;  %v2265_v18 = vld [vmem:[#allocation14 + $0x3e8] sm:$0xff]  ;;  %v4704_v0 = vpack.c.bf16 %v2233_v34, %v2232_v49  ;;  %v2271_v33 = vld [vmem:[#allocation14 + $0x418] sm:$0xff] }
 0x35f   :  { %4719 = vmatpush3.bf16.msra.mxu1 %v4718_v61  ;;  %v2070_v21 = vld [vmem:[#allocation4 + $0x19] ss:$2 sm:$0xff]  ;;  %4689 = vmatprep.subr.bf16.mxu0 %v4688_v50  ;;  %v2064_v56 = vld [vmem:[#allocation4 + $0x18] ss:$2 sm:$0xff]  ;;  %v4736_v1 = vpack.c.bf16 %v2265_v18, %v2264_v51 }
 0x360   :  { %v2082_v22 = vld [vmem:[#allocation4 + $0x1b] ss:$2 sm:$0xff]  ;;  %4721 = vmatprep.subr.bf16.mxu1 %v4720_v5  ;;  %2376 = vmatprep.mubr.f32.mxu0 %v2070_v21  ;;  %v2076_v23 = vld [vmem:[#allocation4 + $0x1a] ss:$2 sm:$0xff]  ;;  %v4744_v21 = vpack.c.bf16 %v2285_v17, %v2284_v4  ;;  %v2837_v17 = vld [vmem:[#allocation20 + $0x38] sm:$0xff] }
 0x361   :  { %2451 = vmatprep.mubr.f32.mxu1 %v2082_v22  ;;  %v5801_v27 = vld [vmem:[#allocation4 + $0x1d] ss:$2 sm:$0xff]  ;;  %2377 = vmatmul.mubr.f32.gmra.mrb[66].mxu0 %v2064_v56  ;;  %v5805_v28 = vld [vmem:[#allocation4 + $0x1c] ss:$2 sm:$0xff]  ;;  %v2216_v42 = vld [vmem:[#allocation14 + $0x260] sm:$0xff] }
 0x362   :  { %v5803_v52 = vld [vmem:[#allocation4 + $0x1f] ss:$2 sm:$0xff]  ;;  %2452 = vmatmul.mubr.f32.gmra.mrb[58].mxu1 %v2076_v23  ;;  %v5807_v2 = vld [vmem:[#allocation4 + $0x1e] ss:$2 sm:$0xff]  ;;  %4691 = vmatpush3.bf16.msra.mxu0 %v4690_v14  ;;  %v2248_v50 = vld [vmem:[#allocation14 + $0x360] sm:$0xff] }
 0x363   :  { %v5809_v29 = vld [vmem:[#allocation4 + $0x21] ss:$2 sm:$0xff]  ;;  %4723 = vmatpush3.bf16.msra.mxu1 %v4722_v16  ;;  %v5811_v35 = vld [vmem:[#allocation4 + $0x20] ss:$2 sm:$0xff]  ;;  %2521 = vmatprep.mubr.f32.mxu0 %v5783_v53  ;;  %v4702_v53 = vpack.c.bf16 %v2215_v32, %v2214_v15  ;;  %v2268_v22 = vld [vmem:[#allocation14 + $0x400] sm:$0xff] }
 0x364   :  { %2596 = vmatprep.mubr.f32.mxu1 %v5785_v54  ;;  %4693 = vmatprep.subr.bf16.mxu0 %v4692_v24  ;;  %v4734_v54 = vpack.c.bf16 %v2247_v48, %v2246_v47  ;;  %v2217_v61 = vld [vmem:[#allocation14 + $0x268] sm:$0xff]  ;;  %v2250_v14 = vld [vmem:[#allocation14 + $0x370] sm:$0xff]  ;;  %v2251_v16 = vld [vmem:[#allocation14 + $0x378] sm:$0xff] }
 0x365   :  { %4725 = vmatprep.subr.bf16.mxu1 %v4724_v25  ;;  %v2249_v5 = vld [vmem:[#allocation14 + $0x368] sm:$0xff]  ;;  %v4706_v8 = vpack.c.bf16 %v2217_v61, %v2216_v42  ;;  %v4742_v20 = vpack.c.bf16 %v2251_v16, %v2250_v14  ;;  %v2286_v23 = vld [vmem:[#allocation14 + $0x490] sm:$0xff]  ;;  %v2287_v24 = vld [vmem:[#allocation14 + $0x498] sm:$0xff] }
 0x366   :  { %4695 = vmatpush3.bf16.msra.mxu0 %v4694_v30  ;;  %v4738_v9 = vpack.c.bf16 %v2249_v5, %v2248_v50  ;;  %v2269_v56 = vld [vmem:[#allocation14 + $0x408] sm:$0xff]  ;;  %v4748_v30 = vpack.c.bf16 %v2287_v24, %v2286_v23  ;;  %v2288_v10 = vld [vmem:[#allocation14 + $0x4a0] sm:$0xff]  ;;  %v2274_v26 = vld [vmem:[#allocation14 + $0x430] sm:$0xff] }
 0x367   :  { %4727 = vmatpush3.bf16.msra.mxu1 %v4726_v31  ;;  %4697 = vmatprep.subr.bf16.mxu0 %v4696_v36  ;;  %v4746_v25 = vpack.c.bf16 %v2269_v56, %v2268_v22  ;;  %v2270_v31 = vld [vmem:[#allocation14 + $0x410] sm:$0xff]  ;;  %v2289_v36 = vld [vmem:[#allocation14 + $0x4a8] sm:$0xff]  ;;  %v2272_v40 = vld [vmem:[#allocation14 + $0x420] sm:$0xff] }
 0x368   :  { %4729 = vmatprep.subr.bf16.mxu1 %v4728_v38  ;;  %v4750_v38 = vpack.c.bf16 %v2271_v33, %v2270_v31  ;;  %v4752_v39 = vpack.c.bf16 %v2289_v36, %v2288_v10  ;;  %v2292_v45 = vld [vmem:[#allocation14 + $0x4c0] sm:$0xff]  ;;  %v2278_v47 = vld [vmem:[#allocation14 + $0x450] sm:$0xff]  ;;  %v2279_v48 = vld [vmem:[#allocation14 + $0x458] sm:$0xff] }
 0x369   :  { %v2276_v32 = vld [vmem:[#allocation14 + $0x440] sm:$0xff]  ;;  %v2297_v34 = vld [vmem:[#allocation14 + $0x4e8] sm:$0xff]  ;;  %v4766_v51 = vpack.c.bf16 %v2279_v48, %v2278_v47  ;;  %v2298_v42 = vld [vmem:[#allocation14 + $0x4f0] sm:$0xff] }
 0x36a   :  { %4699 = vmatpush3.bf16.msra.mxu0 %v4698_v60  ;;  %v2293_v60 = vld [vmem:[#allocation14 + $0x4c8] sm:$0xff]  ;;  %v2296_v49 = vld [vmem:[#allocation14 + $0x4e0] sm:$0xff]  ;;  %v2299_v61 = vld [vmem:[#allocation14 + $0x4f8] sm:$0xff] }
 0x36b   :  { %4731 = vmatpush3.bf16.msra.mxu1 %v4730_v59  ;;  %4701 = vmatprep.subr.bf16.mxu0 %v4700_v37  ;;  %v4760_v15 = vpack.c.bf16 %v2293_v60, %v2292_v45  ;;  %v2294_v37 = vld [vmem:[#allocation14 + $0x4d0] sm:$0xff]  ;;  %v4768_v18 = vpack.c.bf16 %v2297_v34, %v2296_v49  ;;  %v2283_v5 = vld [vmem:[#allocation14 + $0x478] sm:$0xff]  ;;  %v2958_v14 = vld [vmem:[#allocation20 + $0x400] sm:$0xff] }
 0x36c   :  { %4733 = vmatprep.subr.bf16.mxu1 %v4732_v46  ;;  %v2282_v50 = vld [vmem:[#allocation14 + $0x470] sm:$0xff]  ;;  %v2962_v23 = vld [vmem:[#allocation20 + $0x420] sm:$0xff]  ;;  %v2841_v31 = vld [vmem:[#allocation20 + $0x58] sm:$0xff] }
 0x36d   :  { %v4774_v6 = vpack.c.bf16 %v2283_v5, %v2282_v50  ;;  %v2960_v16 = vld [vmem:[#allocation20 + $0x410] sm:$0xff]  ;;  %v2967_v33 = vld [vmem:[#allocation20 + $0x448] sm:$0xff]  ;;  %v2969_v36 = vld [vmem:[#allocation20 + $0x458] sm:$0xff] }
 0x36e   :  { %4703 = vmatpush3.bf16.msra.mxu0 %v4702_v53  ;;  %v2280_v53 = vld [vmem:[#allocation14 + $0x460] sm:$0xff]  ;;  %v4906_v4 = vpack.c.bf16 %v2960_v16, %v2958_v14  ;;  %v2964_v24 = vld [vmem:[#allocation20 + $0x430] sm:$0xff]  ;;  %v2975_v48 = vld [vmem:[#allocation20 + $0x488] sm:$0xff] }
 0x36f   :  { %4735 = vmatpush3.bf16.msra.mxu1 %v4734_v54  ;;  %4705 = vmatprep.subr.bf16.mxu0 %v4704_v0  ;;  %v2281_v54 = vld [vmem:[#allocation14 + $0x468] sm:$0xff]  ;;  %v2973_v60 = vld [vmem:[#allocation20 + $0x478] sm:$0xff] }
 0x370   :  { %4737 = vmatprep.subr.bf16.mxu1 %v4736_v1  ;;  %v4770_v0 = vpack.c.bf16 %v2281_v54, %v2280_v53  ;;  %v4772_v1 = vpack.c.bf16 %v2299_v61, %v2298_v42  ;;  %v2849_v47 = vld [vmem:[#allocation20 + $0x98] sm:$0xff]  ;;  %v2974_v42 = vld [vmem:[#allocation20 + $0x480] sm:$0xff]  ;;  %v2976_v61 = vld [vmem:[#allocation20 + $0x490] sm:$0xff] }
 0x371   :  { %v2977_v34 = vld [vmem:[#allocation20 + $0x498] sm:$0xff]  ;;  %v2979_v5 = vld [vmem:[#allocation20 + $0x4a8] sm:$0xff] }
 0x372   :  { %4707 = vmatpush3.bf16.msra.mxu0 %v4706_v8  ;;  %v4776_v8 = vpack.c.bf16 %v2833_v62, %v2831_v7  ;;  %v4920_v53 = vpack.c.bf16 %v2977_v34, %v2975_v48  ;;  %v2853_v50 = vld [vmem:[#allocation20 + $0xb8] sm:$0xff]  ;;  %v2850_v62 = vld [vmem:[#allocation20 + $0xa0] sm:$0xff]  ;;  %v2983_v16 = vld [vmem:[#allocation20 + $0x4c8] sm:$0xff] }
 0x373   :  { %4739 = vmatpush3.bf16.msra.mxu1 %v4738_v9  ;;  %4709 = vmatprep.subr.bf16.mxu0 %v4708_v63  ;;  %v2961_v9 = vld [vmem:[#allocation20 + $0x418] sm:$0xff]  ;;  %v2832_v63 = vld [vmem:[#allocation20 + $0x10] sm:$0xff] }
 0x374   :  { %4741 = vmatprep.subr.bf16.mxu1 %v4740_v13  ;;  %v4904_v13 = vpack.c.bf16 %v2961_v9, %v2959_v44  ;;  %v4778_v12 = vpack.c.bf16 %v2832_v63, %v2830_v11  ;;  %v2981_v7 = vld [vmem:[#allocation20 + $0x4b8] sm:$0xff]  ;;  %v2852_v44 = vld [vmem:[#allocation20 + $0xb0] sm:$0xff]  ;;  %v2978_v11 = vld [vmem:[#allocation20 + $0x4a0] sm:$0xff] }
 0x375   :  { %v4798_v9 = vpack.c.bf16 %v2852_v44, %v2850_v62  ;;  %v2980_v63 = vld [vmem:[#allocation20 + $0x4b0] sm:$0xff]  ;;  %v2857_v14 = vld [vmem:[#allocation20 + $0xd8] sm:$0xff]  ;;  %v2998_v44 = vld [vmem:[#allocation20 + $0x540] sm:$0xff] }
 0x376   :  { %4711 = vmatpush3.bf16.msra.mxu0 %v4710_v19  ;;  %v2965_v19 = vld [vmem:[#allocation20 + $0x438] sm:$0xff]  ;;  %v2868_v48 = vld [vmem:[#allocation20 + $0x130] sm:$0xff] }
 0x377   :  { %4743 = vmatpush3.bf16.msra.mxu1 %v4742_v20  ;;  %4745 = vmatprep.subr.bf16.mxu0 %v4744_v21  ;;  %v2834_v20 = vld [vmem:[#allocation20 + $0x20] sm:$0xff]  ;;  %v2836_v21 = vld [vmem:[#allocation20 + $0x30] sm:$0xff] }
 0x378   :  { %4905 = vmatprep.subr.bf16.mxu1 %v4904_v13  ;;  %v4782_v56 = vpack.c.bf16 %v2836_v21, %v2834_v20  ;;  %v4926_v13 = vpack.c.bf16 %v2980_v63, %v2978_v11  ;;  %v2982_v20 = vld [vmem:[#allocation20 + $0x4c0] sm:$0xff]  ;;  %v2984_v21 = vld [vmem:[#allocation20 + $0x4d0] sm:$0xff] }
 0x379   :  { %2522 = vmatmul.mubr.f32.vlgmr.msra.gmra.mrb[68].mxu0 %v5789_v55  ;;  %v2291_v55 = vld [vmem:[#allocation14 + $0x4b8] sm:$0xff] }
 0x37a   :  { %2597 = vmatmul.mubr.f32.vlgmr.msra.gmra.mrb[60].mxu1 %v5791_v57  ;;  %2526 = vmatprep.mubr.f32.mxu0 %v5801_v27  ;;  %v4754_v57 = vpack.c.bf16 %v2273_v41, %v2272_v40  ;;  %v4756_v27 = vpack.c.bf16 %v2291_v55, %v2290_v43  ;;  %v4912_v40 = vpack.c.bf16 %v2969_v36, %v2967_v33  ;;  %v2966_v43 = vld [vmem:[#allocation20 + $0x440] sm:$0xff]  ;;  %v2968_v55 = vld [vmem:[#allocation20 + $0x450] sm:$0xff] }
 0x37b   :  { %2601 = vmatprep.mubr.f32.mxu1 %v5803_v52  ;;  %4747 = vmatpush3.bf16.msra.mxu0 %v4746_v25  ;;  %v2275_v52 = vld [vmem:[#allocation14 + $0x438] sm:$0xff]  ;;  %v4910_v25 = vpack.c.bf16 %v2964_v24, %v2962_v23  ;;  %v2987_v24 = vld [vmem:[#allocation20 + $0x4e8] sm:$0xff] }
 0x37c   :  { %4749 = vmatprep.subr.bf16.mxu0 %v4748_v30  ;;  %v4758_v59 = vpack.c.bf16 %v2275_v52, %v2274_v26  ;;  %4907 = vmatpush1.bf16.msra.mxu1 %v4906_v4  ;;  %v2839_v30 = vld [vmem:[#allocation20 + $0x48] sm:$0xff]  ;;  %v2845_v26 = vld [vmem:[#allocation20 + $0x78] sm:$0xff]  ;;  %v2860_v33 = vld [vmem:[#allocation20 + $0xf0] sm:$0xff] }
 0x37d   :  { %2527 = vmatmul.mubr.f32.gmra.mrb[70].mxu0 %v5805_v28  ;;  %v2277_v28 = vld [vmem:[#allocation14 + $0x448] sm:$0xff]  ;;  %v4784_v10 = vpack.c.bf16 %v2841_v31, %v2839_v30  ;;  %v2861_v23 = vld [vmem:[#allocation20 + $0xf8] sm:$0xff]  ;;  %v2872_v62 = vld [vmem:[#allocation20 + $0x150] sm:$0xff] }
 0x37e   :  { %2602 = vmatmul.mubr.f32.gmra.mrb[62].mxu1 %v5807_v2  ;;  %2671 = vmatprep.mubr.f32.mxu0 %v5793_v58  ;;  %v2295_v2 = vld [vmem:[#allocation14 + $0x4d8] sm:$0xff]  ;;  %v4762_v46 = vpack.c.bf16 %v2277_v28, %v2276_v32  ;;  %v2971_v52 = vld [vmem:[#allocation20 + $0x468] sm:$0xff]  ;;  %v2858_v31 = vld [vmem:[#allocation20 + $0xe0] sm:$0xff] }
 0x37f   :  { %4751 = vmatpush3.bf16.msra.mxu0 %v4750_v38  ;;  %v4764_v58 = vpack.c.bf16 %v2295_v2, %v2294_v37  ;;  %v2838_v38 = vld [vmem:[#allocation20 + $0x40] sm:$0xff]  ;;  %v4916_v32 = vpack.c.bf16 %v2973_v60, %v2971_v52  ;;  %v2972_v2 = vld [vmem:[#allocation20 + $0x470] sm:$0xff]  ;;  %v2989_v30 = vld [vmem:[#allocation20 + $0x4f8] sm:$0xff]  ;;  %v4806_v36 = vpack.c.bf16 %v2860_v33, %v2858_v31 }
 0x380   :  { %4753 = vmatprep.subr.bf16.mxu0 %v4752_v39  ;;  %v2840_v39 = vld [vmem:[#allocation20 + $0x50] sm:$0xff]  ;;  %v2970_v37 = vld [vmem:[#allocation20 + $0x460] sm:$0xff]  ;;  %v2879_v31 = vld [vmem:[#allocation20 + $0x188] sm:$0xff] }
 0x381   :  { %v4786_v41 = vpack.c.bf16 %v2840_v39, %v2838_v38  ;;  %v2986_v38 = vld [vmem:[#allocation20 + $0x4e0] sm:$0xff]  ;;  %v2988_v39 = vld [vmem:[#allocation20 + $0x4f0] sm:$0xff]  ;;  %v2881_v33 = vld [vmem:[#allocation20 + $0x198] sm:$0xff] }
 0x382   :  { %v2864_v52 = vld [vmem:[#allocation20 + $0x110] sm:$0xff] }
 0x383   :  { %4755 = vmatpush3.bf16.msra.mxu0 %v4754_v57  ;;  %v4914_v57 = vpack.c.bf16 %v2968_v55, %v2966_v43  ;;  %v2865_v43 = vld [vmem:[#allocation20 + $0x118] sm:$0xff]  ;;  %v2991_v55 = vld [vmem:[#allocation20 + $0x508] sm:$0xff] }
 0x384   :  { %4757 = vmatprep.subr.bf16.mxu0 %v4756_v27  ;;  %v2843_v27 = vld [vmem:[#allocation20 + $0x68] sm:$0xff] }
 0x385   :  { %v4788_v45 = vpack.c.bf16 %v2845_v26, %v2843_v27  ;;  %v2993_v27 = vld [vmem:[#allocation20 + $0x518] sm:$0xff]  ;;  %v2862_v26 = vld [vmem:[#allocation20 + $0x100] sm:$0xff] }
 0x386   :  { %v4810_v60 = vpack.c.bf16 %v2864_v52, %v2862_v26  ;;  %v3008_v26 = vld [vmem:[#allocation20 + $0x590] sm:$0xff]  ;;  %v2883_v52 = vld [vmem:[#allocation20 + $0x1a8] sm:$0xff] }
 0x387   :  { %4759 = vmatpush3.bf16.msra.mxu0 %v4758_v59  ;;  %v2842_v59 = vld [vmem:[#allocation20 + $0x60] sm:$0xff] }
 0x388   :  { %4761 = vmatprep.subr.bf16.mxu0 %v4760_v15  ;;  %v2844_v15 = vld [vmem:[#allocation20 + $0x70] sm:$0xff] }
 0x389   :  { %v4790_v28 = vpack.c.bf16 %v2844_v15, %v2842_v59  ;;  %v2990_v59 = vld [vmem:[#allocation20 + $0x500] sm:$0xff]  ;;  %v2992_v15 = vld [vmem:[#allocation20 + $0x510] sm:$0xff] }
 0x38b   :  { %4763 = vmatpush3.bf16.msra.mxu0 %v4762_v46  ;;  %v4918_v46 = vpack.c.bf16 %v2972_v2, %v2970_v37  ;;  %v2869_v37 = vld [vmem:[#allocation20 + $0x138] sm:$0xff]  ;;  %v2995_v2 = vld [vmem:[#allocation20 + $0x528] sm:$0xff] }
 0x38c   :  { %4765 = vmatprep.subr.bf16.mxu0 %v4764_v58  ;;  %v2847_v58 = vld [vmem:[#allocation20 + $0x88] sm:$0xff] }
 0x38d   :  { %v4792_v49 = vpack.c.bf16 %v2849_v47, %v2847_v58  ;;  %v2997_v58 = vld [vmem:[#allocation20 + $0x538] sm:$0xff]  ;;  %v2866_v47 = vld [vmem:[#allocation20 + $0x120] sm:$0xff] }
 0x38e   :  { %v4814_v34 = vpack.c.bf16 %v2868_v48, %v2866_v47  ;;  %v2882_v47 = vld [vmem:[#allocation20 + $0x1a0] sm:$0xff]  ;;  %v2884_v48 = vld [vmem:[#allocation20 + $0x1b0] sm:$0xff] }
 0x38f   :  { %4767 = vmatpush3.bf16.msra.mxu0 %v4766_v51  ;;  %v2846_v51 = vld [vmem:[#allocation20 + $0x80] sm:$0xff] }
 0x390   :  { %4769 = vmatprep.subr.bf16.mxu0 %v4768_v18  ;;  %v2848_v18 = vld [vmem:[#allocation20 + $0x90] sm:$0xff] }
 0x391   :  { %v4794_v54 = vpack.c.bf16 %v2848_v18, %v2846_v51  ;;  %v2994_v51 = vld [vmem:[#allocation20 + $0x520] sm:$0xff]  ;;  %v2996_v18 = vld [vmem:[#allocation20 + $0x530] sm:$0xff] }
 0x393   :  { %4771 = vmatpush3.bf16.msra.mxu0 %v4770_v0  ;;  %v4922_v0 = vpack.c.bf16 %v2976_v61, %v2974_v42  ;;  %v2873_v42 = vld [vmem:[#allocation20 + $0x158] sm:$0xff] }
 0x394   :  { %4773 = vmatprep.subr.bf16.mxu0 %v4772_v1  ;;  %v2851_v1 = vld [vmem:[#allocation20 + $0xa8] sm:$0xff] }
 0x397   :  { %4775 = vmatpush3.bf16.msra.mxu0 %v4774_v6  ;;  %v4796_v6 = vpack.c.bf16 %v2853_v50, %v2851_v1  ;;  %v3001_v1 = vld [vmem:[#allocation20 + $0x558] sm:$0xff]  ;;  %v2870_v50 = vld [vmem:[#allocation20 + $0x140] sm:$0xff] }
 0x398   :  { %4777 = vmatprep.subr.bf16.mxu0 %v4776_v8  ;;  %v4924_v8 = vpack.c.bf16 %v2981_v7, %v2979_v5 }
 0x39a   :  { %2672 = vmatmul.mubr.f32.vlgmr.msra.gmra.mrb[72].mxu0 %v5798_v3  ;;  %v2835_v3 = vld [vmem:[#allocation20 + $0x28] sm:$0xff] }
 0x39b   :  { %2676 = vmatprep.mubr.f32.mxu0 %v5809_v29  ;;  %4779 = vmatpush1.bf16.msra.mxu0 %v4778_v12  ;;  %v2963_v29 = vld [vmem:[#allocation20 + $0x428] sm:$0xff] }
 0x39c   :  { %v4908_v22 = vpack.c.bf16 %v2965_v19, %v2963_v29  ;;  %v2855_v12 = vld [vmem:[#allocation20 + $0xc8] sm:$0xff]  ;;  %v2856_v29 = vld [vmem:[#allocation20 + $0xd0] sm:$0xff] }
 0x39d   :  { %v4800_v4 = vpack.c.bf16 %v2857_v14, %v2855_v12 }
 0x39e   :  { %2677 = vmatmul.mubr.f32.gmra.mrb[74].mxu0 %v5811_v35  ;;  %v4780_v35 = vpack.c.bf16 %v2837_v17, %v2835_v3  ;;  %4909 = vmatprep.subr.bf16.mxu1 %v4908_v22  ;;  %v2985_v3 = vld [vmem:[#allocation20 + $0x4d8] sm:$0xff]  ;;  %v2854_v17 = vld [vmem:[#allocation20 + $0xc0] sm:$0xff]  ;;  %v4930_v22 = vpack.c.bf16 %v2984_v21, %v2982_v20  ;;  %v2876_v20 = vld [vmem:[#allocation20 + $0x170] sm:$0xff] }
 0x39f   :  { %4911 = vmatpush1.bf16.msra.mxu1 %v4910_v25  ;;  %v4802_v19 = vpack.c.bf16 %v2856_v29, %v2854_v17  ;;  %v3003_v17 = vld [vmem:[#allocation20 + $0x568] sm:$0xff] }
 0x3a0   :  { %4781 = vmatprep.subr.bf16.mxu0 %v4780_v35  ;;  %4913 = vmatprep.subr.bf16.mxu1 %v4912_v40  ;;  %v4928_v35 = vpack.c.bf16 %v2985_v3, %v2983_v16  ;;  %v4934_v40 = vpack.c.bf16 %v2988_v39, %v2986_v38  ;;  %v2877_v3 = vld [vmem:[#allocation20 + $0x178] sm:$0xff]  ;;  %v2878_v39 = vld [vmem:[#allocation20 + $0x180] sm:$0xff] }
 0x3a1   :  { %4783 = vmatpush1.bf16.msra.mxu0 %v4782_v56  ;;  %v2859_v56 = vld [vmem:[#allocation20 + $0xe8] sm:$0xff]  ;;  %v3009_v38 = vld [vmem:[#allocation20 + $0x598] sm:$0xff] }
 0x3a2   :  { %4785 = vmatprep.subr.bf16.mxu0 %v4784_v10  ;;  %v4804_v25 = vpack.c.bf16 %v2861_v23, %v2859_v56  ;;  %v4932_v10 = vpack.c.bf16 %v2989_v30, %v2987_v24  ;;  %v3002_v23 = vld [vmem:[#allocation20 + $0x560] sm:$0xff]  ;;  %v3004_v24 = vld [vmem:[#allocation20 + $0x570] sm:$0xff] }
 0x3a3   :  { %4915 = vmatpush1.bf16.msra.mxu1 %v4914_v57 }
 0x3a4   :  { %4917 = vmatprep.subr.bf16.mxu1 %v4916_v32  ;;  %v4938_v32 = vpack.c.bf16 %v2992_v15, %v2990_v59  ;;  %v2885_v15 = vld [vmem:[#allocation20 + $0x1b8] sm:$0xff] }
 0x3a5   :  { %4787 = vmatpush1.bf16.msra.mxu0 %v4786_v41  ;;  %v2863_v41 = vld [vmem:[#allocation20 + $0x108] sm:$0xff] }
 0x3a6   :  { %4789 = vmatprep.subr.bf16.mxu0 %v4788_v45  ;;  %v4808_v57 = vpack.c.bf16 %v2865_v43, %v2863_v41  ;;  %v4936_v45 = vpack.c.bf16 %v2993_v27, %v2991_v55  ;;  %v3006_v27 = vld [vmem:[#allocation20 + $0x580] sm:$0xff] }
 0x3a7   :  { %4919 = vmatpush1.bf16.msra.mxu1 %v4918_v46  ;;  %v4954_v59 = vpack.c.bf16 %v3008_v26, %v3006_v27 }
 0x3a8   :  { %4921 = vmatprep.subr.bf16.mxu1 %v4920_v53  ;;  %v4942_v53 = vpack.c.bf16 %v2996_v18, %v2994_v51  ;;  %v3012_v51 = vld [vmem:[#allocation20 + $0x5b0] sm:$0xff]  ;;  %v2887_v18 = vld [vmem:[#allocation20 + $0x1c8] sm:$0xff] }
 0x3a9   :  { %4791 = vmatpush1.bf16.msra.mxu0 %v4790_v28  ;;  %v2867_v28 = vld [vmem:[#allocation20 + $0x128] sm:$0xff] }
 0x3aa   :  { %4793 = vmatprep.subr.bf16.mxu0 %v4792_v49  ;;  %v4812_v46 = vpack.c.bf16 %v2869_v37, %v2867_v28  ;;  %v4940_v49 = vpack.c.bf16 %v2997_v58, %v2995_v2  ;;  %v3013_v28 = vld [vmem:[#allocation20 + $0x5b8] sm:$0xff] }
 0x3ab   :  { %4923 = vmatpush1.bf16.msra.mxu1 %v4922_v0  ;;  %v2999_v0 = vld [vmem:[#allocation20 + $0x548] sm:$0xff] }
 0x3ac   :  { %4925 = vmatprep.subr.bf16.mxu1 %v4924_v8  ;;  %v4944_v7 = vpack.c.bf16 %v3001_v1, %v2999_v0  ;;  %v3000_v8 = vld [vmem:[#allocation20 + $0x550] sm:$0xff]  ;;  %v3015_v0 = vld [vmem:[#allocation20 + $0x5c8] sm:$0xff]  ;;  %v3017_v1 = vld [vmem:[#allocation20 + $0x5d8] sm:$0xff] }
 0x3ad   :  { %4795 = vmatpush1.bf16.msra.mxu0 %v4794_v54  ;;  %v2871_v54 = vld [vmem:[#allocation20 + $0x148] sm:$0xff]  ;;  %v4946_v12 = vpack.c.bf16 %v3000_v8, %v2998_v44 }
 0x3ae   :  { %4797 = vmatprep.subr.bf16.mxu0 %v4796_v6  ;;  %v4816_v61 = vpack.c.bf16 %v2873_v42, %v2871_v54  ;;  %v2891_v8 = vld [vmem:[#allocation20 + $0x1e8] sm:$0xff] }
 0x3af   :  { %4927 = vmatpush1.bf16.msra.mxu1 %v4926_v13  ;;  %v4818_v13 = vpack.c.bf16 %v2872_v62, %v2870_v50  ;;  %v2886_v50 = vld [vmem:[#allocation20 + $0x1c0] sm:$0xff]  ;;  %v3016_v62 = vld [vmem:[#allocation20 + $0x5d0] sm:$0xff] }
 0x3b0   :  { %4929 = vmatprep.subr.bf16.mxu1 %v4928_v35  ;;  %v3005_v35 = vld [vmem:[#allocation20 + $0x578] sm:$0xff] }
 0x3b1   :  { %4799 = vmatpush1.bf16.msra.mxu0 %v4798_v9  ;;  %v5825_v9 = vld [vmem:[#allocation15] ss:$0 sm:$0xff] }
 0x3b2   :  { %4801 = vmatprep.subr.bf16.mxu0 %v4800_v4  ;;  %v2875_v4 = vld [vmem:[#allocation20 + $0x168] sm:$0xff] }
 0x3b3   :  { %4931 = vmatpush1.bf16.msra.mxu1 %v4930_v22  ;;  %v4820_v29 = vpack.c.bf16 %v2877_v3, %v2875_v4  ;;  %v4948_v22 = vpack.c.bf16 %v3005_v35, %v3003_v17  ;;  %v2892_v3 = vld [vmem:[#allocation20 + $0x1f0] sm:$0xff]  ;;  %v3018_v17 = vld [vmem:[#allocation20 + $0x5e0] sm:$0xff] }
 0x3b4   :  { %4933 = vmatprep.subr.bf16.mxu1 %v4932_v10  ;;  %v3007_v10 = vld [vmem:[#allocation20 + $0x588] sm:$0xff] }
 0x3b5   :  { %4803 = vmatpush1.bf16.msra.mxu0 %v4802_v19  ;;  %v2874_v19 = vld [vmem:[#allocation20 + $0x160] sm:$0xff]  ;;  %v4952_v55 = vpack.c.bf16 %v3009_v38, %v3007_v10 }
 0x3b6   :  { %4805 = vmatprep.subr.bf16.mxu0 %v4804_v25  ;;  %v4822_v56 = vpack.c.bf16 %v2876_v20, %v2874_v19  ;;  %v4950_v25 = vpack.c.bf16 %v3004_v24, %v3002_v23  ;;  %v2895_v20 = vld [vmem:[#allocation20 + $0x208] sm:$0xff]  ;;  %v3025_v23 = vld [vmem:[#allocation20 + $0x618] sm:$0xff] }
 0x3b7   :  { %4935 = vmatpush1.bf16.msra.mxu1 %v4934_v40  ;;  %v2880_v40 = vld [vmem:[#allocation20 + $0x190] sm:$0xff] }
 0x3b8   :  { %4937 = vmatprep.subr.bf16.mxu1 %v4936_v45 }
 0x3b9   :  { %4807 = vmatpush1.bf16.msra.mxu0 %v4806_v36  ;;  %v4824_v36 = vpack.c.bf16 %v2881_v33, %v2879_v31 }
 0x3ba   :  { %4809 = vmatprep.subr.bf16.mxu0 %v4808_v57  ;;  %v4826_v57 = vpack.c.bf16 %v2880_v40, %v2878_v39 }
 0x3bb   :  { %4939 = vmatpush1.bf16.msra.mxu1 %v4938_v32  ;;  %v3011_v32 = vld [vmem:[#allocation20 + $0x5a8] sm:$0xff] }
 0x3bc   :  { %4941 = vmatprep.subr.bf16.mxu1 %v4940_v49  ;;  %v4956_v58 = vpack.c.bf16 %v3013_v28, %v3011_v32  ;;  %v3010_v49 = vld [vmem:[#allocation20 + $0x5a0] sm:$0xff] }
 0x3bd   :  { %4811 = vmatpush1.bf16.msra.mxu0 %v4810_v60  ;;  %v4958_v42 = vpack.c.bf16 %v3012_v51, %v3010_v49 }
 0x3be   :  { %4813 = vmatprep.subr.bf16.mxu0 %v4812_v46  ;;  %v4828_v46 = vpack.c.bf16 %v2885_v15, %v2883_v52 }
 0x3bf   :  { %4943 = vmatpush1.bf16.msra.mxu1 %v4942_v53  ;;  %v2889_v53 = vld [vmem:[#allocation20 + $0x1d8] sm:$0xff] }
 0x3c0   :  { %4945 = vmatprep.subr.bf16.mxu1 %v4944_v7  ;;  %v3014_v7 = vld [vmem:[#allocation20 + $0x5c0] sm:$0xff] }
 0x3c1   :  { %4815 = vmatpush1.bf16.msra.mxu0 %v4814_v34  ;;  %v4830_v34 = vpack.c.bf16 %v2884_v48, %v2882_v47 }
 0x3c2   :  { %4817 = vmatprep.subr.bf16.mxu0 %v4816_v61  ;;  %v4832_v61 = vpack.c.bf16 %v2889_v53, %v2887_v18 }
 0x3c3   :  { %4947 = vmatpush1.bf16.msra.mxu1 %v4946_v12  ;;  %v4962_v12 = vpack.c.bf16 %v3016_v62, %v3014_v7 }
 0x3c4   :  { %4949 = vmatprep.subr.bf16.mxu1 %v4948_v22 }
 0x3c5   :  { %4819 = vmatpush1.bf16.msra.mxu0 %v4818_v13 }
 0x3c6   :  { %4821 = vmatprep.subr.bf16.mxu0 %v4820_v29  ;;  %v3020_v29 = vld [vmem:[#allocation20 + $0x5f0] sm:$0xff] }
 0x3c7   :  { %4951 = vmatpush1.bf16.msra.mxu1 %v4950_v25  ;;  %v4966_v19 = vpack.c.bf16 %v3020_v29, %v3018_v17 }
 0x3c8   :  { %4953 = vmatprep.subr.bf16.mxu1 %v4952_v55 }
 0x3c9   :  { %4823 = vmatpush1.bf16.msra.mxu0 %v4822_v56  ;;  %v3023_v56 = vld [vmem:[#allocation20 + $0x608] sm:$0xff] }
 0x3ca   :  { %4825 = vmatprep.subr.bf16.mxu0 %v4824_v36  ;;  %v4968_v24 = vpack.c.bf16 %v3025_v23, %v3023_v56 }
 0x3cb   :  { %4955 = vmatpush1.bf16.msra.mxu1 %v4954_v59 }
 0x3cc   :  { %4957 = vmatprep.subr.bf16.mxu1 %v4956_v58 }
 0x3cd   :  { %4827 = vmatpush1.bf16.msra.mxu0 %v4826_v57 }
 0x3ce   :  { %4829 = vmatprep.subr.bf16.mxu0 %v4828_v46 }
 0x3cf   :  { %4959 = vmatpush1.bf16.msra.mxu1 %v4958_v42 }
 0x3d1   :  { %4831 = vmatpush1.bf16.msra.mxu0 %v4830_v34 }
 0x3d2   :  { %4833 = vmatprep.subr.bf16.mxu0 %v4832_v61 }
 0x42c   :  { %v4138_v5 = vpop.f32.mrb[64].mxu0 }
 0x42d   :  { %v4176_v6 = vpop.f32.mrb[56].mxu1  ;;  %v4139_v11 = vpop.f32.mrb[65].mxu0 }
 0x42e   :  { %v4177_v63 = vpop.f32.mrb[57].mxu1  ;;  %v4140_v14 = vadd.f32 %v4139_v11, %v4138_v5  ;;  %v4960_v5 = vpack.c.bf16 %v3017_v1, %v3015_v0  ;;  %v2893_v11 = vld [vmem:[#allocation20 + $0x1f8] sm:$0xff] }
 0x42f   :  { %v4178_v16 = vadd.f32 %v4177_v63, %v4176_v6  ;;  %v2888_v6 = vld [vmem:[#allocation20 + $0x1d0] sm:$0xff]  ;;  %v3019_v63 = vld [vmem:[#allocation20 + $0x5e8] sm:$0xff] }
 0x430   :  { %v2374_v21 = vadd.f32 %v4140_v14, %v5825_v9  ;;  %v4834_v13 = vpack.c.bf16 %v2888_v6, %v2886_v50  ;;  %v2890_v14 = vld [vmem:[#allocation20 + $0x1e0] sm:$0xff]  ;;  %4961 = vmatprep.subr.bf16.mxu1 %v4960_v5 }
 0x431   :  { %4963 = vmatpush1.bf16.msra.mxu1 %v4962_v12  ;;  %v4838_v35 = vpack.c.bf16 %v2892_v3, %v2890_v14 }
 0x432   :  { %v5828_v30 = vadd.f32 %v4178_v16, %v2374_v21  ;;  %v4836_v16 = vpack.c.bf16 %v2893_v11, %v2891_v8  ;;  %4835 = vmatpush1.bf16.msra.mxu0 %v4834_v13  ;;  %v2897_v21 = vld [vmem:[#allocation20 + $0x218] sm:$0xff] }
 0x433   :  { %v4840_v22 = vpack.c.bf16 %v2897_v21, %v2895_v20 }
 0x434   :  { %v4141_v41 = vpop.f32.mrb[66].mxu0  ;;  %4837 = vmatprep.subr.bf16.mxu0 %v4836_v16 }
 0x435   :  { %v4179_v43 = vpop.f32.mrb[58].mxu1  ;;  %v4142_v45 = vpop.f32.mrb[67].mxu0 }
 0x436   :  { %v4180_v60 = vpop.f32.mrb[59].mxu1  ;;  %v4143_v37 = vadd.f32 %v4142_v45, %v4141_v41  ;;  %4839 = vmatpush1.bf16.msra.mxu0 %v4838_v35 }
 0x437   :  { %v4181_v2 = vadd.f32 %v4180_v60, %v4179_v43  ;;  %4841 = vmatprep.subr.bf16.mxu0 %v4840_v22 }
 0x438   :  { %v2379_v54 = vadd.f32 %v4143_v37, %v5825_v9  ;;  %v3021_v9 = vld [vmem:[#allocation20 + $0x5f8] sm:$0xff] }
 0x439   :  { %v4964_v4 = vpack.c.bf16 %v3021_v9, %v3019_v63  ;;  %v3604_v63 = vld [vmem:[#allocation17] ss:$0 sm:$0xff]  ;;  %v3605_v9 = vld [vmem:[#allocation18] ss:$0 sm:$0xff] }
 0x43a   :  { %v2454_v44 = vadd.f32 %v4181_v2, %v2379_v54 }
 0x43b   :  { %4965 = vmatprep.subr.bf16.mxu1 %v4964_v4 }
 0x43c   :  { %4967 = vmatpush1.bf16.msra.mxu1 %v4966_v19 }
 0x43d   :  { %4969 = vmatprep.subr.bf16.mxu1 %v4968_v24 }
 0x44c   :  { %v4214_v25 = vpop.f32.mrb[68].mxu0 }
 0x44d   :  { %v4252_v31 = vpop.f32.mrb[60].mxu1  ;;  %v4215_v33 = vpop.f32.mrb[69].mxu0 }
 0x44e   :  { %v4253_v10 = vpop.f32.mrb[61].mxu1  ;;  %v4216_v36 = vadd.f32 %v4215_v33, %v4214_v25 }
 0x44f   :  { %v4254_v38 = vadd.f32 %v4253_v10, %v4252_v31 }
 0x450   :  { %v2524_v39 = vadd.f32 %v4216_v36, %v5828_v30  ;;  %v4217_v40 = vpop.f32.mrb[70].mxu0 }
 0x451   :  { %v4255_v41 = vpop.f32.mrb[62].mxu1  ;;  %v4218_v43 = vpop.f32.mrb[71].mxu0 }
 0x452   :  { %v4256_v55 = vpop.f32.mrb[63].mxu1  ;;  %v2599_v57 = vadd.f32 %v4254_v38, %v2524_v39  ;;  %v4219_v27 = vadd.f32 %v4218_v43, %v4217_v40  ;;  %v2894_v39 = vld [vmem:[#allocation20 + $0x200] sm:$0xff]  ;;  %v2896_v40 = vld [vmem:[#allocation20 + $0x210] sm:$0xff] }
 0x453   :  { %v4257_v26 = vadd.f32 %v4256_v55, %v4255_v41 }
 0x454   :  { %v2529_v52 = vadd.f32 %v4219_v27, %v2454_v44  ;;  %v2899_v27 = vld [vmem:[#allocation20 + $0x228] sm:$0xff] }
 0x456   :  { %v2604_v45 = vadd.f32 %v4257_v26, %v2529_v52  ;;  %v2901_v26 = vld [vmem:[#allocation20 + $0x238] sm:$0xff]  ;;  %v3022_v52 = vld [vmem:[#allocation20 + $0x600] sm:$0xff] }
 0x46d   :  { %v4290_v60 = vpop.f32.mrb[72].mxu0 }
 0x46e   :  { %v4291_v59 = vpop.f32.mrb[73].mxu0 }
 0x46f   :  { %v4292_v15 = vadd.f32 %v4291_v59, %v4290_v60 }
 0x471   :  { %v2674_v32 = vadd.f32 %v4292_v15, %v2599_v57  ;;  %v4293_v28 = vpop.f32.mrb[74].mxu0 }
 0x472   :  { %v4294_v37 = vpop.f32.mrb[75].mxu0 }
 0x473   :  { %v4295_v2 = vadd.f32 %v4294_v37, %v4293_v28  ;;  %v3029_v28 = vld [vmem:[#allocation20 + $0x638] sm:$0xff] }
 0x475   :  { %v2679_v46 = vadd.f32 %v4295_v2, %v2604_v45  ;;  %v3024_v45 = vld [vmem:[#allocation20 + $0x610] sm:$0xff] }
 0x477   :  { %v2682_v58 = vadd.f32 %v2679_v46, %v2674_v32 }
 0x479   :  { %v2683_v47 = vrot.slane %v2682_v58, 4 }
 0x47b   :  { %v2684_v30 = vadd.f32 %v2683_v47, %v2682_v58  ;;  %v2900_v58 = vld [vmem:[#allocation20 + $0x230] sm:$0xff] }
 0x47d   :  { %v2685_v48 = vrot.slane %v2684_v30, 2 }
 0x47f   :  { %v2686_v49 = vadd.f32 %v2685_v48, %v2684_v30  ;;  %v4842_v48 = vpack.c.bf16 %v2896_v40, %v2894_v39  ;;  %v3034_v39 = vld [vmem:[#allocation20 + $0x660] sm:$0xff]  ;;  %v3036_v40 = vld [vmem:[#allocation20 + $0x670] sm:$0xff] }
 0x481   :  { %v2687_v34 = vrot.slane %v2686_v49, 1 }
 0x483   :  { %v2688_v51 = vadd.f32 %v2687_v34, %v2686_v49 }
 0x485   :  { %v2690_v18 = vmul.f32 0.0625, %v2688_v51 }
 0x487   :  { %v2691_v53 = vsub.f32 %v2674_v32, %v2690_v18  ;;  %v2692_v54 = vsub.f32 %v2679_v46, %v2690_v18  ;;  %v3027_v32 = vld [vmem:[#allocation20 + $0x628] sm:$0xff]  ;;  %v2898_v46 = vld [vmem:[#allocation20 + $0x220] sm:$0xff]  ;;  %v4844_v18 = vpack.c.bf16 %v2901_v26, %v2899_v27  ;;  %v2912_v26 = vld [vmem:[#allocation20 + $0x290] sm:$0xff] }
 0x488   :  { %v2910_v27 = vld [vmem:[#allocation20 + $0x280] sm:$0xff] }
 0x489   :  { %v2693_v42 = vmul.f32 %v2691_v53, %v2691_v53  ;;  %v2694_v61 = vmul.f32 %v2692_v54, %v2692_v54 }
 0x48b   :  { %v2695_v0 = vadd.f32 %v2694_v61, %v2693_v42 }
 0x48d   :  { %v2696_v1 = vrot.slane %v2695_v0, 4 }
 0x48f   :  { %v2697_v50 = vadd.f32 %v2696_v1, %v2695_v0  ;;  %v4970_v0 = vpack.c.bf16 %v3024_v45, %v3022_v52  ;;  %v2905_v1 = vld [vmem:[#allocation20 + $0x258] sm:$0xff]  ;;  %v4982_v52 = vpack.c.bf16 %v3036_v40, %v3034_v39  ;;  %v2915_v45 = vld [vmem:[#allocation20 + $0x2a8] sm:$0xff] }
 0x490   :  { %v3061_v39 = vld [vmem:[#allocation20 + $0x738] sm:$0xff] }
 0x491   :  { %v2698_v5 = vrot.slane %v2697_v50, 2 }
 0x493   :  { %v2699_v6 = vadd.f32 %v2698_v5, %v2697_v50 }
 0x495   :  { %v2700_v7 = vrot.slane %v2699_v6, 1 }
 0x497   :  { %v2701_v62 = vadd.f32 %v2700_v7, %v2699_v6  ;;  %v4972_v6 = vpack.c.bf16 %v3029_v28, %v3027_v32  ;;  %v3026_v7 = vld [vmem:[#allocation20 + $0x620] sm:$0xff]  ;;  %v3040_v32 = vld [vmem:[#allocation20 + $0x690] sm:$0xff]  ;;  %v4858_v28 = vpack.c.bf16 %v2912_v26, %v2910_v27  ;;  %v2937_v27 = vld [vmem:[#allocation20 + $0x358] sm:$0xff] }
 0x499   :  { %v2702_v44 = vmul.f32 0.0625, %v2701_v62  ;;  %v3028_v62 = vld [vmem:[#allocation20 + $0x630] sm:$0xff] }
 0x49b   :  { %v2703_v8 = vadd.f32 1e-05, %v2702_v44 }
 0x49d   :  { %5123 = vrsqrt.f32 %v2703_v8 }
 0x4a7   :  { %v5124_v11 = vpop.eup %5123 }
 0x4a8   :  { %v2705_v13 = vmul.f32 %v5124_v11, %v2691_v53  ;;  %v2706_v12 = vmul.f32 %v5124_v11, %v2692_v54  ;;  %v2903_v53 = vld [vmem:[#allocation20 + $0x248] sm:$0xff]  ;;  %v4846_v11 = vpack.c.bf16 %v2900_v58, %v2898_v46  ;;  %v2914_v58 = vld [vmem:[#allocation20 + $0x2a0] sm:$0xff] }
 0x4aa   :  { %v2714_v14 = vmul.f32 %v3604_v63, %v2705_v13  ;;  %v2715_v16 = vmul.f32 %v3604_v63, %v2706_v12  ;;  %v3031_v63 = vld [vmem:[#allocation20 + $0x648] sm:$0xff]  ;;  %v3033_v13 = vld [vmem:[#allocation20 + $0x658] sm:$0xff] }
 0x4ac   :  { %v2723_v4 = vadd.f32 %v3605_v9, %v2714_v14  ;;  %v2724_v3 = vadd.f32 %v3605_v9, %v2715_v16  ;;  %v4848_v14 = vpack.c.bf16 %v2905_v1, %v2903_v53  ;;  %v2902_v16 = vld [vmem:[#allocation20 + $0x240] sm:$0xff]  ;;  %v2920_v1 = vld [vmem:[#allocation20 + $0x2d0] sm:$0xff] }
 0x4ae   :  { %v2725_v17 = vmul.f32 0.2, %v2723_v4  ;;  %v2726_v29 = vmul.f32 0.2, %v2724_v3 }
 0x4b0   :  { %v2727_v35 = vmax.f32 %v2723_v4, %v2725_v17  ;;  %v2728_v19 = vmax.f32 %v2724_v3, %v2726_v29  ;;  %v2904_v4 = vld [vmem:[#allocation20 + $0x250] sm:$0xff]  ;;  %v4974_v3 = vpack.c.bf16 %v3028_v62, %v3026_v7  ;;  %v2907_v17 = vld [vmem:[#allocation20 + $0x268] sm:$0xff]  ;;  %v2909_v29 = vld [vmem:[#allocation20 + $0x278] sm:$0xff] }
 0x4b1   :  { %v3046_v62 = vld [vmem:[#allocation20 + $0x6c0] sm:$0xff] }
 0x4b2   :  { %2729 = vst [vmem:[#allocation5 + $0x4] sm:$0xff] %v2727_v35  ;;  %2730 = vst [vmem:[#allocation5 + $0x14] sm:$0xff] %v2728_v19  ;;  %v4976_v19 = vpack.c.bf16 %v3033_v13, %v3031_v63  ;;  %v3053_v63 = vld [vmem:[#allocation20 + $0x6f8] sm:$0xff] }
 0x4b9   :  { %v2740_v20 = vld [vmem:[#allocation5 + $0x1] ss:$2 sm:$0xf]  ;;  %v2743_v21 = vld [vmem:[#allocation5 + $0x11] ss:$2 sm:$0xf] }
 0x4ba   :  { %2741 = vst [vmem:[#allocation6 + $0x8] sm:$0xf] %v2740_v20  ;;  %v2745_v22 = vrot.slane %v2743_v21, 4  ;;  %v2776_v56 = vld [vmem:[#allocation5 + $0x5] ss:$2 sm:$0xf] }
 0x4bb   :  { %2777 = vst [vmem:[#allocation6 + $0x28] sm:$0xf] %v2776_v56  ;;  %v2779_v23 = vld [vmem:[#allocation5 + $0x15] ss:$2 sm:$0xf]  ;;  %v3030_v20 = vld [vmem:[#allocation20 + $0x640] sm:$0xff] }
 0x4bc   :  { %v2731_v24 = vld [vmem:[#allocation5] ss:$2 sm:$0xf]  ;;  %2747 = vst [vmem:[#allocation6 + $0x8] sm:$0xf0] %v2745_v22  ;;  %v2781_v25 = vrot.slane %v2779_v23, 4  ;;  %v4850_v22 = vpack.c.bf16 %v2904_v4, %v2902_v16 }
 0x4bd   :  { %2732 = vst [vmem:[#allocation6] sm:$0xf] %v2731_v24  ;;  %v2734_v31 = vld [vmem:[#allocation5 + $0x10] ss:$2 sm:$0xf]  ;;  %v3032_v21 = vld [vmem:[#allocation20 + $0x650] sm:$0xff]  ;;  %v4852_v24 = vpack.c.bf16 %v2909_v29, %v2907_v17 }
 0x4be   :  { %v2736_v33 = vrot.slane %v2734_v31, 4  ;;  %v2767_v10 = vld [vmem:[#allocation5 + $0x4] ss:$2 sm:$0xf]  ;;  %2783 = vst [vmem:[#allocation6 + $0x28] sm:$0xf0] %v2781_v25 }
 0x4bf   :  { %2768 = vst [vmem:[#allocation6 + $0x20] sm:$0xf] %v2767_v10  ;;  %v2770_v36 = vld [vmem:[#allocation5 + $0x14] ss:$2 sm:$0xf]  ;;  %v3037_v23 = vld [vmem:[#allocation20 + $0x678] sm:$0xff] }
 0x4c0   :  { %v2758_v38 = vld [vmem:[#allocation5 + $0x3] ss:$2 sm:$0xf]  ;;  %2738 = vst [vmem:[#allocation6] sm:$0xf0] %v2736_v33  ;;  %v2772_v41 = vrot.slane %v2770_v36, 4  ;;  %v4978_v33 = vpack.c.bf16 %v3032_v21, %v3030_v20 }
 0x4c1   :  { %2759 = vst [vmem:[#allocation6 + $0x18] sm:$0xf] %v2758_v38  ;;  %v2761_v43 = vld [vmem:[#allocation5 + $0x13] ss:$2 sm:$0xf]  ;;  %v2906_v25 = vld [vmem:[#allocation20 + $0x260] sm:$0xff] }
 0x4c2   :  { %v2763_v55 = vrot.slane %v2761_v43, 4  ;;  %v2794_v57 = vld [vmem:[#allocation5 + $0x7] ss:$2 sm:$0xf]  ;;  %2774 = vst [vmem:[#allocation6 + $0x20] sm:$0xf0] %v2772_v41 }
 0x4c3   :  { %2795 = vst [vmem:[#allocation6 + $0x38] sm:$0xf] %v2794_v57  ;;  %v2797_v60 = vld [vmem:[#allocation5 + $0x17] ss:$2 sm:$0xf]  ;;  %v2821_v2 = vld [vmem:[#allocation6 + $0x8] sm:$0xff] }
 0x4c4   :  { %v2749_v59 = vld [vmem:[#allocation5 + $0x2] ss:$2 sm:$0xf]  ;;  %2765 = vst [vmem:[#allocation6 + $0x18] sm:$0xf0] %v2763_v55  ;;  %v2799_v15 = vrot.slane %v2797_v60, 4  ;;  %3226 = vmatprep.mubr.f32.mxu0 %v2821_v2 }
 0x4c5   :  { %2750 = vst [vmem:[#allocation6 + $0x10] sm:$0xf] %v2749_v59  ;;  %v2752_v37 = vld [vmem:[#allocation5 + $0x12] ss:$2 sm:$0xf]  ;;  %v2825_v51 = vld [vmem:[#allocation6 + $0x28] sm:$0xff] }
 0x4c6   :  { %v2754_v47 = vrot.slane %v2752_v37, 4  ;;  %v2785_v30 = vld [vmem:[#allocation5 + $0x6] ss:$2 sm:$0xf]  ;;  %2801 = vst [vmem:[#allocation6 + $0x38] sm:$0xf0] %v2799_v15  ;;  %3368 = vmatprep.mubr.f32.mxu1 %v2825_v51 }
 0x4c7   :  { %2786 = vst [vmem:[#allocation6 + $0x30] sm:$0xf] %v2785_v30  ;;  %v2788_v49 = vld [vmem:[#allocation5 + $0x16] ss:$2 sm:$0xf]  ;;  %v2820_v61 = vld [vmem:[#allocation6] sm:$0xff] }
 0x4c8   :  { %v2812_v34 = vld [vmem:[#allocation5 + $0x9] ss:$2 sm:$0xf]  ;;  %2756 = vst [vmem:[#allocation6 + $0x10] sm:$0xf0] %v2754_v47  ;;  %v2790_v54 = vrot.slane %v2788_v49, 4  ;;  %3227 = vmatmul.mubr.f32.vlgmr.msra.gmra.mrb[76].mxu0 %v2820_v61 }
 0x4c9   :  { %2813 = vst [vmem:[#allocation6 + $0x48] sm:$0xf] %v2812_v34  ;;  %v2815_v42 = vld [vmem:[#allocation5 + $0x19] ss:$2 sm:$0xf]  ;;  %4843 = vmatpush1.bf16.msra.mxu0 %v4842_v48  ;;  %v2824_v8 = vld [vmem:[#allocation6 + $0x20] sm:$0xff] }
 0x4ca   :  { %v2817_v50 = vrot.slane %v2815_v42, 4  ;;  %v2803_v5 = vld [vmem:[#allocation5 + $0x8] ss:$2 sm:$0xf]  ;;  %2792 = vst [vmem:[#allocation6 + $0x30] sm:$0xf0] %v2790_v54  ;;  %3369 = vmatmul.mubr.f32.vlgmr.msra.gmra.mrb[64].mxu1 %v2824_v8  ;;  %4845 = vmatprep.subr.bf16.mxu0 %v4844_v18 }
 0x4cb   :  { %2804 = vst [vmem:[#allocation6 + $0x40] sm:$0xf] %v2803_v5  ;;  %v2806_v44 = vld [vmem:[#allocation5 + $0x18] ss:$2 sm:$0xf]  ;;  %4971 = vmatpush1.bf16.msra.mxu1 %v4970_v0  ;;  %v2913_v36 = vld [vmem:[#allocation20 + $0x298] sm:$0xff] }
 0x4cc   :  { %2819 = vst [vmem:[#allocation6 + $0x48] sm:$0xf0] %v2817_v50  ;;  %v2808_v12 = vrot.slane %v2806_v44, 4  ;;  %v2823_v9 = vld [vmem:[#allocation6 + $0x18] sm:$0xff]  ;;  %4973 = vmatprep.subr.bf16.mxu1 %v4972_v6  ;;  %v3041_v55 = vld [vmem:[#allocation20 + $0x698] sm:$0xff]  ;;  %v3038_v15 = vld [vmem:[#allocation20 + $0x680] sm:$0xff] }
 0x4cd   :  { %3297 = vmatprep.mubr.f32.mxu0 %v2823_v9  ;;  %v2827_v35 = vld [vmem:[#allocation6 + $0x38] sm:$0xff]  ;;  %4847 = vmatpush1.bf16.msra.mxu0 %v4846_v11  ;;  %v2917_v60 = vld [vmem:[#allocation20 + $0x2b8] sm:$0xff]  ;;  %v4986_v30 = vpack.c.bf16 %v3040_v32, %v3038_v15  ;;  %v3042_v51 = vld [vmem:[#allocation20 + $0x6a0] sm:$0xff] }
 0x4ce   :  { %2810 = vst [vmem:[#allocation6 + $0x40] sm:$0xf0] %v2808_v12  ;;  %3439 = vmatprep.mubr.f32.mxu1 %v2827_v35  ;;  %v3035_v56 = vld [vmem:[#allocation20 + $0x668] sm:$0xff]  ;;  %4849 = vmatprep.subr.bf16.mxu0 %v4848_v14  ;;  %v2908_v31 = vld [vmem:[#allocation20 + $0x270] sm:$0xff]  ;;  %v3045_v2 = vld [vmem:[#allocation20 + $0x6b8] sm:$0xff]  ;;  %v4860_v46 = vpack.c.bf16 %v2917_v60, %v2915_v45 }
 0x4cf   :  { %4975 = vmatpush1.bf16.msra.mxu1 %v4974_v3  ;;  %v2911_v10 = vld [vmem:[#allocation20 + $0x288] sm:$0xff]  ;;  %v4980_v38 = vpack.c.bf16 %v3037_v23, %v3035_v56  ;;  %v4854_v41 = vpack.c.bf16 %v2908_v31, %v2906_v25  ;;  %v2916_v47 = vld [vmem:[#allocation20 + $0x2b0] sm:$0xff]  ;;  %v2921_v49 = vld [vmem:[#allocation20 + $0x2d8] sm:$0xff] }
 0x4d0   :  { %4977 = vmatprep.subr.bf16.mxu1 %v4976_v19  ;;  %v3039_v43 = vld [vmem:[#allocation20 + $0x688] sm:$0xff]  ;;  %v4856_v57 = vpack.c.bf16 %v2913_v36, %v2911_v10  ;;  %v3044_v18 = vld [vmem:[#allocation20 + $0x6b0] sm:$0xff]  ;;  %v4862_v53 = vpack.c.bf16 %v2916_v47, %v2914_v58  ;;  %v3049_v42 = vld [vmem:[#allocation20 + $0x6d8] sm:$0xff] }
 0x4d1   :  { %4851 = vmatpush1.bf16.msra.mxu0 %v4850_v22  ;;  %v4984_v59 = vpack.c.bf16 %v3041_v55, %v3039_v43  ;;  %v3043_v37 = vld [vmem:[#allocation20 + $0x6a8] sm:$0xff]  ;;  %v2918_v0 = vld [vmem:[#allocation20 + $0x2c0] sm:$0xff]  ;;  %v4990_v50 = vpack.c.bf16 %v3044_v18, %v3042_v51  ;;  %v2925_v6 = vld [vmem:[#allocation20 + $0x2f8] sm:$0xff] }
 0x4d2   :  { %4853 = vmatprep.subr.bf16.mxu0 %v4852_v24  ;;  %v2919_v48 = vld [vmem:[#allocation20 + $0x2c8] sm:$0xff]  ;;  %v4988_v34 = vpack.c.bf16 %v3045_v2, %v3043_v37  ;;  %v3048_v44 = vld [vmem:[#allocation20 + $0x6d0] sm:$0xff]  ;;  %v4866_v8 = vpack.c.bf16 %v2920_v1, %v2918_v0  ;;  %v2922_v12 = vld [vmem:[#allocation20 + $0x2e0] sm:$0xff] }
 0x4d3   :  { %4979 = vmatpush1.bf16.msra.mxu1 %v4978_v33  ;;  %v3047_v54 = vld [vmem:[#allocation20 + $0x6c8] sm:$0xff]  ;;  %v4864_v61 = vpack.c.bf16 %v2921_v49, %v2919_v48  ;;  %v2924_v9 = vld [vmem:[#allocation20 + $0x2f0] sm:$0xff]  ;;  %v4994_v14 = vpack.c.bf16 %v3048_v44, %v3046_v62  ;;  %v2929_v4 = vld [vmem:[#allocation20 + $0x318] sm:$0xff] }
 0x4d4   :  { %4981 = vmatprep.subr.bf16.mxu1 %v4980_v38  ;;  %v2923_v5 = vld [vmem:[#allocation20 + $0x2e8] sm:$0xff]  ;;  %v4992_v7 = vpack.c.bf16 %v3049_v42, %v3047_v54  ;;  %v3050_v17 = vld [vmem:[#allocation20 + $0x6e0] sm:$0xff]  ;;  %v3052_v29 = vld [vmem:[#allocation20 + $0x6f0] sm:$0xff]  ;;  %v4870_v35 = vpack.c.bf16 %v2924_v9, %v2922_v12 }
 0x4d5   :  { %4855 = vmatpush1.bf16.msra.mxu0 %v4854_v41  ;;  %v3051_v11 = vld [vmem:[#allocation20 + $0x6e8] sm:$0xff]  ;;  %v4868_v13 = vpack.c.bf16 %v2925_v6, %v2923_v5  ;;  %v3057_v20 = vld [vmem:[#allocation20 + $0x718] sm:$0xff]  ;;  %v2926_v22 = vld [vmem:[#allocation20 + $0x300] sm:$0xff]  ;;  %v4998_v23 = vpack.c.bf16 %v3052_v29, %v3050_v17 }
 0x4d6   :  { %4857 = vmatprep.subr.bf16.mxu0 %v4856_v57  ;;  %v2927_v16 = vld [vmem:[#allocation20 + $0x308] sm:$0xff]  ;;  %v4996_v3 = vpack.c.bf16 %v3053_v63, %v3051_v11  ;;  %v2928_v56 = vld [vmem:[#allocation20 + $0x310] sm:$0xff]  ;;  %v2933_v25 = vld [vmem:[#allocation20 + $0x338] sm:$0xff] }
 0x4d7   :  { %4983 = vmatpush1.bf16.msra.mxu1 %v4982_v52  ;;  %v3055_v19 = vld [vmem:[#allocation20 + $0x708] sm:$0xff]  ;;  %v4872_v21 = vpack.c.bf16 %v2929_v4, %v2927_v16  ;;  %v3054_v33 = vld [vmem:[#allocation20 + $0x700] sm:$0xff]  ;;  %v3056_v10 = vld [vmem:[#allocation20 + $0x710] sm:$0xff]  ;;  %v4874_v36 = vpack.c.bf16 %v2928_v56, %v2926_v22 }
 0x4d8   :  { %4985 = vmatprep.subr.bf16.mxu1 %v4984_v59  ;;  %v2931_v24 = vld [vmem:[#allocation20 + $0x328] sm:$0xff]  ;;  %v5000_v31 = vpack.c.bf16 %v3057_v20, %v3055_v19  ;;  %v2930_v41 = vld [vmem:[#allocation20 + $0x320] sm:$0xff]  ;;  %v2932_v43 = vld [vmem:[#allocation20 + $0x330] sm:$0xff]  ;;  %v5002_v55 = vpack.c.bf16 %v3056_v10, %v3054_v33 }
 0x4d9   :  { %4859 = vmatpush1.bf16.msra.mxu0 %v4858_v28  ;;  %v3059_v38 = vld [vmem:[#allocation20 + $0x728] sm:$0xff]  ;;  %v4876_v40 = vpack.c.bf16 %v2933_v25, %v2931_v24  ;;  %v3058_v52 = vld [vmem:[#allocation20 + $0x720] sm:$0xff]  ;;  %v3060_v45 = vld [vmem:[#allocation20 + $0x730] sm:$0xff]  ;;  %v4878_v60 = vpack.c.bf16 %v2932_v43, %v2930_v41 }
 0x4da   :  { %4861 = vmatprep.subr.bf16.mxu0 %v4860_v46  ;;  %v2935_v57 = vld [vmem:[#allocation20 + $0x348] sm:$0xff]  ;;  %v5004_v26 = vpack.c.bf16 %v3061_v39, %v3059_v38  ;;  %v3065_v15 = vld [vmem:[#allocation20 + $0x758] sm:$0xff]  ;;  %v2934_v28 = vld [vmem:[#allocation20 + $0x340] sm:$0xff]  ;;  %v5006_v2 = vpack.c.bf16 %v3060_v45, %v3058_v52 }
 0x4db   :  { %4987 = vmatpush1.bf16.msra.mxu1 %v4986_v30  ;;  %v3063_v59 = vld [vmem:[#allocation20 + $0x748] sm:$0xff]  ;;  %v4880_v32 = vpack.c.bf16 %v2937_v27, %v2935_v57  ;;  %v2936_v37 = vld [vmem:[#allocation20 + $0x350] sm:$0xff]  ;;  %v2941_v58 = vld [vmem:[#allocation20 + $0x378] sm:$0xff] }
 0x4dc   :  { %4989 = vmatprep.subr.bf16.mxu1 %v4988_v34  ;;  %v2939_v46 = vld [vmem:[#allocation20 + $0x368] sm:$0xff]  ;;  %v5008_v47 = vpack.c.bf16 %v3065_v15, %v3063_v59  ;;  %v3062_v30 = vld [vmem:[#allocation20 + $0x740] sm:$0xff]  ;;  %v3064_v48 = vld [vmem:[#allocation20 + $0x750] sm:$0xff]  ;;  %v4882_v49 = vpack.c.bf16 %v2936_v37, %v2934_v28 }
 0x4dd   :  { %4863 = vmatpush1.bf16.msra.mxu0 %v4862_v53  ;;  %v3067_v34 = vld [vmem:[#allocation20 + $0x768] sm:$0xff]  ;;  %v3069_v51 = vld [vmem:[#allocation20 + $0x778] sm:$0xff]  ;;  %v4884_v18 = vpack.c.bf16 %v2941_v58, %v2939_v46  ;;  %v2938_v53 = vld [vmem:[#allocation20 + $0x360] sm:$0xff]  ;;  %v5010_v42 = vpack.c.bf16 %v3064_v48, %v3062_v30 }
 0x4de   :  { %4865 = vmatprep.subr.bf16.mxu0 %v4864_v61  ;;  %v2940_v54 = vld [vmem:[#allocation20 + $0x370] sm:$0xff]  ;;  %v2943_v61 = vld [vmem:[#allocation20 + $0x388] sm:$0xff]  ;;  %v2945_v0 = vld [vmem:[#allocation20 + $0x398] sm:$0xff]  ;;  %v5012_v1 = vpack.c.bf16 %v3069_v51, %v3067_v34 }
 0x4df   :  { %4991 = vmatpush1.bf16.msra.mxu1 %v4990_v50  ;;  %v3066_v50 = vld [vmem:[#allocation20 + $0x760] sm:$0xff]  ;;  %v3068_v5 = vld [vmem:[#allocation20 + $0x770] sm:$0xff]  ;;  %v4886_v6 = vpack.c.bf16 %v2940_v54, %v2938_v53  ;;  %v3073_v62 = vld [vmem:[#allocation20 + $0x798] sm:$0xff]  ;;  %v4888_v44 = vpack.c.bf16 %v2945_v0, %v2943_v61 }
 0x4e0   :  { %4993 = vmatprep.subr.bf16.mxu1 %v4992_v7  ;;  %v3071_v7 = vld [vmem:[#allocation20 + $0x788] sm:$0xff]  ;;  %v2944_v11 = vld [vmem:[#allocation20 + $0x390] sm:$0xff]  ;;  %v5014_v63 = vpack.c.bf16 %v3068_v5, %v3066_v50  ;;  %v2949_v12 = vld [vmem:[#allocation20 + $0x3b8] sm:$0xff] }
 0x4e1   :  { %4867 = vmatpush1.bf16.msra.mxu0 %v4866_v8  ;;  %v2942_v8 = vld [vmem:[#allocation20 + $0x380] sm:$0xff]  ;;  %v5016_v9 = vpack.c.bf16 %v3073_v62, %v3071_v7  ;;  %v3072_v16 = vld [vmem:[#allocation20 + $0x790] sm:$0xff]  ;;  %v3077_v17 = vld [vmem:[#allocation20 + $0x7b8] sm:$0xff] }
 0x4e2   :  { %4869 = vmatprep.subr.bf16.mxu0 %v4868_v13  ;;  %v2947_v13 = vld [vmem:[#allocation20 + $0x3a8] sm:$0xff]  ;;  %v4890_v4 = vpack.c.bf16 %v2944_v11, %v2942_v8  ;;  %v2948_v19 = vld [vmem:[#allocation20 + $0x3b0] sm:$0xff]  ;;  %v2953_v22 = vld [vmem:[#allocation20 + $0x3d8] sm:$0xff] }
 0x4e3   :  { %4995 = vmatpush1.bf16.msra.mxu1 %v4994_v14  ;;  %v3070_v14 = vld [vmem:[#allocation20 + $0x780] sm:$0xff]  ;;  %v4892_v29 = vpack.c.bf16 %v2949_v12, %v2947_v13  ;;  %v3076_v24 = vld [vmem:[#allocation20 + $0x7b0] sm:$0xff]  ;;  %v3081_v33 = vld [vmem:[#allocation20 + $0x7d8] sm:$0xff] }
 0x4e4   :  { %4997 = vmatprep.subr.bf16.mxu1 %v4996_v3  ;;  %v3075_v3 = vld [vmem:[#allocation20 + $0x7a8] sm:$0xff]  ;;  %v5018_v20 = vpack.c.bf16 %v3072_v16, %v3070_v14  ;;  %v2952_v38 = vld [vmem:[#allocation20 + $0x3d0] sm:$0xff]  ;;  %v2957_v41 = vld [vmem:[#allocation20 + $0x3f8] sm:$0xff] }
 0x4e5   :  { %4871 = vmatpush1.bf16.msra.mxu0 %v4870_v35  ;;  %v2946_v35 = vld [vmem:[#allocation20 + $0x3a0] sm:$0xff]  ;;  %v5020_v56 = vpack.c.bf16 %v3077_v17, %v3075_v3  ;;  %v3080_v57 = vld [vmem:[#allocation20 + $0x7d0] sm:$0xff]  ;;  %v3085_v52 = vld [vmem:[#allocation20 + $0x7f8] sm:$0xff] }
 0x4e6   :  { %4873 = vmatprep.subr.bf16.mxu0 %v4872_v21  ;;  %v2951_v21 = vld [vmem:[#allocation20 + $0x3c8] sm:$0xff]  ;;  %v4894_v25 = vpack.c.bf16 %v2948_v19, %v2946_v35  ;;  %v2956_v59 = vld [vmem:[#allocation20 + $0x3f0] sm:$0xff]  ;;  %v3082_v28 = vld [vmem:[#allocation20 + $0x7e0] sm:$0xff] }
 0x4e7   :  { %4999 = vmatpush1.bf16.msra.mxu1 %v4998_v23  ;;  %v3074_v23 = vld [vmem:[#allocation20 + $0x7a0] sm:$0xff]  ;;  %v4896_v10 = vpack.c.bf16 %v2953_v22, %v2951_v21  ;;  %v3084_v37 = vld [vmem:[#allocation20 + $0x7f0] sm:$0xff]  ;;  %v3087_v46 = vld [vmem:[#allocation20 + $0x808] sm:$0xff] }
 0x4e8   :  { %5001 = vmatprep.subr.bf16.mxu1 %v5000_v31  ;;  %v3079_v31 = vld [vmem:[#allocation20 + $0x7c8] sm:$0xff]  ;;  %v5022_v39 = vpack.c.bf16 %v3076_v24, %v3074_v23  ;;  %v3089_v58 = vld [vmem:[#allocation20 + $0x818] sm:$0xff]  ;;  %v3086_v48 = vld [vmem:[#allocation20 + $0x800] sm:$0xff] }
 0x4e9   :  { %4875 = vmatpush1.bf16.msra.mxu0 %v4874_v36  ;;  %v2950_v36 = vld [vmem:[#allocation20 + $0x3c0] sm:$0xff]  ;;  %v5024_v43 = vpack.c.bf16 %v3081_v33, %v3079_v31  ;;  %v5032_v30 = vpack.c.bf16 %v3089_v58, %v3087_v46  ;;  %v3091_v34 = vld [vmem:[#allocation20 + $0x828] sm:$0xff]  ;;  %v3093_v51 = vld [vmem:[#allocation20 + $0x838] sm:$0xff] }
 0x4ea   :  { %4877 = vmatprep.subr.bf16.mxu0 %v4876_v40  ;;  %v2955_v40 = vld [vmem:[#allocation20 + $0x3e8] sm:$0xff]  ;;  %v4898_v27 = vpack.c.bf16 %v2952_v38, %v2950_v36  ;;  %v5036_v54 = vpack.c.bf16 %v3093_v51, %v3091_v34  ;;  %v3092_v61 = vld [vmem:[#allocation20 + $0x830] sm:$0xff]  ;;  %v3097_v50 = vld [vmem:[#allocation20 + $0x858] sm:$0xff] }
 0x4eb   :  { %5003 = vmatpush1.bf16.msra.mxu1 %v5002_v55  ;;  %v3078_v55 = vld [vmem:[#allocation20 + $0x7c0] sm:$0xff]  ;;  %v4900_v45 = vpack.c.bf16 %v2957_v41, %v2955_v40  ;;  %v3099_v8 = vld [vmem:[#allocation20 + $0x868] sm:$0xff]  ;;  %v3101_v11 = vld [vmem:[#allocation20 + $0x878] sm:$0xff] }
 0x4ec   :  { %5005 = vmatprep.subr.bf16.mxu1 %v5004_v26  ;;  %v3083_v26 = vld [vmem:[#allocation20 + $0x7e8] sm:$0xff]  ;;  %v5026_v15 = vpack.c.bf16 %v3080_v57, %v3078_v55  ;;  %v2829_v5 = vld [vmem:[#allocation6 + $0x48] sm:$0xff]  ;;  %v5044_v13 = vpack.c.bf16 %v3101_v11, %v3099_v8  ;;  %v3140_v11 = vld [vmem:[#allocation20 + $0x9b0] sm:$0xff] }
 0x4ed   :  { %4879 = vmatpush1.bf16.msra.mxu0 %v4878_v60  ;;  %v2954_v60 = vld [vmem:[#allocation20 + $0x3e0] sm:$0xff]  ;;  %v3103_v14 = vld [vmem:[#allocation20 + $0x888] sm:$0xff]  ;;  %v3105_v16 = vld [vmem:[#allocation20 + $0x898] sm:$0xff] }
 0x4ee   :  { %4881 = vmatprep.subr.bf16.mxu0 %v4880_v32  ;;  %v5028_v32 = vpack.c.bf16 %v3085_v52, %v3083_v26  ;;  %v2826_v0 = vld [vmem:[#allocation6 + $0x30] sm:$0xff]  ;;  %v5048_v3 = vpack.c.bf16 %v3105_v16, %v3103_v14  ;;  %v3109_v19 = vld [vmem:[#allocation20 + $0x8b8] sm:$0xff]  ;;  %v3144_v16 = vld [vmem:[#allocation20 + $0x9d0] sm:$0xff] }
 0x4ef   :  { %5007 = vmatpush1.bf16.msra.mxu1 %v5006_v2  ;;  %v4902_v2 = vpack.c.bf16 %v2956_v59, %v2954_v60  ;;  %v3094_v62 = vld [vmem:[#allocation20 + $0x840] sm:$0xff]  ;;  %v3107_v35 = vld [vmem:[#allocation20 + $0x8a8] sm:$0xff]  ;;  %v3113_v24 = vld [vmem:[#allocation20 + $0x8d8] sm:$0xff] }
 0x4f0   :  { %5009 = vmatprep.subr.bf16.mxu1 %v5008_v47  ;;  %v5030_v47 = vpack.c.bf16 %v3084_v37, %v3082_v28  ;;  %v3098_v12 = vld [vmem:[#allocation20 + $0x860] sm:$0xff]  ;;  %v5052_v21 = vpack.c.bf16 %v3109_v19, %v3107_v35  ;;  %v3111_v23 = vld [vmem:[#allocation20 + $0x8c8] sm:$0xff]  ;;  %v3117_v38 = vld [vmem:[#allocation20 + $0x8f8] sm:$0xff] }
 0x4f1   :  { %4883 = vmatpush1.bf16.msra.mxu0 %v4882_v49  ;;  %v3088_v49 = vld [vmem:[#allocation20 + $0x810] sm:$0xff]  ;;  %v3102_v17 = vld [vmem:[#allocation20 + $0x880] sm:$0xff]  ;;  %v5056_v31 = vpack.c.bf16 %v3113_v24, %v3111_v23  ;;  %v3115_v36 = vld [vmem:[#allocation20 + $0x8e8] sm:$0xff]  ;;  %v3152_v23 = vlaneseq }
 0x4f2   :  { %4885 = vmatprep.subr.bf16.mxu0 %v4884_v18  ;;  %v2822_v18 = vld [vmem:[#allocation6 + $0x10] sm:$0xff]  ;;  %v5034_v53 = vpack.c.bf16 %v3088_v49, %v3086_v48  ;;  %v5060_v40 = vpack.c.bf16 %v3117_v38, %v3115_v36  ;;  %v3121_v57 = vld [vmem:[#allocation20 + $0x918] sm:$0xff]  ;;  %v3124_v37 = vld [vmem:[#allocation20 + $0x930] sm:$0xff] }
 0x4f3   :  { %5011 = vmatpush1.bf16.msra.mxu1 %v5010_v42  ;;  %v3090_v42 = vld [vmem:[#allocation20 + $0x820] sm:$0xff]  ;;  %v3119_v55 = vld [vmem:[#allocation20 + $0x908] sm:$0xff]  ;;  %v3125_v59 = vld [vmem:[#allocation20 + $0x938] sm:$0xff]  ;;  %v3153_v24 = vshrl.u32 %v3152_v23, 7 }
 0x4f4   :  { %5013 = vmatprep.subr.bf16.mxu1 %v5012_v1  ;;  %v3095_v1 = vld [vmem:[#allocation20 + $0x848] sm:$0xff]  ;;  %v3106_v22 = vld [vmem:[#allocation20 + $0x8a0] sm:$0xff]  ;;  %v5064_v26 = vpack.c.bf16 %v3121_v57, %v3119_v55  ;;  %v3129_v46 = vld [vmem:[#allocation20 + $0x958] sm:$0xff] }
 0x4f5   :  { %4887 = vmatpush1.bf16.msra.mxu0 %v4886_v6  ;;  %v5038_v6 = vpack.c.bf16 %v3092_v61, %v3090_v42  ;;  %v5040_v7 = vpack.c.bf16 %v3097_v50, %v3095_v1  ;;  %v3110_v33 = vld [vmem:[#allocation20 + $0x8c0] sm:$0xff]  ;;  %v3123_v60 = vld [vmem:[#allocation20 + $0x928] sm:$0xff]  ;;  %v3128_v48 = vld [vmem:[#allocation20 + $0x950] sm:$0xff] }
 0x4f6   :  { %4889 = vmatprep.subr.bf16.mxu0 %v4888_v44  ;;  %v3096_v44 = vld [vmem:[#allocation20 + $0x850] sm:$0xff]  ;;  %v3114_v41 = vld [vmem:[#allocation20 + $0x8e0] sm:$0xff]  ;;  %v3131_v49 = vld [vmem:[#allocation20 + $0x968] sm:$0xff] }
 0x4f7   :  { %5015 = vmatpush1.bf16.msra.mxu1 %v5014_v63  ;;  %v5042_v63 = vpack.c.bf16 %v3096_v44, %v3094_v62  ;;  %v3118_v52 = vld [vmem:[#allocation20 + $0x900] sm:$0xff]  ;;  %v3133_v34 = vld [vmem:[#allocation20 + $0x978] sm:$0xff]  ;;  %v3135_v42 = vld [vmem:[#allocation20 + $0x988] sm:$0xff] }
 0x4f8   :  { %5017 = vmatprep.subr.bf16.mxu1 %v5016_v9  ;;  %v3100_v9 = vld [vmem:[#allocation20 + $0x870] sm:$0xff]  ;;  %v3122_v28 = vld [vmem:[#allocation20 + $0x920] sm:$0xff]  ;;  %v3137_v61 = vld [vmem:[#allocation20 + $0x998] sm:$0xff] }
 0x4f9   :  { %4891 = vmatpush1.bf16.msra.mxu0 %v4890_v4  ;;  %v5046_v4 = vpack.c.bf16 %v3100_v9, %v3098_v12  ;;  %v5070_v58 = vpack.c.bf16 %v3124_v37, %v3122_v28  ;;  %v5080_v1 = vpack.c.bf16 %v3137_v61, %v3135_v42  ;;  %v3134_v50 = vld [vmem:[#allocation20 + $0x980] sm:$0xff]  ;;  %v3148_v19 = vld [vmem:[#allocation20 + $0x9f0] sm:$0xff] }
 0x4fa   :  { %4893 = vmatprep.subr.bf16.mxu0 %v4892_v29  ;;  %v3104_v29 = vld [vmem:[#allocation20 + $0x890] sm:$0xff]  ;;  %v3138_v8 = vld [vmem:[#allocation20 + $0x9a0] sm:$0xff] }
 0x4fb   :  { %5019 = vmatpush1.bf16.msra.mxu1 %v5018_v20  ;;  %v5050_v20 = vpack.c.bf16 %v3104_v29, %v3102_v17  ;;  %v5086_v12 = vpack.c.bf16 %v3140_v11, %v3138_v8  ;;  %v3142_v14 = vld [vmem:[#allocation20 + $0x9c0] sm:$0xff] }
 0x4fc   :  { %5021 = vmatprep.subr.bf16.mxu1 %v5020_v56  ;;  %v3108_v56 = vld [vmem:[#allocation20 + $0x8b0] sm:$0xff]  ;;  %v5090_v17 = vpack.c.bf16 %v3144_v16, %v3142_v14  ;;  %v3146_v35 = vld [vmem:[#allocation20 + $0x9e0] sm:$0xff] }
 0x4fd   :  { %4895 = vmatpush1.bf16.msra.mxu0 %v4894_v25  ;;  %v5054_v25 = vpack.c.bf16 %v3108_v56, %v3106_v22  ;;  %v3556_v11 = vld [vmem:[#allocation23] sm:$0x3] }
 0x4fe   :  { %4897 = vmatprep.subr.bf16.mxu0 %v4896_v10  ;;  %v3112_v10 = vld [vmem:[#allocation20 + $0x8d0] sm:$0xff] }
 0x4ff   :  { %5023 = vmatpush1.bf16.msra.mxu1 %v5022_v39  ;;  %v5058_v39 = vpack.c.bf16 %v3112_v10, %v3110_v33  ;;  %v3158_v33 = vsub.s32 1, %v3153_v24 }
 0x500   :  { %5025 = vmatprep.subr.bf16.mxu1 %v5024_v43  ;;  %v3116_v43 = vld [vmem:[#allocation20 + $0x8f0] sm:$0xff] }
 0x501   :  { %4899 = vmatpush1.bf16.msra.mxu0 %v4898_v27  ;;  %v5062_v27 = vpack.c.bf16 %v3116_v43, %v3114_v41 }
 0x502   :  { %4901 = vmatprep.subr.bf16.mxu0 %v4900_v45  ;;  %v3120_v45 = vld [vmem:[#allocation20 + $0x910] sm:$0xff] }
 0x503   :  { %5027 = vmatpush1.bf16.msra.mxu1 %v5026_v15  ;;  %v5066_v15 = vpack.c.bf16 %v3120_v45, %v3118_v52 }
 0x504   :  { %5029 = vmatprep.subr.bf16.mxu1 %v5028_v32  ;;  %v5068_v32 = vpack.c.bf16 %v3125_v59, %v3123_v60 }
 0x505   :  { %4903 = vmatpush1.bf16.msra.mxu0 %v4902_v2  ;;  %v3127_v2 = vld [vmem:[#allocation20 + $0x948] sm:$0xff] }
 0x507   :  { %5031 = vmatpush1.bf16.msra.mxu1 %v5030_v47  ;;  %v5072_v47 = vpack.c.bf16 %v3129_v46, %v3127_v2 }
 0x508   :  { %3298 = vmatmul.mubr.f32.vlgmr.msra.gmra.mrb[76].mxu0 %v2822_v18  ;;  %5033 = vmatprep.subr.bf16.mxu1 %v5032_v30  ;;  %v3126_v30 = vld [vmem:[#allocation20 + $0x940] sm:$0xff]  ;;  %v5076_v18 = vpack.c.bf16 %v3133_v34, %v3131_v49 }
 0x509   :  { %v5074_v51 = vpack.c.bf16 %v3128_v48, %v3126_v30 }
 0x50a   :  { %3440 = vmatmul.mubr.f32.vlgmr.msra.gmra.mrb[64].mxu1 %v2826_v0 }
 0x50b   :  { %5035 = vmatpush1.bf16.msra.mxu1 %v5034_v53  ;;  %3510 = vmatprep.mubr.f32.mxu1 %v2829_v5  ;;  %v3130_v53 = vld [vmem:[#allocation20 + $0x960] sm:$0xff]  ;;  %v3136_v5 = vld [vmem:[#allocation20 + $0x990] sm:$0xff] }
 0x50c   :  { %5037 = vmatprep.subr.bf16.mxu1 %v5036_v54  ;;  %v3132_v54 = vld [vmem:[#allocation20 + $0x970] sm:$0xff]  ;;  %v5082_v62 = vpack.c.bf16 %v3136_v5, %v3134_v50 }
 0x50d   :  { %v5078_v0 = vpack.c.bf16 %v3132_v54, %v3130_v53 }
 0x50f   :  { %5039 = vmatpush1.bf16.msra.mxu1 %v5038_v6  ;;  %v3139_v6 = vld [vmem:[#allocation20 + $0x9a8] sm:$0xff] }
 0x510   :  { %5041 = vmatprep.subr.bf16.mxu1 %v5040_v7  ;;  %v3141_v7 = vld [vmem:[#allocation20 + $0x9b8] sm:$0xff] }
 0x511   :  { %v5084_v44 = vpack.c.bf16 %v3141_v7, %v3139_v6 }
 0x513   :  { %5043 = vmatpush1.bf16.msra.mxu1 %v5042_v63  ;;  %v3143_v63 = vld [vmem:[#allocation20 + $0x9c8] sm:$0xff] }
 0x514   :  { %5045 = vmatprep.subr.bf16.mxu1 %v5044_v13  ;;  %v3145_v13 = vld [vmem:[#allocation20 + $0x9d8] sm:$0xff] }
 0x515   :  { %v5088_v9 = vpack.c.bf16 %v3145_v13, %v3143_v63  ;;  %v3570_v63 = vld [vmem:[#allocation24] sm:$0x3] }
 0x517   :  { %5047 = vmatpush1.bf16.msra.mxu1 %v5046_v4  ;;  %v3147_v4 = vld [vmem:[#allocation20 + $0x9e8] sm:$0xff] }
 0x518   :  { %5049 = vmatprep.subr.bf16.mxu1 %v5048_v3  ;;  %v3149_v3 = vld [vmem:[#allocation20 + $0x9f8] sm:$0xff] }
 0x519   :  { %v5092_v29 = vpack.c.bf16 %v3149_v3, %v3147_v4  ;;  %v3579_v3 = vrot.slane %v3570_v63, %v3158_v33 }
 0x51b   :  { %5051 = vmatpush1.bf16.msra.mxu1 %v5050_v20  ;;  %v5094_v20 = vpack.c.bf16 %v3148_v19, %v3146_v35 }
 0x51c   :  { %5053 = vmatprep.subr.bf16.mxu1 %v5052_v21  ;;  %v2828_v21 = vld [vmem:[#allocation6 + $0x40] sm:$0xff] }
 0x51f   :  { %5055 = vmatpush1.bf16.msra.mxu1 %v5054_v25  ;;  %v3154_v25 = vsub.s32 0, %v3153_v24 }
 0x520   :  { %5057 = vmatprep.subr.bf16.mxu1 %v5056_v31  ;;  %v3150_v31 = vld [vmem:[#allocation21] sm:$0x3] }
 0x521   :  { %v3155_v10 = vrot.slane %v3150_v31, %v3154_v25  ;;  %v3159_v36 = vrot.slane %v3150_v31, %v3158_v33  ;;  %v3561_v13 = vrot.slane %v3556_v11, %v3154_v25  ;;  %v3575_v16 = vrot.slane %v3570_v63, %v3154_v25 }
 0x523   :  { %5059 = vmatpush1.bf16.msra.mxu1 %v5058_v39 }
 0x524   :  { %5061 = vmatprep.subr.bf16.mxu1 %v5060_v40 }
 0x527   :  { %5063 = vmatpush1.bf16.msra.mxu1 %v5062_v27 }
 0x528   :  { %5065 = vmatprep.subr.bf16.mxu1 %v5064_v26 }
 0x52b   :  { %5067 = vmatpush1.bf16.msra.mxu1 %v5066_v15 }
 0x52c   :  { %5069 = vmatprep.subr.bf16.mxu1 %v5068_v32 }
 0x52f   :  { %5071 = vmatpush1.bf16.msra.mxu1 %v5070_v58 }
 0x530   :  { %5073 = vmatprep.subr.bf16.mxu1 %v5072_v47 }
 0x533   :  { %5075 = vmatpush1.bf16.msra.mxu1 %v5074_v51 }
 0x534   :  { %5077 = vmatprep.subr.bf16.mxu1 %v5076_v18 }
 0x537   :  { %5079 = vmatpush1.bf16.msra.mxu1 %v5078_v0 }
 0x538   :  { %5081 = vmatprep.subr.bf16.mxu1 %v5080_v1 }
 0x53b   :  { %5083 = vmatpush1.bf16.msra.mxu1 %v5082_v62 }
 0x53c   :  { %5085 = vmatprep.subr.bf16.mxu1 %v5084_v44 }
 0x53f   :  { %5087 = vmatpush1.bf16.msra.mxu1 %v5086_v12 }
 0x540   :  { %5089 = vmatprep.subr.bf16.mxu1 %v5088_v9  ;;  %v3565_v9 = vrot.slane %v3556_v11, %v3158_v33 }
 0x543   :  { %5091 = vmatpush1.bf16.msra.mxu1 %v5090_v17 }
 0x544   :  { %5093 = vmatprep.subr.bf16.mxu1 %v5092_v29 }
 0x547   :  { %5095 = vmatpush1.bf16.msra.mxu1 %v5094_v20 }
 0x54a   :  { %3511 = vmatmul.mubr.f32.vlgmr.msra.gmra.mrb[64].mxu1 %v2828_v21 }
 0x5db   :  { %v3299_v22 = vpop.f32.mrb[76].mxu0 }
 0x5dc   :  { %v3301_v56 = vpop.f32.mrb[77].mxu0  ;;  %v5096_v38 = vadd.f32 %v3299_v22, %v3155_v10 }
 0x5dd   :  { %v5098_v39 = vadd.f32 %v3301_v56, %v3159_v36 }
 0x61d   :  { %v3512_v40 = vpop.f32.mrb[64].mxu1 }
 0x61e   :  { %v5097_v41 = vadd.f32 %v5096_v38, %v3512_v40  ;;  %v3514_v43 = vpop.f32.mrb[65].mxu1 }
 0x61f   :  { %v5099_v55 = vadd.f32 %v5098_v39, %v3514_v43 }
 0x620   :  { %v3517_v57 = vrot.slane %v5097_v41, 4 }
 0x621   :  { %v3523_v27 = vrot.slane %v5099_v55, 4 }
 0x622   :  { %v3518_v26 = vadd.f32 %v5097_v41, %v3517_v57 }
 0x623   :  { %v3524_v52 = vadd.f32 %v5099_v55, %v3523_v27 }
 0x624   :  { %v3519_v45 = vrot.slane %v3518_v26, 2 }
 0x625   :  { %v3525_v60 = vrot.slane %v3524_v52, 2 }
 0x626   :  { %v3520_v59 = vadd.f32 %v3519_v45, %v3518_v26 }
 0x627   :  { %v3526_v15 = vadd.f32 %v3525_v60, %v3524_v52 }
 0x628   :  { %v3521_v32 = vrot.slane %v3520_v59, 1 }
 0x629   :  { %v3527_v28 = vrot.slane %v3526_v15, 1 }
 0x62a   :  { %v3522_v37 = vadd.f32 %v3521_v32, %v3520_v59 }
 0x62b   :  { %v3528_v2 = vadd.f32 %v3527_v28, %v3526_v15 }
 0x62c   :  { %v3530_v46 = vmul.f32 0.125, %v3522_v37 }
 0x62d   :  { %v3531_v58 = vmul.f32 0.125, %v3528_v2 }
 0x62e   :  { %v3532_v47 = vsub.f32 %v5097_v41, %v3530_v46 }
 0x62f   :  { %v3533_v30 = vsub.f32 %v5099_v55, %v3531_v58 }
 0x630   :  { %v3534_v48 = vmul.f32 %v3532_v47, %v3532_v47 }
 0x631   :  { %v3535_v49 = vmul.f32 %v3533_v30, %v3533_v30 }
 0x632   :  { %v3536_v34 = vrot.slane %v3534_v48, 4 }
 0x633   :  { %v3542_v51 = vrot.slane %v3535_v49, 4 }
 0x634   :  { %v3537_v18 = vadd.f32 %v3536_v34, %v3534_v48 }
 0x635   :  { %v3543_v53 = vadd.f32 %v3542_v51, %v3535_v49 }
 0x636   :  { %v3538_v54 = vrot.slane %v3537_v18, 2 }
 0x637   :  { %v3544_v42 = vrot.slane %v3543_v53, 2 }
 0x638   :  { %v3539_v61 = vadd.f32 %v3538_v54, %v3537_v18 }
 0x639   :  { %v3545_v0 = vadd.f32 %v3544_v42, %v3543_v53 }
 0x63a   :  { %v3540_v1 = vrot.slane %v3539_v61, 1 }
 0x63b   :  { %v3546_v50 = vrot.slane %v3545_v0, 1 }
 0x63c   :  { %v3541_v5 = vadd.f32 %v3540_v1, %v3539_v61 }
 0x63d   :  { %v3547_v6 = vadd.f32 %v3546_v50, %v3545_v0 }
 0x63e   :  { %v3548_v7 = vmul.f32 0.125, %v3541_v5 }
 0x63f   :  { %v3549_v62 = vmul.f32 0.125, %v3547_v6 }
 0x640   :  { %v3550_v44 = vadd.f32 1e-05, %v3548_v7 }
 0x641   :  { %v3551_v8 = vadd.f32 1e-05, %v3549_v62 }
 0x642   :  { %5125 = vrsqrt.f32 %v3550_v44 }
 0x643   :  { %5127 = vrsqrt.f32 %v3551_v8 }
 0x64c   :  { %v5126_v12 = vpop.eup %5125 }
 0x64d   :  { %v5128_v14 = vpop.eup %5127  ;;  %v3554_v4 = vmul.f32 %v5126_v12, %v3532_v47 }
 0x64e   :  { %v3555_v17 = vmul.f32 %v5128_v14, %v3533_v30 }
 0x64f   :  { %v3568_v29 = vmul.f32 %v3561_v13, %v3554_v4 }
 0x650   :  { %v3569_v35 = vmul.f32 %v3565_v9, %v3555_v17 }
 0x651   :  { %v3582_v19 = vadd.f32 %v3575_v16, %v3568_v29 }
 0x652   :  { %v3583_v20 = vadd.f32 %v3579_v3, %v3569_v35 }
 0x653   :  { %v3584_v21 = vmul.f32 0.2, %v3582_v19 }
 0x654   :  { %v3585_v22 = vmul.f32 0.2, %v3583_v20 }
 0x655   :  { %v3586_v56 = vmax.f32 %v3582_v19, %v3584_v21 }
 0x656   :  { %v3587_v23 = vmax.f32 %v3583_v20, %v3585_v22 }
 0x657   :  { %3588 = vst [vmem:[%s5851_s13] sm:$0xff] %v3586_v56 }
 0x658   :  { %3589 = vst [vmem:[%s5851_s13 + $0x8] sm:$0xff] %v3587_v23 }
 0x659   :  { %3594 = vsyncpa [#allocation8], 1 }
 0x65a   :  { %3595 = vsyncpa [#allocation10], 1 }
 0x65b   :  { %3596 = vsyncpa [#allocation13], 1 }
 0x65c   :  { %3597 = vsyncpa [#allocation16], 1 }
 0x65d   :  { %3598 = vsyncpa [#allocation19], 1 }
 0x65e   :  { %3599 = vsyncpa [#allocation22], 1 }
 0x65f   :  { %3600 = vsyncpa [#allocation25], 1 }

</bundles_post_ra>
